<compile_context>
chip_gen: v6e
topology: v6e:2x2x1
jax: 0.10.0
libtpu: 0.0.40
codegen_flags: <defaults>
</compile_context>

<pallas_src>
import functools
import math

import jax
import jax.numpy as jnp
import numpy as np
from jax.experimental import pallas as pl
from jax.experimental.pallas import tpu as pltpu


# Set to jnp.bfloat16 for the v5e/v6e MXU fast path (f32 accumulation kept).
COMPUTE_DTYPE = jnp.float32


# ---------------------------------------------------------------------------
# helpers
# ---------------------------------------------------------------------------

def _gelu_tanh(v):
    # TODO(synk): torch.nn.GELU defaults to the exact erf form; erf has no guaranteed
    # Mosaic lowering, so the tanh approximation (max abs diff ~3e-3) is used both
    # in-kernel and in the reference.
    c = math.sqrt(2.0 / math.pi)
    return 0.5 * v * (1.0 + jnp.tanh(c * (v + 0.044715 * v * v * v)))


def _dft_planes(n):
    # F[j, k] = exp(-2*pi*i*j*k/n) -> (real, imag) float32 planes.
    j = np.arange(n)
    ang = -2.0 * np.pi * np.outer(j, j) / n
    return np.cos(ang).astype(np.float32), np.sin(ang).astype(np.float32)


def _pick_block_batch(n, cap=8):
    """Largest divisor of n (<= cap), preferring an even number of grid steps
    so v7x's two TensorCores both get work on the 'parallel' batch axis."""
    divs = [d for d in range(1, min(n, cap) + 1) if n % d == 0]
    even = [d for d in divs if (n // d) % 2 == 0]
    return max(even) if even else max(divs)


# ---------------------------------------------------------------------------
# fused MFBlock kernel:  2-D FFT (dense DFT matmuls) + LN + LN + FeedForward
# ---------------------------------------------------------------------------

def _mfblock_kernel(x_ref, fd_ref, fs_ref, g1_ref, be1_ref, g2_ref, be2_ref,
                    w1_ref, b1_ref, w2_ref, b2_ref, o_ref, *, compute_dtype):
    """x_ref : (TB, S, Din)   Din = W (real input) or 2W ([re|im] input)
       fd_ref: (Din, 2W)      stage-1 DFT operator (FFT along dim=-1), [re|im] columns
       fs_ref: (2S, S)        stage-2 DFT operator (FFT along dim=-2), [re;im] rows
       o_ref : (TB, S, 2W)    [re|im] output slab
    """
    TB, S, Din = x_ref.shape
    D = fd_ref.shape[1] // 2
    cd = compute_dtype

    # ---- FFT stage 1: ONE wide matmul over all TB batched elements ---------
    x = x_ref[...].astype(cd).reshape(TB * S, Din)
    y = jnp.dot(x, fd_ref[...].astype(cd),
                preferred_element_type=jnp.float32)            # (TB*S, 2W)

    # ---- FFT stage 2: one (2S,S)@(S,2W) matmul per element, VPU recombine ---
    fs2 = fs_ref[...].astype(cd)
    rows = []
    for t in range(TB):                                        # static unroll
        yt = y[t * S:(t + 1) * S, :]                           # (S, 2W)
        w = jnp.dot(fs2, yt.astype(cd),
                    preferred_element_type=jnp.float32)        # (2S, 2W)
        z_re = w[:S, :D] - w[S:, D:]                           # (S, W)
        z_im = w[:S, D:] + w[S:, :D]                           # (S, W)
        rows.append(z_re)
        rows.append(z_im)
    z = jnp.concatenate(rows, axis=0)                          # (TB*2S, W)

    # ---- ComplexFn(LayerNorm) then PreNorm's LayerNorm (rowwise over W) -----
    def _layer_norm(v, g, b):
        mu = jnp.mean(v, axis=-1, keepdims=True)
        var = jnp.mean((v - mu) * (v - mu), axis=-1, keepdims=True)
        return (v - mu) * jax.lax.rsqrt(var + 1e-5) * g + b

    z = _layer_norm(z, g1_ref[...], be1_ref[...])
    z = _layer_norm(z, g2_ref[...], be2_ref[...])

    # ---- FeedForward: Linear -> GELU -> Linear (Dropout p=0 is identity) ----
    h = jnp.dot(z.astype(cd), w1_ref[...].astype(cd),
                preferred_element_type=jnp.float32) + b1_ref[...]
    h = _gelu_tanh(h)
    f = jnp.dot(h.astype(cd), w2_ref[...].astype(cd),
                preferred_element_type=jnp.float32) + b2_ref[...]   # (TB*2S, W)

    # ---- pack per element as a single lane-dense [re|im] slab ---------------
    for t in range(TB):
        fr = f[(2 * t) * S:(2 * t + 1) * S, :]
        fi = f[(2 * t + 1) * S:(2 * t + 2) * S, :]
        o_ref[t] = jnp.concatenate([fr, fi], axis=-1)          # (S, 2W)


def mfblock_pallas(x, fd, fs2, params, *, block_batch=None,
                   compute_dtype=jnp.float32):
    """x: (N, S, Din) f32 slab; returns (N, S, 2W) f32 [re|im] slab."""
    N, S, Din = x.shape
    D2 = fd.shape[1]
    D = D2 // 2
    M = params["w1"].shape[1]
    TB = block_batch if block_batch is not None else _pick_block_batch(N)
    assert N % TB == 0
    grid = (N // TB,)

    g1 = params["g1"].reshape(1, D)
    be1 = params["be1"].reshape(1, D)
    g2 = params["g2"].reshape(1, D)
    be2 = params["be2"].reshape(1, D)
    w1 = params["w1"]
    b1 = params["b1"].reshape(1, M)
    w2 = params["w2"]
    b2 = params["b2"].reshape(1, D)

    const2 = lambda i: (0, 0)
    in_specs = [
        pl.BlockSpec((TB, S, Din), lambda i: (i, 0, 0)),   # x (batched per step)
        pl.BlockSpec((Din, D2), const2),                   # stage-1 DFT operator
        pl.BlockSpec((2 * S, S), const2),                  # stage-2 DFT operator
        pl.BlockSpec((1, D), const2),                      # LN_a gamma
        pl.BlockSpec((1, D), const2),                      # LN_a beta
        pl.BlockSpec((1, D), const2),                      # LN_b gamma
        pl.BlockSpec((1, D), const2),                      # LN_b beta
        pl.BlockSpec((D, M), const2),                      # FF w1
        pl.BlockSpec((1, M), const2),                      # FF b1
        pl.BlockSpec((M, D), const2),                      # FF w2
        pl.BlockSpec((1, D), const2),                      # FF b2
    ]
    out_specs = pl.BlockSpec((TB, S, D2), lambda i: (i, 0, 0))

    kernel = functools.partial(_mfblock_kernel, compute_dtype=compute_dtype)
    return pl.pallas_call(
        kernel,
        out_shape=jax.ShapeDtypeStruct((N, S, D2), jnp.float32),
        grid_spec=pltpu.PrefetchScalarGridSpec(
            num_scalar_prefetch=0,
            grid=grid,
            in_specs=in_specs,
            out_specs=out_specs,
        ),
        compiler_params=pltpu.CompilerParams(
            dimension_semantics=("parallel",)),
    )(x, fd, fs2, g1, be1, g2, be2, w1, b1, w2, b2)


# ---------------------------------------------------------------------------
# ComplexFn(Conv2d 1x1, bias=False): channel-mixing matmul on a lane-dense view
# ---------------------------------------------------------------------------

def _conv1x1_kernel(x_ref, w_ref, o_ref):
    # out[b] = Wc (C,C) @ x[b] (C, H*2W); same mixing applies to re & im columns.
    o_ref[0] = jnp.dot(w_ref[...], x_ref[0], preferred_element_type=jnp.float32)


def conv1x1_pallas(x, w):
    """x: (B, C, L) f32, w: (C, C) f32; returns (B, C, L)."""
    B, C, L = x.shape
    return pl.pallas_call(
        _conv1x1_kernel,
        out_shape=jax.ShapeDtypeStruct((B, C, L), jnp.float32),
        grid_spec=pltpu.PrefetchScalarGridSpec(
            num_scalar_prefetch=0,
            grid=(B,),
            in_specs=[pl.BlockSpec((1, C, L), lambda b: (b, 0, 0)),
                      pl.BlockSpec((C, C), lambda b: (0, 0))],
            out_specs=pl.BlockSpec((1, C, L), lambda b: (b, 0, 0)),
        ),
        compiler_params=pltpu.CompilerParams(
            dimension_semantics=("parallel",)),
    )(x, w)


# ---------------------------------------------------------------------------
# MFStage forward (Pallas) and a pure-JAX reference
# ---------------------------------------------------------------------------

@jax.jit
def mfstage_forward(x, p1, wc1, p2, wc2):
    """MFStage forward.  x: (B, C, H, W) float32.  Returns complex64 (B, C, H, W)."""
    B, C, H, W = x.shape
    fdw_re, fdw_im = _dft_planes(W)   # DFT planes for dim=-1
    fsh_re, fsh_im = _dft_planes(H)   # DFT planes for dim=-2

    # stage-1 operator for real input:   X(S,W)  @ [Fw_re | Fw_im]              -> [y_re|y_im]
    fd_real = jnp.asarray(np.concatenate([fdw_re, fdw_im], axis=1))             # (W, 2W)
    # stage-1 operator for [re|im] input: X(S,2W) @ [[Fw_re, Fw_im],[-Fw_im, Fw_re]]
    fd_cplx = jnp.asarray(np.block([[fdw_re, fdw_im], [-fdw_im, fdw_re]]))      # (2W, 2W)
    # shared stage-2 operator:           [[Fh_re];[Fh_im]] @ Y(S,2W)            -> (2S, 2W)
    fs2 = jnp.asarray(np.concatenate([fsh_re, fsh_im], axis=0))                 # (2H, H)

    t = x.reshape(B * C, H, W)
    t = mfblock_pallas(t, fd_real, fs2, p1, compute_dtype=COMPUTE_DTYPE)        # (B*C, H, 2W)
    t = conv1x1_pallas(t.reshape(B, C, H * 2 * W), wc1).reshape(B * C, H, 2 * W)
    t = mfblock_pallas(t, fd_cplx, fs2, p2, compute_dtype=COMPUTE_DTYPE)        # (B*C, H, 2W)
    t = conv1x1_pallas(t.reshape(B, C, H * 2 * W), wc2).reshape(B, C, H, 2 * W)

    return jax.lax.complex(t[..., :W], t[..., W:])


def mfstage_reference(x, p1, wc1, p2, wc2):
    """Pure-JAX reference (jnp.fft + XLA ops) mirroring the torch module."""
    hi = jax.lax.Precision.HIGHEST

    def layer_norm(v, g, b):
        mu = v.mean(-1, keepdims=True)
        var = ((v - mu) ** 2).mean(-1, keepdims=True)
        return (v - mu) / jnp.sqrt(var + 1e-5) * g + b

    def plane(v, p):
        v = layer_norm(v, p["g1"], p["be1"])
        v = layer_norm(v, p["g2"], p["be2"])
        h = _gelu_tanh(jnp.dot(v, p["w1"], precision=hi) + p["b1"])
        return jnp.dot(h, p["w2"], precision=hi) + p["b2"]

    def mfblock(z, p):
        z = jnp.fft.fft(jnp.fft.fft(z, axis=-1), axis=-2)
        return jax.lax.complex(plane(z.real, p), plane(z.imag, p))

    def conv1x1(z, w):
        re = jnp.einsum("oc,bchw->bohw", w, z.real, precision=hi)
        im = jnp.einsum("oc,bchw->bohw", w, z.imag, precision=hi)
        return jax.lax.complex(re, im)

    z = mfblock(x.astype(jnp.complex64), p1)
    z = conv1x1(z, wc1)
    z = mfblock(z, p2)
    z = conv1x1(z, wc2)
    return z


# ---------------------------------------------------------------------------

if __name__ == "__main__":
    B, C, H, W = 2, 4, 16, 16          # batch, channels, spatial dims; LayerNorm dim == W
    MLP = 4 * W                        # mlp_dim default = dim * 4

    root = jax.random.PRNGKey(0)
    k_x, k_b1, k_b2, k_c1, k_c2 = jax.random.split(root, 5)
    x = jax.random.normal(k_x, (B, C, H, W), dtype=jnp.float32)

    def make_block_params(key):
        ks = jax.random.split(key, 8)
        return {
            "g1": 1.0 + 0.1 * jax.random.normal(ks[0], (W,), jnp.float32),
            "be1": 0.1 * jax.random.normal(ks[1], (W,), jnp.float32),
            "g2": 1.0 + 0.1 * jax.random.normal(ks[2], (W,), jnp.float32),
            "be2": 0.1 * jax.random.normal(ks[3], (W,), jnp.float32),
            "w1": jax.random.normal(ks[4], (W, MLP), jnp.float32) * float(1.0 / math.sqrt(W)),
            "b1": 0.1 * jax.random.normal(ks[5], (MLP,), jnp.float32),
            "w2": jax.random.normal(ks[6], (MLP, W), jnp.float32) * float(1.0 / math.sqrt(MLP)),
            "b2": 0.1 * jax.random.normal(ks[7], (W,), jnp.float32),
        }

    p1 = make_block_params(k_b1)
    p2 = make_block_params(k_b2)
    wc1 = jax.random.normal(k_c1, (C, C), jnp.float32) * float(1.0 / math.sqrt(C))
    wc2 = jax.random.normal(k_c2, (C, C), jnp.float32) * float(1.0 / math.sqrt(C))

    out = mfstage_forward(x, p1, wc1, p2, wc2)
    out = jax.block_until_ready(out)

    ref = mfstage_reference(x, p1, wc1, p2, wc2)
    num = jnp.sqrt(jnp.sum(jnp.abs(out - ref) ** 2))
    den = jnp.sqrt(jnp.sum(jnp.abs(ref) ** 2)) + 1e-12
    err = float(num / den)
    if not err < 2e-2:
        raise AssertionError(f"relative error vs. reference too large: {err:.3e}")

    print("KERNEL_OK")
</pallas_src>

<mosaic_0001>
module attributes {stable_mosaic.version = 11 : i64} {
  func.func @_conv1x1_kernel(%arg0: i32, %arg1: memref<1x4x512xf32, #tpu.memory_space<vmem>>, %arg2: memref<4x4xf32, #tpu.memory_space<vmem>>, %arg3: memref<1x4x512xf32, #tpu.memory_space<vmem>>) attributes {dimension_semantics = [#tpu.dimension_semantics<parallel>], iteration_bounds = array<i64: 2>, scalar_prefetch = 0 : i64, scratch_operands = 0 : i64, tpu.core_type = #tpu.core_type<tc>, window_params = [{transform_indices = @transform_0, window_bounds = array<i64: 1, 4, 512>}, {pipeline_mode = #tpu.pipeline_mode<synchronous>, transform_indices = @transform_1, window_bounds = array<i64: 4, 4>}, {transform_indices = @transform_2, window_bounds = array<i64: 1, 4, 512>}]} {
    %c0 = arith.constant 0 : index
    %c0_0 = arith.constant 0 : index
    %0 = vector.load %arg2[%c0, %c0_0] : memref<4x4xf32, #tpu.memory_space<vmem>>, vector<4x4xf32>
    %c0_1 = arith.constant 0 : index
    %c0_2 = arith.constant 0 : index
    %c0_3 = arith.constant 0 : index
    %1 = vector.load %arg1[%c0_1, %c0_2, %c0_3] : memref<1x4x512xf32, #tpu.memory_space<vmem>>, vector<1x4x512xf32>
    %2 = vector.shape_cast %1 : vector<1x4x512xf32> to vector<4x512xf32>
    %cst = arith.constant dense<0.000000e+00> : vector<4x512xf32>
    %3 = tpu.matmul %0, %2, %cst {dimension_numbers = #tpu.dot_dimension_numbers<[1], [0], [0], [1], [0, 0, 1, 1], [], []>} : vector<4x4xf32>, vector<4x512xf32>, vector<4x512xf32> -> vector<4x512xf32>
    %c0_4 = arith.constant 0 : index
    %c0_5 = arith.constant 0 : index
    %c0_6 = arith.constant 0 : index
    %4 = vector.load %arg3[%c0_4, %c0_5, %c0_6] : memref<1x4x512xf32, #tpu.memory_space<vmem>>, vector<1x4x512xf32>
    %5 = vector.shape_cast %4 : vector<1x4x512xf32> to vector<4x512xf32>
    %6 = vector.shape_cast %3 : vector<4x512xf32> to vector<1x4x512xf32>
    tpu.vector_store %arg3[%c0_4, %c0_5, %c0_6], %6 {strides = array<i32>} : memref<1x4x512xf32, #tpu.memory_space<vmem>>, vector<1x4x512xf32>,
    return
  }
  func.func @transform_0(%arg0: i32) -> (i32, i32, i32) {
    %c0_i32 = arith.constant 0 : i32
    %c0_i32_0 = arith.constant 0 : i32
    %c0_i32_1 = arith.constant 0 : i32
    return %arg0, %c0_i32, %c0_i32_0 : i32, i32, i32
  }
  func.func @transform_1(%arg0: i32) -> (i32, i32) {
    %c0_i32 = arith.constant 0 : i32
    %c0_i32_0 = arith.constant 0 : i32
    %c0_i32_1 = arith.constant 0 : i32
    return %c0_i32, %c0_i32_0 : i32, i32
  }
  func.func @transform_2(%arg0: i32) -> (i32, i32, i32) {
    %c0_i32 = arith.constant 0 : i32
    %c0_i32_0 = arith.constant 0 : i32
    %c0_i32_1 = arith.constant 0 : i32
    return %arg0, %c0_i32, %c0_i32_0 : i32, i32, i32
  }
}

module attributes {stable_mosaic.version = 11 : i64} {
  func.func @_mfblock_kernel(%arg0: i32, %arg1: memref<4x16x16xf32, #tpu.memory_space<vmem>>, %arg2: memref<16x32xf32, #tpu.memory_space<vmem>>, %arg3: memref<32x16xf32, #tpu.memory_space<vmem>>, %arg4: memref<1x16xf32, #tpu.memory_space<vmem>>, %arg5: memref<1x16xf32, #tpu.memory_space<vmem>>, %arg6: memref<1x16xf32, #tpu.memory_space<vmem>>, %arg7: memref<1x16xf32, #tpu.memory_space<vmem>>, %arg8: memref<16x64xf32, #tpu.memory_space<vmem>>, %arg9: memref<1x64xf32, #tpu.memory_space<vmem>>, %arg10: memref<64x16xf32, #tpu.memory_space<vmem>>, %arg11: memref<1x16xf32, #tpu.memory_space<vmem>>, %arg12: memref<4x16x32xf32, #tpu.memory_space<vmem>>) attributes {dimension_semantics = [#tpu.dimension_semantics<parallel>], iteration_bounds = array<i64: 2>, scalar_prefetch = 0 : i64, scratch_operands = 0 : i64, tpu.core_type = #tpu.core_type<tc>, window_params = [{transform_indices = @transform_0, window_bounds = array<i64: 4, 16, 16>}, {pipeline_mode = #tpu.pipeline_mode<synchronous>, transform_indices = @transform_1, window_bounds = array<i64: 16, 32>}, {pipeline_mode = #tpu.pipeline_mode<synchronous>, transform_indices = @transform_2, window_bounds = array<i64: 32, 16>}, {pipeline_mode = #tpu.pipeline_mode<synchronous>, transform_indices = @transform_3, window_bounds = array<i64: 1, 16>}, {pipeline_mode = #tpu.pipeline_mode<synchronous>, transform_indices = @transform_4, window_bounds = array<i64: 1, 16>}, {pipeline_mode = #tpu.pipeline_mode<synchronous>, transform_indices = @transform_5, window_bounds = array<i64: 1, 16>}, {pipeline_mode = #tpu.pipeline_mode<synchronous>, transform_indices = @transform_6, window_bounds = array<i64: 1, 16>}, {pipeline_mode = #tpu.pipeline_mode<synchronous>, transform_indices = @transform_7, window_bounds = array<i64: 16, 64>}, {pipeline_mode = #tpu.pipeline_mode<synchronous>, transform_indices = @transform_8, window_bounds = array<i64: 1, 64>}, {pipeline_mode = #tpu.pipeline_mode<synchronous>, transform_indices = @transform_9, window_bounds = array<i64: 64, 16>}, {pipeline_mode = #tpu.pipeline_mode<synchronous>, transform_indices = @transform_10, window_bounds = array<i64: 1, 16>}, {transform_indices = @transform_11, window_bounds = array<i64: 4, 16, 32>}]} {
    %c0 = arith.constant 0 : index
    %c0_0 = arith.constant 0 : index
    %c0_1 = arith.constant 0 : index
    %0 = vector.load %arg1[%c0, %c0_0, %c0_1] : memref<4x16x16xf32, #tpu.memory_space<vmem>>, vector<4x16x16xf32>
    %1 = vector.shape_cast %0 : vector<4x16x16xf32> to vector<64x16xf32>
    %c0_2 = arith.constant 0 : index
    %c0_3 = arith.constant 0 : index
    %2 = vector.load %arg2[%c0_2, %c0_3] : memref<16x32xf32, #tpu.memory_space<vmem>>, vector<16x32xf32>
    %cst = arith.constant dense<0.000000e+00> : vector<64x32xf32>
    %3 = tpu.matmul %1, %2, %cst {dimension_numbers = #tpu.dot_dimension_numbers<[1], [0], [0], [1], [0, 0, 1, 1], [], []>} : vector<64x16xf32>, vector<16x32xf32>, vector<64x32xf32> -> vector<64x32xf32>
    %c0_4 = arith.constant 0 : index
    %c0_5 = arith.constant 0 : index
    %4 = vector.load %arg3[%c0_4, %c0_5] : memref<32x16xf32, #tpu.memory_space<vmem>>, vector<32x16xf32>
    %5 = vector.extract_strided_slice %3 {offsets = [0, 0], sizes = [16, 32], strides = [1, 1]} : vector<64x32xf32> to vector<16x32xf32>
    %cst_6 = arith.constant dense<0.000000e+00> : vector<32x32xf32>
    %6 = tpu.matmul %4, %5, %cst_6 {dimension_numbers = #tpu.dot_dimension_numbers<[1], [0], [0], [1], [0, 0, 1, 1], [], []>} : vector<32x16xf32>, vector<16x32xf32>, vector<32x32xf32> -> vector<32x32xf32>
    %7 = vector.extract_strided_slice %6 {offsets = [0, 0], sizes = [16, 16], strides = [1, 1]} : vector<32x32xf32> to vector<16x16xf32>
    %8 = vector.extract_strided_slice %6 {offsets = [16, 16], sizes = [16, 16], strides = [1, 1]} : vector<32x32xf32> to vector<16x16xf32>
    %9 = arith.subf %7, %8 : vector<16x16xf32>
    %10 = vector.extract_strided_slice %6 {offsets = [0, 16], sizes = [16, 16], strides = [1, 1]} : vector<32x32xf32> to vector<16x16xf32>
    %11 = vector.extract_strided_slice %6 {offsets = [16, 0], sizes = [16, 16], strides = [1, 1]} : vector<32x32xf32> to vector<16x16xf32>
    %12 = arith.addf %10, %11 : vector<16x16xf32>
    %13 = vector.extract_strided_slice %3 {offsets = [16, 0], sizes = [16, 32], strides = [1, 1]} : vector<64x32xf32> to vector<16x32xf32>
    %cst_7 = arith.constant dense<0.000000e+00> : vector<32x32xf32>
    %14 = tpu.matmul %4, %13, %cst_7 {dimension_numbers = #tpu.dot_dimension_numbers<[1], [0], [0], [1], [0, 0, 1, 1], [], []>} : vector<32x16xf32>, vector<16x32xf32>, vector<32x32xf32> -> vector<32x32xf32>
    %15 = vector.extract_strided_slice %14 {offsets = [0, 0], sizes = [16, 16], strides = [1, 1]} : vector<32x32xf32> to vector<16x16xf32>
    %16 = vector.extract_strided_slice %14 {offsets = [16, 16], sizes = [16, 16], strides = [1, 1]} : vector<32x32xf32> to vector<16x16xf32>
    %17 = arith.subf %15, %16 : vector<16x16xf32>
    %18 = vector.extract_strided_slice %14 {offsets = [0, 16], sizes = [16, 16], strides = [1, 1]} : vector<32x32xf32> to vector<16x16xf32>
    %19 = vector.extract_strided_slice %14 {offsets = [16, 0], sizes = [16, 16], strides = [1, 1]} : vector<32x32xf32> to vector<16x16xf32>
    %20 = arith.addf %18, %19 : vector<16x16xf32>
    %21 = vector.extract_strided_slice %3 {offsets = [32, 0], sizes = [16, 32], strides = [1, 1]} : vector<64x32xf32> to vector<16x32xf32>
    %cst_8 = arith.constant dense<0.000000e+00> : vector<32x32xf32>
    %22 = tpu.matmul %4, %21, %cst_8 {dimension_numbers = #tpu.dot_dimension_numbers<[1], [0], [0], [1], [0, 0, 1, 1], [], []>} : vector<32x16xf32>, vector<16x32xf32>, vector<32x32xf32> -> vector<32x32xf32>
    %23 = vector.extract_strided_slice %22 {offsets = [0, 0], sizes = [16, 16], strides = [1, 1]} : vector<32x32xf32> to vector<16x16xf32>
    %24 = vector.extract_strided_slice %22 {offsets = [16, 16], sizes = [16, 16], strides = [1, 1]} : vector<32x32xf32> to vector<16x16xf32>
    %25 = arith.subf %23, %24 : vector<16x16xf32>
    %26 = vector.extract_strided_slice %22 {offsets = [0, 16], sizes = [16, 16], strides = [1, 1]} : vector<32x32xf32> to vector<16x16xf32>
    %27 = vector.extract_strided_slice %22 {offsets = [16, 0], sizes = [16, 16], strides = [1, 1]} : vector<32x32xf32> to vector<16x16xf32>
    %28 = arith.addf %26, %27 : vector<16x16xf32>
    %29 = vector.extract_strided_slice %3 {offsets = [48, 0], sizes = [16, 32], strides = [1, 1]} : vector<64x32xf32> to vector<16x32xf32>
    %cst_9 = arith.constant dense<0.000000e+00> : vector<32x32xf32>
    %30 = tpu.matmul %4, %29, %cst_9 {dimension_numbers = #tpu.dot_dimension_numbers<[1], [0], [0], [1], [0, 0, 1, 1], [], []>} : vector<32x16xf32>, vector<16x32xf32>, vector<32x32xf32> -> vector<32x32xf32>
    %31 = vector.extract_strided_slice %30 {offsets = [0, 0], sizes = [16, 16], strides = [1, 1]} : vector<32x32xf32> to vector<16x16xf32>
    %32 = vector.extract_strided_slice %30 {offsets = [16, 16], sizes = [16, 16], strides = [1, 1]} : vector<32x32xf32> to vector<16x16xf32>
    %33 = arith.subf %31, %32 : vector<16x16xf32>
    %34 = vector.extract_strided_slice %30 {offsets = [0, 16], sizes = [16, 16], strides = [1, 1]} : vector<32x32xf32> to vector<16x16xf32>
    %35 = vector.extract_strided_slice %30 {offsets = [16, 0], sizes = [16, 16], strides = [1, 1]} : vector<32x32xf32> to vector<16x16xf32>
    %36 = arith.addf %34, %35 : vector<16x16xf32>
    %37 = tpu.concatenate %9, %12, %17, %20, %25, %28, %33, %36 in 0 : vector<16x16xf32>, vector<16x16xf32>, vector<16x16xf32>, vector<16x16xf32>, vector<16x16xf32>, vector<16x16xf32>, vector<16x16xf32>, vector<16x16xf32> -> vector<128x16xf32>
    %c0_10 = arith.constant 0 : index
    %c0_11 = arith.constant 0 : index
    %38 = vector.load %arg4[%c0_10, %c0_11] : memref<1x16xf32, #tpu.memory_space<vmem>>, vector<1x16xf32>
    %c0_12 = arith.constant 0 : index
    %c0_13 = arith.constant 0 : index
    %39 = vector.load %arg5[%c0_12, %c0_13] : memref<1x16xf32, #tpu.memory_space<vmem>>, vector<1x16xf32>
    %cst_14 = arith.constant dense<0.000000e+00> : vector<128xf32>
    %40 = vector.multi_reduction <add>, %37, %cst_14 [1] : vector<128x16xf32> to vector<128xf32>
    %41 = vector.shape_cast %40 : vector<128xf32> to vector<128x1xf32>
    %cst_15 = arith.constant 1.600000e+01 : f32
    %42 = vector.broadcast %cst_15 : f32 to vector<128x1xf32>
    %43 = arith.divf %41, %42 : vector<128x1xf32>
    %44 = vector.broadcast %43 : vector<128x1xf32> to vector<128x16xf32>
    %45 = arith.subf %37, %44 : vector<128x16xf32>
    %46 = vector.broadcast %43 : vector<128x1xf32> to vector<128x16xf32>
    %47 = arith.subf %37, %46 : vector<128x16xf32>
    %48 = arith.mulf %45, %47 : vector<128x16xf32>
    %cst_16 = arith.constant dense<0.000000e+00> : vector<128xf32>
    %49 = vector.multi_reduction <add>, %48, %cst_16 [1] : vector<128x16xf32> to vector<128xf32>
    %50 = vector.shape_cast %49 : vector<128xf32> to vector<128x1xf32>
    %cst_17 = arith.constant 1.600000e+01 : f32
    %51 = vector.broadcast %cst_17 : f32 to vector<128x1xf32>
    %52 = arith.divf %50, %51 : vector<128x1xf32>
    %53 = vector.broadcast %43 : vector<128x1xf32> to vector<128x16xf32>
    %54 = arith.subf %37, %53 : vector<128x16xf32>
    %cst_18 = arith.constant 9.99999974E-6 : f32
    %55 = vector.broadcast %cst_18 : f32 to vector<128x1xf32>
    %56 = arith.addf %52, %55 : vector<128x1xf32>
    %57 = math.rsqrt %56 : vector<128x1xf32>
    %58 = vector.broadcast %57 : vector<128x1xf32> to vector<128x16xf32>
    %59 = arith.mulf %54, %58 : vector<128x16xf32>
    %60 = vector.broadcast %38 : vector<1x16xf32> to vector<128x16xf32>
    %61 = arith.mulf %59, %60 : vector<128x16xf32>
    %62 = vector.broadcast %39 : vector<1x16xf32> to vector<128x16xf32>
    %63 = arith.addf %61, %62 : vector<128x16xf32>
    %c0_19 = arith.constant 0 : index
    %c0_20 = arith.constant 0 : index
    %64 = vector.load %arg6[%c0_19, %c0_20] : memref<1x16xf32, #tpu.memory_space<vmem>>, vector<1x16xf32>
    %c0_21 = arith.constant 0 : index
    %c0_22 = arith.constant 0 : index
    %65 = vector.load %arg7[%c0_21, %c0_22] : memref<1x16xf32, #tpu.memory_space<vmem>>, vector<1x16xf32>
    %cst_23 = arith.constant dense<0.000000e+00> : vector<128xf32>
    %66 = vector.multi_reduction <add>, %63, %cst_23 [1] : vector<128x16xf32> to vector<128xf32>
    %67 = vector.shape_cast %66 : vector<128xf32> to vector<128x1xf32>
    %cst_24 = arith.constant 1.600000e+01 : f32
    %68 = vector.broadcast %cst_24 : f32 to vector<128x1xf32>
    %69 = arith.divf %67, %68 : vector<128x1xf32>
    %70 = vector.broadcast %69 : vector<128x1xf32> to vector<128x16xf32>
    %71 = arith.subf %63, %70 : vector<128x16xf32>
    %72 = vector.broadcast %69 : vector<128x1xf32> to vector<128x16xf32>
    %73 = arith.subf %63, %72 : vector<128x16xf32>
    %74 = arith.mulf %71, %73 : vector<128x16xf32>
    %cst_25 = arith.constant dense<0.000000e+00> : vector<128xf32>
    %75 = vector.multi_reduction <add>, %74, %cst_25 [1] : vector<128x16xf32> to vector<128xf32>
    %76 = vector.shape_cast %75 : vector<128xf32> to vector<128x1xf32>
    %cst_26 = arith.constant 1.600000e+01 : f32
    %77 = vector.broadcast %cst_26 : f32 to vector<128x1xf32>
    %78 = arith.divf %76, %77 : vector<128x1xf32>
    %79 = vector.broadcast %69 : vector<128x1xf32> to vector<128x16xf32>
    %80 = arith.subf %63, %79 : vector<128x16xf32>
    %cst_27 = arith.constant 9.99999974E-6 : f32
    %81 = vector.broadcast %cst_27 : f32 to vector<128x1xf32>
    %82 = arith.addf %78, %81 : vector<128x1xf32>
    %83 = math.rsqrt %82 : vector<128x1xf32>
    %84 = vector.broadcast %83 : vector<128x1xf32> to vector<128x16xf32>
    %85 = arith.mulf %80, %84 : vector<128x16xf32>
    %86 = vector.broadcast %64 : vector<1x16xf32> to vector<128x16xf32>
    %87 = arith.mulf %85, %86 : vector<128x16xf32>
    %88 = vector.broadcast %65 : vector<1x16xf32> to vector<128x16xf32>
    %89 = arith.addf %87, %88 : vector<128x16xf32>
    %c0_28 = arith.constant 0 : index
    %c0_29 = arith.constant 0 : index
    %90 = vector.load %arg8[%c0_28, %c0_29] : memref<16x64xf32, #tpu.memory_space<vmem>>, vector<16x64xf32>
    %cst_30 = arith.constant dense<0.000000e+00> : vector<128x64xf32>
    %91 = tpu.matmul %89, %90, %cst_30 {dimension_numbers = #tpu.dot_dimension_numbers<[1], [0], [0], [1], [0, 0, 1, 1], [], []>} : vector<128x16xf32>, vector<16x64xf32>, vector<128x64xf32> -> vector<128x64xf32>
    %c0_31 = arith.constant 0 : index
    %c0_32 = arith.constant 0 : index
    %92 = vector.load %arg9[%c0_31, %c0_32] : memref<1x64xf32, #tpu.memory_space<vmem>>, vector<1x64xf32>
    %93 = vector.broadcast %92 : vector<1x64xf32> to vector<128x64xf32>
    %94 = arith.addf %91, %93 : vector<128x64xf32>
    %cst_33 = arith.constant 5.000000e-01 : f32
    %95 = vector.broadcast %cst_33 : f32 to vector<128x64xf32>
    %96 = arith.mulf %95, %94 : vector<128x64xf32>
    %cst_34 = arith.constant 4.471500e-02 : f32
    %97 = vector.broadcast %cst_34 : f32 to vector<128x64xf32>
    %98 = arith.mulf %97, %94 : vector<128x64xf32>
    %99 = arith.mulf %98, %94 : vector<128x64xf32>
    %100 = arith.mulf %99, %94 : vector<128x64xf32>
    %101 = arith.addf %94, %100 : vector<128x64xf32>
    %cst_35 = arith.constant 0.797884583 : f32
    %102 = vector.broadcast %cst_35 : f32 to vector<128x64xf32>
    %103 = arith.mulf %102, %101 : vector<128x64xf32>
    %104 = math.tanh %103 : vector<128x64xf32>
    %cst_36 = arith.constant 1.000000e+00 : f32
    %105 = vector.broadcast %cst_36 : f32 to vector<128x64xf32>
    %106 = arith.addf %105, %104 : vector<128x64xf32>
    %107 = arith.mulf %96, %106 : vector<128x64xf32>
    %c0_37 = arith.constant 0 : index
    %c0_38 = arith.constant 0 : index
    %108 = vector.load %arg10[%c0_37, %c0_38] : memref<64x16xf32, #tpu.memory_space<vmem>>, vector<64x16xf32>
    %cst_39 = arith.constant dense<0.000000e+00> : vector<128x16xf32>
    %109 = tpu.matmul %107, %108, %cst_39 {dimension_numbers = #tpu.dot_dimension_numbers<[1], [0], [0], [1], [0, 0, 1, 1], [], []>} : vector<128x64xf32>, vector<64x16xf32>, vector<128x16xf32> -> vector<128x16xf32>
    %c0_40 = arith.constant 0 : index
    %c0_41 = arith.constant 0 : index
    %110 = vector.load %arg11[%c0_40, %c0_41] : memref<1x16xf32, #tpu.memory_space<vmem>>, vector<1x16xf32>
    %111 = vector.broadcast %110 : vector<1x16xf32> to vector<128x16xf32>
    %112 = arith.addf %109, %111 : vector<128x16xf32>
    %113 = vector.extract_strided_slice %112 {offsets = [0, 0], sizes = [16, 16], strides = [1, 1]} : vector<128x16xf32> to vector<16x16xf32>
    %114 = vector.extract_strided_slice %112 {offsets = [16, 0], sizes = [16, 16], strides = [1, 1]} : vector<128x16xf32> to vector<16x16xf32>
    %115 = tpu.concatenate %113, %114 in 1 : vector<16x16xf32>, vector<16x16xf32> -> vector<16x32xf32>
    %c0_42 = arith.constant 0 : index
    %c0_43 = arith.constant 0 : index
    %c0_44 = arith.constant 0 : index
    %116 = vector.load %arg12[%c0_42, %c0_43, %c0_44] : memref<4x16x32xf32, #tpu.memory_space<vmem>>, vector<1x16x32xf32>
    %117 = vector.shape_cast %116 : vector<1x16x32xf32> to vector<16x32xf32>
    %118 = vector.shape_cast %115 : vector<16x32xf32> to vector<1x16x32xf32>
    tpu.vector_store %arg12[%c0_42, %c0_43, %c0_44], %118 {strides = array<i32>} : memref<4x16x32xf32, #tpu.memory_space<vmem>>, vector<1x16x32xf32>,
    %119 = vector.extract_strided_slice %112 {offsets = [32, 0], sizes = [16, 16], strides = [1, 1]} : vector<128x16xf32> to vector<16x16xf32>
    %120 = vector.extract_strided_slice %112 {offsets = [48, 0], sizes = [16, 16], strides = [1, 1]} : vector<128x16xf32> to vector<16x16xf32>
    %121 = tpu.concatenate %119, %120 in 1 : vector<16x16xf32>, vector<16x16xf32> -> vector<16x32xf32>
    %c1 = arith.constant 1 : index
    %c0_45 = arith.constant 0 : index
    %c0_46 = arith.constant 0 : index
    %122 = vector.load %arg12[%c1, %c0_45, %c0_46] : memref<4x16x32xf32, #tpu.memory_space<vmem>>, vector<1x16x32xf32>
    %123 = vector.shape_cast %122 : vector<1x16x32xf32> to vector<16x32xf32>
    %124 = vector.shape_cast %121 : vector<16x32xf32> to vector<1x16x32xf32>
    tpu.vector_store %arg12[%c1, %c0_45, %c0_46], %124 {strides = array<i32>} : memref<4x16x32xf32, #tpu.memory_space<vmem>>, vector<1x16x32xf32>,
    %125 = vector.extract_strided_slice %112 {offsets = [64, 0], sizes = [16, 16], strides = [1, 1]} : vector<128x16xf32> to vector<16x16xf32>
    %126 = vector.extract_strided_slice %112 {offsets = [80, 0], sizes = [16, 16], strides = [1, 1]} : vector<128x16xf32> to vector<16x16xf32>
    %127 = tpu.concatenate %125, %126 in 1 : vector<16x16xf32>, vector<16x16xf32> -> vector<16x32xf32>
    %c2 = arith.constant 2 : index
    %c0_47 = arith.constant 0 : index
    %c0_48 = arith.constant 0 : index
    %128 = vector.load %arg12[%c2, %c0_47, %c0_48] : memref<4x16x32xf32, #tpu.memory_space<vmem>>, vector<1x16x32xf32>
    %129 = vector.shape_cast %128 : vector<1x16x32xf32> to vector<16x32xf32>
    %130 = vector.shape_cast %127 : vector<16x32xf32> to vector<1x16x32xf32>
    tpu.vector_store %arg12[%c2, %c0_47, %c0_48], %130 {strides = array<i32>} : memref<4x16x32xf32, #tpu.memory_space<vmem>>, vector<1x16x32xf32>,
    %131 = vector.extract_strided_slice %112 {offsets = [96, 0], sizes = [16, 16], strides = [1, 1]} : vector<128x16xf32> to vector<16x16xf32>
    %132 = vector.extract_strided_slice %112 {offsets = [112, 0], sizes = [16, 16], strides = [1, 1]} : vector<128x16xf32> to vector<16x16xf32>
    %133 = tpu.concatenate %131, %132 in 1 : vector<16x16xf32>, vector<16x16xf32> -> vector<16x32xf32>
    %c3 = arith.constant 3 : index
    %c0_49 = arith.constant 0 : index
    %c0_50 = arith.constant 0 : index
    %134 = vector.load %arg12[%c3, %c0_49, %c0_50] : memref<4x16x32xf32, #tpu.memory_space<vmem>>, vector<1x16x32xf32>
    %135 = vector.shape_cast %134 : vector<1x16x32xf32> to vector<16x32xf32>
    %136 = vector.shape_cast %133 : vector<16x32xf32> to vector<1x16x32xf32>
    tpu.vector_store %arg12[%c3, %c0_49, %c0_50], %136 {strides = array<i32>} : memref<4x16x32xf32, #tpu.memory_space<vmem>>, vector<1x16x32xf32>,
    return
  }
  func.func @transform_0(%arg0: i32) -> (i32, i32, i32) {
    %c0_i32 = arith.constant 0 : i32
    %c0_i32_0 = arith.constant 0 : i32
    %c0_i32_1 = arith.constant 0 : i32
    return %arg0, %c0_i32, %c0_i32_0 : i32, i32, i32
  }
  func.func @transform_1(%arg0: i32) -> (i32, i32) {
    %c0_i32 = arith.constant 0 : i32
    %c0_i32_0 = arith.constant 0 : i32
    %c0_i32_1 = arith.constant 0 : i32
    return %c0_i32, %c0_i32_0 : i32, i32
  }
  func.func @transform_2(%arg0: i32) -> (i32, i32) {
    %c0_i32 = arith.constant 0 : i32
    %c0_i32_0 = arith.constant 0 : i32
    %c0_i32_1 = arith.constant 0 : i32
    return %c0_i32, %c0_i32_0 : i32, i32
  }
  func.func @transform_3(%arg0: i32) -> (i32, i32) {
    %c0_i32 = arith.constant 0 : i32
    %c0_i32_0 = arith.constant 0 : i32
    %c0_i32_1 = arith.constant 0 : i32
    return %c0_i32, %c0_i32_0 : i32, i32
  }
  func.func @transform_4(%arg0: i32) -> (i32, i32) {
    %c0_i32 = arith.constant 0 : i32
    %c0_i32_0 = arith.constant 0 : i32
    %c0_i32_1 = arith.constant 0 : i32
    return %c0_i32, %c0_i32_0 : i32, i32
  }
  func.func @transform_5(%arg0: i32) -> (i32, i32) {
    %c0_i32 = arith.constant 0 : i32
    %c0_i32_0 = arith.constant 0 : i32
    %c0_i32_1 = arith.constant 0 : i32
    return %c0_i32, %c0_i32_0 : i32, i32
  }
  func.func @transform_6(%arg0: i32) -> (i32, i32) {
    %c0_i32 = arith.constant 0 : i32
    %c0_i32_0 = arith.constant 0 : i32
    %c0_i32_1 = arith.constant 0 : i32
    return %c0_i32, %c0_i32_0 : i32, i32
  }
  func.func @transform_7(%arg0: i32) -> (i32, i32) {
    %c0_i32 = arith.constant 0 : i32
    %c0_i32_0 = arith.constant 0 : i32
    %c0_i32_1 = arith.constant 0 : i32
    return %c0_i32, %c0_i32_0 : i32, i32
  }
  func.func @transform_8(%arg0: i32) -> (i32, i32) {
    %c0_i32 = arith.constant 0 : i32
    %c0_i32_0 = arith.constant 0 : i32
    %c0_i32_1 = arith.constant 0 : i32
    return %c0_i32, %c0_i32_0 : i32, i32
  }
  func.func @transform_9(%arg0: i32) -> (i32, i32) {
    %c0_i32 = arith.constant 0 : i32
    %c0_i32_0 = arith.constant 0 : i32
    %c0_i32_1 = arith.constant 0 : i32
    return %c0_i32, %c0_i32_0 : i32, i32
  }
  func.func @transform_10(%arg0: i32) -> (i32, i32) {
    %c0_i32 = arith.constant 0 : i32
    %c0_i32_0 = arith.constant 0 : i32
    %c0_i32_1 = arith.constant 0 : i32
    return %c0_i32, %c0_i32_0 : i32, i32
  }
  func.func @transform_11(%arg0: i32) -> (i32, i32, i32) {
    %c0_i32 = arith.constant 0 : i32
    %c0_i32_0 = arith.constant 0 : i32
    %c0_i32_1 = arith.constant 0 : i32
    return %arg0, %c0_i32, %c0_i32_0 : i32, i32, i32
  }
}

module attributes {stable_mosaic.version = 11 : i64} {
  func.func @_mfblock_kernel(%arg0: i32, %arg1: memref<4x16x32xf32, #tpu.memory_space<vmem>>, %arg2: memref<32x32xf32, #tpu.memory_space<vmem>>, %arg3: memref<32x16xf32, #tpu.memory_space<vmem>>, %arg4: memref<1x16xf32, #tpu.memory_space<vmem>>, %arg5: memref<1x16xf32, #tpu.memory_space<vmem>>, %arg6: memref<1x16xf32, #tpu.memory_space<vmem>>, %arg7: memref<1x16xf32, #tpu.memory_space<vmem>>, %arg8: memref<16x64xf32, #tpu.memory_space<vmem>>, %arg9: memref<1x64xf32, #tpu.memory_space<vmem>>, %arg10: memref<64x16xf32, #tpu.memory_space<vmem>>, %arg11: memref<1x16xf32, #tpu.memory_space<vmem>>, %arg12: memref<4x16x32xf32, #tpu.memory_space<vmem>>) attributes {dimension_semantics = [#tpu.dimension_semantics<parallel>], iteration_bounds = array<i64: 2>, scalar_prefetch = 0 : i64, scratch_operands = 0 : i64, tpu.core_type = #tpu.core_type<tc>, window_params = [{transform_indices = @transform_0, window_bounds = array<i64: 4, 16, 32>}, {pipeline_mode = #tpu.pipeline_mode<synchronous>, transform_indices = @transform_1, window_bounds = array<i64: 32, 32>}, {pipeline_mode = #tpu.pipeline_mode<synchronous>, transform_indices = @transform_2, window_bounds = array<i64: 32, 16>}, {pipeline_mode = #tpu.pipeline_mode<synchronous>, transform_indices = @transform_3, window_bounds = array<i64: 1, 16>}, {pipeline_mode = #tpu.pipeline_mode<synchronous>, transform_indices = @transform_4, window_bounds = array<i64: 1, 16>}, {pipeline_mode = #tpu.pipeline_mode<synchronous>, transform_indices = @transform_5, window_bounds = array<i64: 1, 16>}, {pipeline_mode = #tpu.pipeline_mode<synchronous>, transform_indices = @transform_6, window_bounds = array<i64: 1, 16>}, {pipeline_mode = #tpu.pipeline_mode<synchronous>, transform_indices = @transform_7, window_bounds = array<i64: 16, 64>}, {pipeline_mode = #tpu.pipeline_mode<synchronous>, transform_indices = @transform_8, window_bounds = array<i64: 1, 64>}, {pipeline_mode = #tpu.pipeline_mode<synchronous>, transform_indices = @transform_9, window_bounds = array<i64: 64, 16>}, {pipeline_mode = #tpu.pipeline_mode<synchronous>, transform_indices = @transform_10, window_bounds = array<i64: 1, 16>}, {transform_indices = @transform_11, window_bounds = array<i64: 4, 16, 32>}]} {
    %c0 = arith.constant 0 : index
    %c0_0 = arith.constant 0 : index
    %c0_1 = arith.constant 0 : index
    %0 = vector.load %arg1[%c0, %c0_0, %c0_1] : memref<4x16x32xf32, #tpu.memory_space<vmem>>, vector<4x16x32xf32>
    %1 = vector.shape_cast %0 : vector<4x16x32xf32> to vector<64x32xf32>
    %c0_2 = arith.constant 0 : index
    %c0_3 = arith.constant 0 : index
    %2 = vector.load %arg2[%c0_2, %c0_3] : memref<32x32xf32, #tpu.memory_space<vmem>>, vector<32x32xf32>
    %cst = arith.constant dense<0.000000e+00> : vector<64x32xf32>
    %3 = tpu.matmul %1, %2, %cst {dimension_numbers = #tpu.dot_dimension_numbers<[1], [0], [0], [1], [0, 0, 1, 1], [], []>} : vector<64x32xf32>, vector<32x32xf32>, vector<64x32xf32> -> vector<64x32xf32>
    %c0_4 = arith.constant 0 : index
    %c0_5 = arith.constant 0 : index
    %4 = vector.load %arg3[%c0_4, %c0_5] : memref<32x16xf32, #tpu.memory_space<vmem>>, vector<32x16xf32>
    %5 = vector.extract_strided_slice %3 {offsets = [0, 0], sizes = [16, 32], strides = [1, 1]} : vector<64x32xf32> to vector<16x32xf32>
    %cst_6 = arith.constant dense<0.000000e+00> : vector<32x32xf32>
    %6 = tpu.matmul %4, %5, %cst_6 {dimension_numbers = #tpu.dot_dimension_numbers<[1], [0], [0], [1], [0, 0, 1, 1], [], []>} : vector<32x16xf32>, vector<16x32xf32>, vector<32x32xf32> -> vector<32x32xf32>
    %7 = vector.extract_strided_slice %6 {offsets = [0, 0], sizes = [16, 16], strides = [1, 1]} : vector<32x32xf32> to vector<16x16xf32>
    %8 = vector.extract_strided_slice %6 {offsets = [16, 16], sizes = [16, 16], strides = [1, 1]} : vector<32x32xf32> to vector<16x16xf32>
    %9 = arith.subf %7, %8 : vector<16x16xf32>
    %10 = vector.extract_strided_slice %6 {offsets = [0, 16], sizes = [16, 16], strides = [1, 1]} : vector<32x32xf32> to vector<16x16xf32>
    %11 = vector.extract_strided_slice %6 {offsets = [16, 0], sizes = [16, 16], strides = [1, 1]} : vector<32x32xf32> to vector<16x16xf32>
    %12 = arith.addf %10, %11 : vector<16x16xf32>
    %13 = vector.extract_strided_slice %3 {offsets = [16, 0], sizes = [16, 32], strides = [1, 1]} : vector<64x32xf32> to vector<16x32xf32>
    %cst_7 = arith.constant dense<0.000000e+00> : vector<32x32xf32>
    %14 = tpu.matmul %4, %13, %cst_7 {dimension_numbers = #tpu.dot_dimension_numbers<[1], [0], [0], [1], [0, 0, 1, 1], [], []>} : vector<32x16xf32>, vector<16x32xf32>, vector<32x32xf32> -> vector<32x32xf32>
    %15 = vector.extract_strided_slice %14 {offsets = [0, 0], sizes = [16, 16], strides = [1, 1]} : vector<32x32xf32> to vector<16x16xf32>
    %16 = vector.extract_strided_slice %14 {offsets = [16, 16], sizes = [16, 16], strides = [1, 1]} : vector<32x32xf32> to vector<16x16xf32>
    %17 = arith.subf %15, %16 : vector<16x16xf32>
    %18 = vector.extract_strided_slice %14 {offsets = [0, 16], sizes = [16, 16], strides = [1, 1]} : vector<32x32xf32> to vector<16x16xf32>
    %19 = vector.extract_strided_slice %14 {offsets = [16, 0], sizes = [16, 16], strides = [1, 1]} : vector<32x32xf32> to vector<16x16xf32>
    %20 = arith.addf %18, %19 : vector<16x16xf32>
    %21 = vector.extract_strided_slice %3 {offsets = [32, 0], sizes = [16, 32], strides = [1, 1]} : vector<64x32xf32> to vector<16x32xf32>
    %cst_8 = arith.constant dense<0.000000e+00> : vector<32x32xf32>
    %22 = tpu.matmul %4, %21, %cst_8 {dimension_numbers = #tpu.dot_dimension_numbers<[1], [0], [0], [1], [0, 0, 1, 1], [], []>} : vector<32x16xf32>, vector<16x32xf32>, vector<32x32xf32> -> vector<32x32xf32>
    %23 = vector.extract_strided_slice %22 {offsets = [0, 0], sizes = [16, 16], strides = [1, 1]} : vector<32x32xf32> to vector<16x16xf32>
    %24 = vector.extract_strided_slice %22 {offsets = [16, 16], sizes = [16, 16], strides = [1, 1]} : vector<32x32xf32> to vector<16x16xf32>
    %25 = arith.subf %23, %24 : vector<16x16xf32>
    %26 = vector.extract_strided_slice %22 {offsets = [0, 16], sizes = [16, 16], strides = [1, 1]} : vector<32x32xf32> to vector<16x16xf32>
    %27 = vector.extract_strided_slice %22 {offsets = [16, 0], sizes = [16, 16], strides = [1, 1]} : vector<32x32xf32> to vector<16x16xf32>
    %28 = arith.addf %26, %27 : vector<16x16xf32>
    %29 = vector.extract_strided_slice %3 {offsets = [48, 0], sizes = [16, 32], strides = [1, 1]} : vector<64x32xf32> to vector<16x32xf32>
    %cst_9 = arith.constant dense<0.000000e+00> : vector<32x32xf32>
    %30 = tpu.matmul %4, %29, %cst_9 {dimension_numbers = #tpu.dot_dimension_numbers<[1], [0], [0], [1], [0, 0, 1, 1], [], []>} : vector<32x16xf32>, vector<16x32xf32>, vector<32x32xf32> -> vector<32x32xf32>
    %31 = vector.extract_strided_slice %30 {offsets = [0, 0], sizes = [16, 16], strides = [1, 1]} : vector<32x32xf32> to vector<16x16xf32>
    %32 = vector.extract_strided_slice %30 {offsets = [16, 16], sizes = [16, 16], strides = [1, 1]} : vector<32x32xf32> to vector<16x16xf32>
    %33 = arith.subf %31, %32 : vector<16x16xf32>
    %34 = vector.extract_strided_slice %30 {offsets = [0, 16], sizes = [16, 16], strides = [1, 1]} : vector<32x32xf32> to vector<16x16xf32>
    %35 = vector.extract_strided_slice %30 {offsets = [16, 0], sizes = [16, 16], strides = [1, 1]} : vector<32x32xf32> to vector<16x16xf32>
    %36 = arith.addf %34, %35 : vector<16x16xf32>
    %37 = tpu.concatenate %9, %12, %17, %20, %25, %28, %33, %36 in 0 : vector<16x16xf32>, vector<16x16xf32>, vector<16x16xf32>, vector<16x16xf32>, vector<16x16xf32>, vector<16x16xf32>, vector<16x16xf32>, vector<16x16xf32> -> vector<128x16xf32>
    %c0_10 = arith.constant 0 : index
    %c0_11 = arith.constant 0 : index
    %38 = vector.load %arg4[%c0_10, %c0_11] : memref<1x16xf32, #tpu.memory_space<vmem>>, vector<1x16xf32>
    %c0_12 = arith.constant 0 : index
    %c0_13 = arith.constant 0 : index
    %39 = vector.load %arg5[%c0_12, %c0_13] : memref<1x16xf32, #tpu.memory_space<vmem>>, vector<1x16xf32>
    %cst_14 = arith.constant dense<0.000000e+00> : vector<128xf32>
    %40 = vector.multi_reduction <add>, %37, %cst_14 [1] : vector<128x16xf32> to vector<128xf32>
    %41 = vector.shape_cast %40 : vector<128xf32> to vector<128x1xf32>
    %cst_15 = arith.constant 1.600000e+01 : f32
    %42 = vector.broadcast %cst_15 : f32 to vector<128x1xf32>
    %43 = arith.divf %41, %42 : vector<128x1xf32>
    %44 = vector.broadcast %43 : vector<128x1xf32> to vector<128x16xf32>
    %45 = arith.subf %37, %44 : vector<128x16xf32>
    %46 = vector.broadcast %43 : vector<128x1xf32> to vector<128x16xf32>
    %47 = arith.subf %37, %46 : vector<128x16xf32>
    %48 = arith.mulf %45, %47 : vector<128x16xf32>
    %cst_16 = arith.constant dense<0.000000e+00> : vector<128xf32>
    %49 = vector.multi_reduction <add>, %48, %cst_16 [1] : vector<128x16xf32> to vector<128xf32>
    %50 = vector.shape_cast %49 : vector<128xf32> to vector<128x1xf32>
    %cst_17 = arith.constant 1.600000e+01 : f32
    %51 = vector.broadcast %cst_17 : f32 to vector<128x1xf32>
    %52 = arith.divf %50, %51 : vector<128x1xf32>
    %53 = vector.broadcast %43 : vector<128x1xf32> to vector<128x16xf32>
    %54 = arith.subf %37, %53 : vector<128x16xf32>
    %cst_18 = arith.constant 9.99999974E-6 : f32
    %55 = vector.broadcast %cst_18 : f32 to vector<128x1xf32>
    %56 = arith.addf %52, %55 : vector<128x1xf32>
    %57 = math.rsqrt %56 : vector<128x1xf32>
    %58 = vector.broadcast %57 : vector<128x1xf32> to vector<128x16xf32>
    %59 = arith.mulf %54, %58 : vector<128x16xf32>
    %60 = vector.broadcast %38 : vector<1x16xf32> to vector<128x16xf32>
    %61 = arith.mulf %59, %60 : vector<128x16xf32>
    %62 = vector.broadcast %39 : vector<1x16xf32> to vector<128x16xf32>
    %63 = arith.addf %61, %62 : vector<128x16xf32>
    %c0_19 = arith.constant 0 : index
    %c0_20 = arith.constant 0 : index
    %64 = vector.load %arg6[%c0_19, %c0_20] : memref<1x16xf32, #tpu.memory_space<vmem>>, vector<1x16xf32>
    %c0_21 = arith.constant 0 : index
    %c0_22 = arith.constant 0 : index
    %65 = vector.load %arg7[%c0_21, %c0_22] : memref<1x16xf32, #tpu.memory_space<vmem>>, vector<1x16xf32>
    %cst_23 = arith.constant dense<0.000000e+00> : vector<128xf32>
    %66 = vector.multi_reduction <add>, %63, %cst_23 [1] : vector<128x16xf32> to vector<128xf32>
    %67 = vector.shape_cast %66 : vector<128xf32> to vector<128x1xf32>
    %cst_24 = arith.constant 1.600000e+01 : f32
    %68 = vector.broadcast %cst_24 : f32 to vector<128x1xf32>
    %69 = arith.divf %67, %68 : vector<128x1xf32>
    %70 = vector.broadcast %69 : vector<128x1xf32> to vector<128x16xf32>
    %71 = arith.subf %63, %70 : vector<128x16xf32>
    %72 = vector.broadcast %69 : vector<128x1xf32> to vector<128x16xf32>
    %73 = arith.subf %63, %72 : vector<128x16xf32>
    %74 = arith.mulf %71, %73 : vector<128x16xf32>
    %cst_25 = arith.constant dense<0.000000e+00> : vector<128xf32>
    %75 = vector.multi_reduction <add>, %74, %cst_25 [1] : vector<128x16xf32> to vector<128xf32>
    %76 = vector.shape_cast %75 : vector<128xf32> to vector<128x1xf32>
    %cst_26 = arith.constant 1.600000e+01 : f32
    %77 = vector.broadcast %cst_26 : f32 to vector<128x1xf32>
    %78 = arith.divf %76, %77 : vector<128x1xf32>
    %79 = vector.broadcast %69 : vector<128x1xf32> to vector<128x16xf32>
    %80 = arith.subf %63, %79 : vector<128x16xf32>
    %cst_27 = arith.constant 9.99999974E-6 : f32
    %81 = vector.broadcast %cst_27 : f32 to vector<128x1xf32>
    %82 = arith.addf %78, %81 : vector<128x1xf32>
    %83 = math.rsqrt %82 : vector<128x1xf32>
    %84 = vector.broadcast %83 : vector<128x1xf32> to vector<128x16xf32>
    %85 = arith.mulf %80, %84 : vector<128x16xf32>
    %86 = vector.broadcast %64 : vector<1x16xf32> to vector<128x16xf32>
    %87 = arith.mulf %85, %86 : vector<128x16xf32>
    %88 = vector.broadcast %65 : vector<1x16xf32> to vector<128x16xf32>
    %89 = arith.addf %87, %88 : vector<128x16xf32>
    %c0_28 = arith.constant 0 : index
    %c0_29 = arith.constant 0 : index
    %90 = vector.load %arg8[%c0_28, %c0_29] : memref<16x64xf32, #tpu.memory_space<vmem>>, vector<16x64xf32>
    %cst_30 = arith.constant dense<0.000000e+00> : vector<128x64xf32>
    %91 = tpu.matmul %89, %90, %cst_30 {dimension_numbers = #tpu.dot_dimension_numbers<[1], [0], [0], [1], [0, 0, 1, 1], [], []>} : vector<128x16xf32>, vector<16x64xf32>, vector<128x64xf32> -> vector<128x64xf32>
    %c0_31 = arith.constant 0 : index
    %c0_32 = arith.constant 0 : index
    %92 = vector.load %arg9[%c0_31, %c0_32] : memref<1x64xf32, #tpu.memory_space<vmem>>, vector<1x64xf32>
    %93 = vector.broadcast %92 : vector<1x64xf32> to vector<128x64xf32>
    %94 = arith.addf %91, %93 : vector<128x64xf32>
    %cst_33 = arith.constant 5.000000e-01 : f32
    %95 = vector.broadcast %cst_33 : f32 to vector<128x64xf32>
    %96 = arith.mulf %95, %94 : vector<128x64xf32>
    %cst_34 = arith.constant 4.471500e-02 : f32
    %97 = vector.broadcast %cst_34 : f32 to vector<128x64xf32>
    %98 = arith.mulf %97, %94 : vector<128x64xf32>
    %99 = arith.mulf %98, %94 : vector<128x64xf32>
    %100 = arith.mulf %99, %94 : vector<128x64xf32>
    %101 = arith.addf %94, %100 : vector<128x64xf32>
    %cst_35 = arith.constant 0.797884583 : f32
    %102 = vector.broadcast %cst_35 : f32 to vector<128x64xf32>
    %103 = arith.mulf %102, %101 : vector<128x64xf32>
    %104 = math.tanh %103 : vector<128x64xf32>
    %cst_36 = arith.constant 1.000000e+00 : f32
    %105 = vector.broadcast %cst_36 : f32 to vector<128x64xf32>
    %106 = arith.addf %105, %104 : vector<128x64xf32>
    %107 = arith.mulf %96, %106 : vector<128x64xf32>
    %c0_37 = arith.constant 0 : index
    %c0_38 = arith.constant 0 : index
    %108 = vector.load %arg10[%c0_37, %c0_38] : memref<64x16xf32, #tpu.memory_space<vmem>>, vector<64x16xf32>
    %cst_39 = arith.constant dense<0.000000e+00> : vector<128x16xf32>
    %109 = tpu.matmul %107, %108, %cst_39 {dimension_numbers = #tpu.dot_dimension_numbers<[1], [0], [0], [1], [0, 0, 1, 1], [], []>} : vector<128x64xf32>, vector<64x16xf32>, vector<128x16xf32> -> vector<128x16xf32>
    %c0_40 = arith.constant 0 : index
    %c0_41 = arith.constant 0 : index
    %110 = vector.load %arg11[%c0_40, %c0_41] : memref<1x16xf32, #tpu.memory_space<vmem>>, vector<1x16xf32>
    %111 = vector.broadcast %110 : vector<1x16xf32> to vector<128x16xf32>
    %112 = arith.addf %109, %111 : vector<128x16xf32>
    %113 = vector.extract_strided_slice %112 {offsets = [0, 0], sizes = [16, 16], strides = [1, 1]} : vector<128x16xf32> to vector<16x16xf32>
    %114 = vector.extract_strided_slice %112 {offsets = [16, 0], sizes = [16, 16], strides = [1, 1]} : vector<128x16xf32> to vector<16x16xf32>
    %115 = tpu.concatenate %113, %114 in 1 : vector<16x16xf32>, vector<16x16xf32> -> vector<16x32xf32>
    %c0_42 = arith.constant 0 : index
    %c0_43 = arith.constant 0 : index
    %c0_44 = arith.constant 0 : index
    %116 = vector.load %arg12[%c0_42, %c0_43, %c0_44] : memref<4x16x32xf32, #tpu.memory_space<vmem>>, vector<1x16x32xf32>
    %117 = vector.shape_cast %116 : vector<1x16x32xf32> to vector<16x32xf32>
    %118 = vector.shape_cast %115 : vector<16x32xf32> to vector<1x16x32xf32>
    tpu.vector_store %arg12[%c0_42, %c0_43, %c0_44], %118 {strides = array<i32>} : memref<4x16x32xf32, #tpu.memory_space<vmem>>, vector<1x16x32xf32>,
    %119 = vector.extract_strided_slice %112 {offsets = [32, 0], sizes = [16, 16], strides = [1, 1]} : vector<128x16xf32> to vector<16x16xf32>
    %120 = vector.extract_strided_slice %112 {offsets = [48, 0], sizes = [16, 16], strides = [1, 1]} : vector<128x16xf32> to vector<16x16xf32>
    %121 = tpu.concatenate %119, %120 in 1 : vector<16x16xf32>, vector<16x16xf32> -> vector<16x32xf32>
    %c1 = arith.constant 1 : index
    %c0_45 = arith.constant 0 : index
    %c0_46 = arith.constant 0 : index
    %122 = vector.load %arg12[%c1, %c0_45, %c0_46] : memref<4x16x32xf32, #tpu.memory_space<vmem>>, vector<1x16x32xf32>
    %123 = vector.shape_cast %122 : vector<1x16x32xf32> to vector<16x32xf32>
    %124 = vector.shape_cast %121 : vector<16x32xf32> to vector<1x16x32xf32>
    tpu.vector_store %arg12[%c1, %c0_45, %c0_46], %124 {strides = array<i32>} : memref<4x16x32xf32, #tpu.memory_space<vmem>>, vector<1x16x32xf32>,
    %125 = vector.extract_strided_slice %112 {offsets = [64, 0], sizes = [16, 16], strides = [1, 1]} : vector<128x16xf32> to vector<16x16xf32>
    %126 = vector.extract_strided_slice %112 {offsets = [80, 0], sizes = [16, 16], strides = [1, 1]} : vector<128x16xf32> to vector<16x16xf32>
    %127 = tpu.concatenate %125, %126 in 1 : vector<16x16xf32>, vector<16x16xf32> -> vector<16x32xf32>
    %c2 = arith.constant 2 : index
    %c0_47 = arith.constant 0 : index
    %c0_48 = arith.constant 0 : index
    %128 = vector.load %arg12[%c2, %c0_47, %c0_48] : memref<4x16x32xf32, #tpu.memory_space<vmem>>, vector<1x16x32xf32>
    %129 = vector.shape_cast %128 : vector<1x16x32xf32> to vector<16x32xf32>
    %130 = vector.shape_cast %127 : vector<16x32xf32> to vector<1x16x32xf32>
    tpu.vector_store %arg12[%c2, %c0_47, %c0_48], %130 {strides = array<i32>} : memref<4x16x32xf32, #tpu.memory_space<vmem>>, vector<1x16x32xf32>,
    %131 = vector.extract_strided_slice %112 {offsets = [96, 0], sizes = [16, 16], strides = [1, 1]} : vector<128x16xf32> to vector<16x16xf32>
    %132 = vector.extract_strided_slice %112 {offsets = [112, 0], sizes = [16, 16], strides = [1, 1]} : vector<128x16xf32> to vector<16x16xf32>
    %133 = tpu.concatenate %131, %132 in 1 : vector<16x16xf32>, vector<16x16xf32> -> vector<16x32xf32>
    %c3 = arith.constant 3 : index
    %c0_49 = arith.constant 0 : index
    %c0_50 = arith.constant 0 : index
    %134 = vector.load %arg12[%c3, %c0_49, %c0_50] : memref<4x16x32xf32, #tpu.memory_space<vmem>>, vector<1x16x32xf32>
    %135 = vector.shape_cast %134 : vector<1x16x32xf32> to vector<16x32xf32>
    %136 = vector.shape_cast %133 : vector<16x32xf32> to vector<1x16x32xf32>
    tpu.vector_store %arg12[%c3, %c0_49, %c0_50], %136 {strides = array<i32>} : memref<4x16x32xf32, #tpu.memory_space<vmem>>, vector<1x16x32xf32>,
    return
  }
  func.func @transform_0(%arg0: i32) -> (i32, i32, i32) {
    %c0_i32 = arith.constant 0 : i32
    %c0_i32_0 = arith.constant 0 : i32
    %c0_i32_1 = arith.constant 0 : i32
    return %arg0, %c0_i32, %c0_i32_0 : i32, i32, i32
  }
  func.func @transform_1(%arg0: i32) -> (i32, i32) {
    %c0_i32 = arith.constant 0 : i32
    %c0_i32_0 = arith.constant 0 : i32
    %c0_i32_1 = arith.constant 0 : i32
    return %c0_i32, %c0_i32_0 : i32, i32
  }
  func.func @transform_2(%arg0: i32) -> (i32, i32) {
    %c0_i32 = arith.constant 0 : i32
    %c0_i32_0 = arith.constant 0 : i32
    %c0_i32_1 = arith.constant 0 : i32
    return %c0_i32, %c0_i32_0 : i32, i32
  }
  func.func @transform_3(%arg0: i32) -> (i32, i32) {
    %c0_i32 = arith.constant 0 : i32
    %c0_i32_0 = arith.constant 0 : i32
    %c0_i32_1 = arith.constant 0 : i32
    return %c0_i32, %c0_i32_0 : i32, i32
  }
  func.func @transform_4(%arg0: i32) -> (i32, i32) {
    %c0_i32 = arith.constant 0 : i32
    %c0_i32_0 = arith.constant 0 : i32
    %c0_i32_1 = arith.constant 0 : i32
    return %c0_i32, %c0_i32_0 : i32, i32
  }
  func.func @transform_5(%arg0: i32) -> (i32, i32) {
    %c0_i32 = arith.constant 0 : i32
    %c0_i32_0 = arith.constant 0 : i32
    %c0_i32_1 = arith.constant 0 : i32
    return %c0_i32, %c0_i32_0 : i32, i32
  }
  func.func @transform_6(%arg0: i32) -> (i32, i32) {
    %c0_i32 = arith.constant 0 : i32
    %c0_i32_0 = arith.constant 0 : i32
    %c0_i32_1 = arith.constant 0 : i32
    return %c0_i32, %c0_i32_0 : i32, i32
  }
  func.func @transform_7(%arg0: i32) -> (i32, i32) {
    %c0_i32 = arith.constant 0 : i32
    %c0_i32_0 = arith.constant 0 : i32
    %c0_i32_1 = arith.constant 0 : i32
    return %c0_i32, %c0_i32_0 : i32, i32
  }
  func.func @transform_8(%arg0: i32) -> (i32, i32) {
    %c0_i32 = arith.constant 0 : i32
    %c0_i32_0 = arith.constant 0 : i32
    %c0_i32_1 = arith.constant 0 : i32
    return %c0_i32, %c0_i32_0 : i32, i32
  }
  func.func @transform_9(%arg0: i32) -> (i32, i32) {
    %c0_i32 = arith.constant 0 : i32
    %c0_i32_0 = arith.constant 0 : i32
    %c0_i32_1 = arith.constant 0 : i32
    return %c0_i32, %c0_i32_0 : i32, i32
  }
  func.func @transform_10(%arg0: i32) -> (i32, i32) {
    %c0_i32 = arith.constant 0 : i32
    %c0_i32_0 = arith.constant 0 : i32
    %c0_i32_1 = arith.constant 0 : i32
    return %c0_i32, %c0_i32_0 : i32, i32
  }
  func.func @transform_11(%arg0: i32) -> (i32, i32, i32) {
    %c0_i32 = arith.constant 0 : i32
    %c0_i32_0 = arith.constant 0 : i32
    %c0_i32_1 = arith.constant 0 : i32
    return %arg0, %c0_i32, %c0_i32_0 : i32, i32, i32
  }
}

</mosaic_0001>

<bundles_post_ra>
// kernel: mfstage_forward.5
= control target key start
LH: loop header
LB: loop body
LE: loop exit
PB: predicated region body
PF: predicated region fallthrough
CT: control target
= control target key end

     0   :  { %s425_s9 = smov 0   ;;  %s445_s0 = inlined_call_operand.vmem [shape: f32[2,4,512], index: 0, kind: input, shape index: {}]   ;;  %s446_s1 = inlined_call_operand.vmem [shape: f32[4,4], index: 1, kind: input, shape index: {}]   ;;  %s447_s2 = inlined_call_operand.vmem [shape: f32[2,4,512], index: 2, kind: output, shape index: {}]  }
   0x1 LB: > { %s371_s10 = sadd.s32 4294967295, %s407_s9   ;;  %p375_p0 = scmp.ge.s32.totalorder %s407_s9, 1  ;;  %s407_s9 = sphi %s425_s9, %s12_s9  }
   0x2   : > { %p112_p1 = scmp.lt.s32.totalorder %s407_s9, 3 }
   0x4   : > { %p113_p2 = pnand %p375_p0, %p112_p1 }
   0x5   : > { %p134_p3 = scmp.lt.s32.totalorder (!%p113_p2), %s371_s10, 1 }
   0x6   : > { %116 = sbr.rel (%p113_p2) target bundleno = 217 (0xd9), region = 28 }
   0xb   : > { %v409_v0 = vmov 0.0   ;;  %s449_s10 = smov (!%p134_p3, %s371_s10), 1  ;;  %vm155_vm0 = vcmask 1043456   ;;  %v144_v5 = vld [vmem:[%s446_s1] sm:$0xf]  ;;  %vm151_vm1 = vcmask 31744  }
   0xc   : > { %228 = vmatprep.mubr.f32.mxu0 %v409_v0  ;;  %299 = vmatprep.mubr.f32.mxu1 %v409_v0  ;;  %s388_s11 = sshll.u32 %s449_s10, 4 }
   0xd   : > { %s138_s14 = scalar_lea.vmem %s445_s0, %s388_s11  ;;  %s143_s19 = scalar_lea.vmem %s447_s2, %s388_s11 }
   0xe   : > { %v145_v1 = vld [vmem:[%s138_s14] sm:$0xff]  ;;  %v146_v2 = vld [vmem:[%s138_s14 + $0x8] sm:$0xff] }
   0xf   : > { %v149_v3 = vcombine.high %v145_v1, %v145_v1  ;;  %v150_v4 = vcombine.high %v146_v2, %v146_v2 }
  0x11   : > { %380 = vmatprep.subr.msk.mxu0 %vm155_vm0, %v149_v3  ;;  %383 = vmatprep.subr.msk.mxu1 %vm155_vm0, %v150_v4 }
  0x12   : > { %381 = vmatpush1.msk.msra.mxu0 %vm155_vm0, %v145_v1  ;;  %384 = vmatpush1.msk.msra.mxu1 %vm155_vm0, %v146_v2 }
  0x13   : > { %382 = vmatmul.mubr.msk.f32.vlgmr.msra.gmra.mxu0 %vm151_vm1, %v144_v5  ;;  %385 = vmatmul.mubr.msk.f32.vlgmr.msra.gmra.mxu1 %vm151_vm1, %v144_v5 }
  0xd3   : > { %v230_v6 = vpop.f32.mrf.mxu0  ;;  %v301_v7 = vpop.f32.mrf.mxu1 }
  0xd5   : > { %v232_v8 = vpop.f32.mrf.mxu0  ;;  %v303_v9 = vpop.f32.mrf.mxu1 }
  0xd6   : > { %v310_v10 = vcombine.low %v230_v6, %v232_v8  ;;  %v311_v11 = vcombine.low %v301_v7, %v303_v9 }
  0xd8   : > { %314 = vst [vmem:[%s143_s19] sm:$0xff] %v310_v10  ;;  %315 = vst [vmem:[%s143_s19 + $0x8] sm:$0xff] %v311_v11 }
  0xd9 PF: > { %s12_s9 = sadd.s32 1, %s407_s9  }
  0xda   : > { %p9_p4 = scmp.ge.s32.totalorder %s12_s9, 4  }
  0xdc   :  { %11 = sbr.rel (!%p9_p4) target bundleno = 1 (0x1), region = 58 }

// kernel: custom-call
= control target key start
LH: loop header
LB: loop body
LE: loop exit
PB: predicated region body
PF: predicated region fallthrough
CT: control target
= control target key end

     0   :  { %s92_s0 = inlined_call_operand.vmem [shape: f32[2,4,16,16], index: 0, kind: input, shape index: {}]   ;;  %s93_s1 = inlined_call_operand.vmem [shape: f32[2,4,16,16], index: 1, kind: input, shape index: {}]   ;;  %s94_s2 = inlined_call_operand.hbm [shape: c64[2,4,16,16], index: 2, kind: output, shape index: {}]  }
   0x1   :  { %s3_s11 = scalar_lea.hbm %s94_s2, 2048 }
   0x2   :  { %4 = vsyncpa [#allocation0], 0  ;;  %s5_s14 = sshll.u32 %s92_s0, 4  ;;  %s6_s14 = int_to_ptr.vmem [resolvable:$true] %s5_s14 }
   0x3   :  { %s18_s15 = scalar_lea.vmem %s6_s14, 2048  ;;  %p23_p1 = scmp.lt.s32.totalorder %s6_s14, %s6_s14 }
   0x4   :  { %p19_p0 = scmp.ne.s32.totalorder %s6_s14, %s18_s15  ;;  %p24_p2 = scmp.lt.s32.totalorder %s18_s15, %s18_s15 }
   0x6   :  { %p25_p3 = por %p24_p2, %p23_p1 }
   0x8   :  { %p26_p4 = pnand %p25_p3, %p19_p0 }
   0xa   :  { %29 = shalt.err (!%p26_p4)  }
   0xb   :  { %8 = dma.vmem_to_hbm [thread:$0]  %s6_s14, 2048, %s94_s2, [#allocation0] }
   0xc   :  { %61 = dma.done.wait [#allocation0], 2048  }
   0xd   :  { %62 = vsyncadd [#allocation0], 4294965248 }
   0xe   :  { %10 = vsyncpa [#allocation0], 1 }
   0xf   :  { %11 = vsyncpa [#allocation1], 0  ;;  %s12_s0 = sshll.u32 %s93_s1, 4  ;;  %s13_s0 = int_to_ptr.vmem [resolvable:$true] %s12_s0 }
  0x10   :  { %s38_s20 = scalar_lea.vmem %s13_s0, 2048  ;;  %p43_p6 = scmp.lt.s32.totalorder %s13_s0, %s13_s0 }
  0x11   :  { %p39_p5 = scmp.ne.s32.totalorder %s13_s0, %s38_s20  ;;  %p44_p7 = scmp.lt.s32.totalorder %s38_s20, %s38_s20 }
  0x13   :  { %p45_p8 = por %p44_p7, %p43_p6 }
  0x15   :  { %p46_p9 = pnand %p45_p8, %p39_p5 }
  0x17   :  { %49 = shalt.err (!%p46_p9)  }
  0x18   :  { %15 = dma.vmem_to_hbm [thread:$0]  %s13_s0, 2048, %s3_s11, [#allocation1] }
  0x19   :  { %63 = dma.done.wait [#allocation1], 2048  }
  0x1a   :  { %64 = vsyncadd [#allocation1], 4294965248 }
  0x1b   :  { %17 = vsyncpa [#allocation1], 1 }

// kernel: mfstage_forward.4
= control target key start
LH: loop header
LB: loop body
LE: loop exit
PB: predicated region body
PF: predicated region fallthrough
CT: control target
= control target key end

     0   :  { %16 = vsyncpa [#allocation3], 0  ;;  %s3605_s0 = inlined_call_operand.hbm [shape: f32[8,16,16], index: 0, kind: input, shape index: {}]   ;;  %s3606_s1 = inlined_call_operand.vmem [shape: f32[16,32], index: 1, kind: input, shape index: {}]   ;;  %s3607_s2 = inlined_call_operand.vmem [shape: f32[32,16], index: 2, kind: input, shape index: {}]   ;;  %s3608_s3 = inlined_call_operand.vmem [shape: f32[1,16], index: 3, kind: input, shape index: {}]   ;;  %s3609_s4 = inlined_call_operand.vmem [shape: f32[1,16], index: 4, kind: input, shape index: {}]   ;;  %s3610_s5 = inlined_call_operand.vmem [shape: f32[1,16], index: 5, kind: input, shape index: {}]   ;;  %s3611_s6 = inlined_call_operand.vmem [shape: f32[1,16], index: 6, kind: input, shape index: {}]   ;;  %s3612_s7 = inlined_call_operand.vmem [shape: f32[16,64], index: 7, kind: input, shape index: {}]   ;;  %s3613_s8 = inlined_call_operand.vmem [shape: f32[1,64], index: 8, kind: input, shape index: {}]   ;;  %s3614_s9 = inlined_call_operand.vmem [shape: f32[64,16], index: 9, kind: input, shape index: {}]   ;;  %s3615_s10 = inlined_call_operand.vmem [shape: f32[1,16], index: 10, kind: input, shape index: {}]   ;;  %s3616_s11 = inlined_call_operand.vmem [shape: f32[8,16,32], index: 11, kind: output, shape index: {}]  }
   0x1   :  { %18 = vsyncpa [#allocation3 + $0x1], 0  ;;  %s2755_s17 = smov 0   ;;  %s2757_s18 = smov 0  }
   0x2   :  { %s2759_s19 = smov 0   ;;  %s2761_s20 = smov 0  }
   0x3 LB: > { %s3617_s21 = sadd.s32 4294967295, %s2688_s20   ;;  %s2775_s22 = sadd.s32 1, %s2688_s20   ;;  %s2688_s20 = sphi %s2761_s20, %s3627_s20   ;;  %s2684_s19 = sphi %s2759_s19, %s3626_s19   ;;  %s2680_s18 = sphi %s2757_s18, %s3625_s18   ;;  %s2676_s17 = sphi %s2755_s17, %s3624_s17  }
   0x4   : > { %s28_s23 = ssub.s32 %s2688_s20, %s2775_s22  ;;  %s31_s24 = sadd.s32 1, %s2684_s19 }
   0x5   : > { %p29_p0 = scmp.eq.s32.totalorder %s28_s23, 0  ;;  %p38_p1 = scmp.ne.s32.totalorder %s2684_s19, %s2680_s18 }
   0x6   : > { %p39_p2 = scmp.eq.s32.totalorder %s2688_s20, 0  ;;  %p44_p3 = scmp.ne.s32.totalorder %s2680_s18, %s2676_s17 }
   0x7   : > { %s2785_s25 = scalar_select %p29_p0, %s2684_s19, %s31_s24  }
   0x8   : > { %p40_p4 = por %p39_p2, %p38_p1  ;;  %p45_p5 = scmp.eq.s32.totalorder %s3617_s21, 0 }
   0x9   : > { %p2493_p6 = scmp.lt.s32.totalorder %s2688_s20, 2  ;;  %s334_s27 = sand.u32 1, %s2684_s19  }
   0xa   : > { %p2790_p7 = por %p45_p5, %p44_p3  ;;  %s2201_s28 = sshll.u32 %s334_s27, 6 }
   0xb   : > { %s2281_s29 = sshll.u32 %s2688_s20, 10  ;;  %s338_s14 = scalar_lea.vmem [#allocation2], %s2201_s28 }
   0xc   : > { %s3619_s26 = scalar_select %p2790_p7, 1, 0 }
   0xd   : > { %s2799_s13 = scalar_lea.hbm %s3605_s0, %s2281_s29  ;;  %s346_s15 = sshll.u32 %s338_s14, 4  ;;  %s2801_s15 = int_to_ptr.vmem [resolvable:$true] %s346_s15 }
   0xe   : > { %p2803_p8 = pnand %p2493_p6, %p40_p4  ;;  %s2808_s17 = scalar_lea.sflag [#allocation3], %s334_s27 }
   0xf   : > { %s2626_s23 = scalar_lea.hbm %s2799_s13, 1024  ;;  %s2631_s28 = scalar_lea.hbm %s3605_s0, 2048 }
  0x10   : > { %p2627_p10 = scmp.ne.s32.totalorder %s2799_s13, %s2626_s23  ;;  %p2628_p11 = pneg %p2803_p8 }
  0x11   : > { %p2632_p0 = scmp.lt.s32.totalorder %s2799_s13, %s3605_s0  ;;  %p2633_p1 = scmp.lt.s32.totalorder %s2631_s28, %s2626_s23 }
  0x12   : > { %p2629_p12 = pnand %p2628_p11, %p2627_p10 }
  0x13   : > { %p2634_p2 = por %p2633_p1, %p2632_p0 }
  0x14   : > { %p2630_p13 = pneg %p2629_p12 }
  0x16   : > { %p2635_p3 = pnand %p2634_p2, %p2630_p13 }
  0x18   : > { %2638 = shalt.err (!%p2635_p3)
}
  0x19   : > { %s2639_s27 = scalar_lea.vmem %s2801_s15, 1024  ;;  %s2690_s14 = smov [#allocation2]  }
  0x1a   : > { %p2640_p4 = scmp.ne.s32.totalorder %s2801_s15, %s2639_s27  ;;  %s2644_s21 = sshll.u32 %s2690_s14, 4  ;;  %s2645_s21 = int_to_ptr.vmem [resolvable:$false] %s2644_s21 }
  0x1b   : > { %s2646_s24 = scalar_lea.vmem %s2645_s21, 2048  ;;  %p2647_p10 = scmp.lt.s32.totalorder %s2801_s15, %s2645_s21 }
  0x1c   : > { %p2642_p5 = pnand %p2640_p4, %p2628_p11  ;;  %p2648_p12 = scmp.lt.s32.totalorder %s2646_s24, %s2639_s27 }
  0x1e   : > { %p2643_p6 = pneg %p2642_p5  ;;  %p2649_p9 = por %p2648_p12, %p2647_p10 }
  0x20   : > { %p2650_p7 = pnand %p2649_p9, %p2643_p6 }
  0x22   : > { %2653 = shalt.err (!%p2650_p7)
}
  0x23   : > { %s2691_s23 = smov 128   ;;  %s2692_s29 = smov 8  }
  0x24   : > { %2492 = dma.hbm_to_vmem [thread:$0]  (!%p2803_p8), %s2799_s13, 1024, %s2801_s15, %s2808_s17, %s2691_s23, %s2691_s23, %s2692_s29  }
  0x25   : > { %p354_p11 = scmp.lt.s32.totalorder %s2688_s20, 3  ;;  %p3621_p13 = scmp.ge.s32.totalorder %s2688_s20, 1 }
  0x27   : > { %p355_p0 = pnand %p3621_p13, %p354_p11 }
  0x28   : > { %s360_s21 = sand.u32 (!%p355_p0), 1, %s2680_s18   ;;  %p3622_p7 = scmp.ne.s32.totalorder (!%p355_p0), %s3619_s26, 0 }
  0x29   : > { %358 = sbr.rel (%p355_p0) target bundleno = 1864 (0x748), region = 64  ;;  %s2206_s28 = sshll.u32 (!%p355_p0), %s360_s21, 6 }
  0x2a   : > { %s361_s30 = scalar_lea.sflag (!%p355_p0), [#allocation3], %s360_s21  ;;  %s364_s12 = scalar_lea.vmem (!%p355_p0), [#allocation2], %s2206_s28 }
  0x2e   : > { %2671 = dma.done.wait (%p3622_p7), %s361_s30, 1024  }
  0x2f   : > { %2673 = vsyncadd (%p3622_p7), %s361_s30, 4294966272  ;;  %vm422_vm0 = vcmask 130048   ;;  %v421_v0 = vld [vmem:[%s3606_s1 + $0x8] sm:$0xff]  ;;  %v420_v1 = vld [vmem:[%s3606_s1] sm:$0xff]  ;;  %s2693_s30 = smov 16   ;;  %vm1882_vm1 = vcmask 523264  }
  0x30   : > { %v412_v2 = vld [vmem:[%s364_s12] sm:$0xff]  ;;  %2359 = vmatprep.subr.mxu0 %v421_v0  ;;  %v413_v3 = vld [vmem:[%s364_s12 + $0x8] sm:$0xff]  ;;  %v414_v4 = vld [vmem:[%s364_s12 + $0x10] sm:$0xff]  ;;  %s3623_s17 = sadd.s32 4294967295, %s2688_s20   ;;  %vm2086_vm2 = vcmask 261120  }
  0x31   : > { %2363 = vmatprep.mubr.msk.f32.mxu0 %vm422_vm0, %v412_v2  ;;  %2360 = vmatpush3.msra.mxu0 %v421_v0  ;;  %v415_v5 = vld [vmem:[%s364_s12 + $0x18] sm:$0xff]  ;;  %v416_v6 = vld [vmem:[%s364_s12 + $0x20] sm:$0xff]  ;;  %v417_v7 = vld [vmem:[%s364_s12 + $0x28] sm:$0xff]  ;;  %s2207_s24 = sshll.u32 %s3623_s17, 2 }
  0x32   : > { %2361 = vmatprep.subr.mxu0 %v420_v1  ;;  %v418_v8 = vld [vmem:[%s364_s12 + $0x30] sm:$0xff]  ;;  %v419_v9 = vld [vmem:[%s364_s12 + $0x38] sm:$0xff]  ;;  %v552_v11 = vld [vmem:[%s3607_s2] sm:$0xff]  ;;  %s2694_s12 = smov 112   ;;  %p406_p8 = scmp.lt.s32.totalorder %s2207_s24, 7 }
  0x33   : > { %2362 = vmatpush3.msra.mxu0 %v420_v1  ;;  %v554_v10 = vld [vmem:[%s3607_s2 + $0x10] sm:$0xff]  ;;  %v555_v14 = vld [vmem:[%s3607_s2 + $0x18] sm:$0xff]  ;;  %v553_v16 = vld [vmem:[%s3607_s2 + $0x8] sm:$0xff] }
  0x34   : > { %2364 = vmatmul.mubr.msk.f32.vlgmr.msra.gmra.mxu0 %vm422_vm0, %v413_v3  ;;  %2382 = vmatprep.mubr.msk.f32.mxu1 %vm422_vm0, %v554_v10  ;;  %s3629_s24 = smov (!%p406_p8, %s2207_s24), 7 }
  0x35   : > { %2366 = vmatprep.mubr.msk.f32.mxu0 %vm422_vm0, %v414_v4  ;;  %s2282_s23 = sshll.u32 %s3629_s24, 4 }
  0x36   : > { %s3559_s28 = scalar_lea.vmem %s3616_s11, %s2282_s23 }
  0x38   : > { %2367 = vmatmul.mubr.msk.f32.gmra.mxu0 %vm422_vm0, %v415_v5 }
  0x39   : > { %2369 = vmatprep.mubr.msk.f32.mxu0 %vm422_vm0, %v416_v6 }
  0x3c   : > { %2370 = vmatmul.mubr.msk.f32.gmra.mxu0 %vm422_vm0, %v417_v7 }
  0x3d   : > { %2372 = vmatprep.mubr.msk.f32.mxu0 %vm422_vm0, %v418_v8 }
  0x40   : > { %2373 = vmatmul.mubr.msk.f32.gmra.mxu0 %vm422_vm0, %v419_v9 }
  0x41   : > { %2379 = vmatprep.mubr.msk.f32.mxu0 %vm422_vm0, %v552_v11 }
  0xf4   : > { %v2365_v12 = vpop.f32.mrf.mxu0 }
  0xf5   : > { %2375 = vmatprep.subr.mxu0 %v2365_v12  ;;  %2483 = vmatprep.subr.mxu1 %v2365_v12 }
  0xf6   : > { %v513_v13 = vpop.f32.mrf.mxu0  ;;  %2376 = vmatpush3.msra.mxu0 %v2365_v12  ;;  %2485 = vmatpush3.msra.mxu1 %v2365_v12 }
  0xf7   : > { %2377 = vmatprep.subr.mxu0 %v513_v13  ;;  %2484 = vmatprep.subr.mxu1 %v513_v13 }
  0xf8   : > { %v2368_v15 = vpop.f32.mrf.mxu0  ;;  %2378 = vmatpush3.msra.mxu0 %v513_v13  ;;  %2486 = vmatpush3.msra.mxu1 %v513_v13 }
  0xf9   : > { %2383 = vmatmul.mubr.msk.f32.vlgmr.msra.gmra.mxu1 %vm422_vm0, %v555_v14  ;;  %2385 = vmatprep.subr.mxu1 %v2368_v15 }
  0xfa   : > { %v523_v17 = vpop.f32.mrf.mxu0  ;;  %2386 = vmatpush3.msra.mxu1 %v2368_v15  ;;  %2389 = vmatprep.mubr.msk.f32.mxu1 %vm422_vm0, %v552_v11 }
  0xfb   : > { %2387 = vmatprep.subr.mxu1 %v523_v17  ;;  %2380 = vmatmul.mubr.msk.f32.vlgmr.msra.gmra.mxu0 %vm422_vm0, %v553_v16 }
  0xfc   : > { %v2371_v18 = vpop.f32.mrf.mxu0  ;;  %2388 = vmatpush3.msra.mxu1 %v523_v17  ;;  %2399 = vmatprep.mubr.msk.f32.mxu0 %vm422_vm0, %v552_v11 }
  0xfd   : > { %2390 = vmatmul.mubr.msk.f32.vlgmr.msra.gmra.mxu1 %vm422_vm0, %v553_v16  ;;  %2395 = vmatprep.subr.mxu0 %v2371_v18 }
  0xfe   : > { %v533_v19 = vpop.f32.mrf.mxu0  ;;  %2396 = vmatpush3.msra.mxu0 %v2371_v18  ;;  %2392 = vmatprep.mubr.msk.f32.mxu1 %vm422_vm0, %v554_v10 }
  0xff   : > { %2397 = vmatprep.subr.mxu0 %v533_v19 }
 0x100   : > { %v2374_v20 = vpop.f32.mrf.mxu0  ;;  %2398 = vmatpush3.msra.mxu0 %v533_v19 }
 0x101   : > { %2393 = vmatmul.mubr.msk.f32.gmra.mxu1 %vm422_vm0, %v555_v14  ;;  %2400 = vmatmul.mubr.msk.f32.vlgmr.msra.gmra.mxu0 %vm422_vm0, %v553_v16 }
 0x102   : > { %2405 = vmatprep.subr.mxu1 %v2374_v20  ;;  %v543_v21 = vpop.f32.mrf.mxu0  ;;  %2402 = vmatprep.mubr.msk.f32.mxu0 %vm422_vm0, %v554_v10 }
 0x103   : > { %2406 = vmatpush3.msra.mxu1 %v2374_v20  ;;  %2409 = vmatprep.mubr.msk.f32.mxu1 %vm422_vm0, %v552_v11 }
 0x104   : > { %2407 = vmatprep.subr.mxu1 %v543_v21 }
 0x105   : > { %2408 = vmatpush3.msra.mxu1 %v543_v21  ;;  %2403 = vmatmul.mubr.msk.f32.gmra.mxu0 %vm422_vm0, %v555_v14 }
 0x106   : > { %2410 = vmatmul.mubr.msk.f32.vlgmr.msra.gmra.mxu1 %vm422_vm0, %v553_v16 }
 0x107   : > { %2412 = vmatprep.mubr.msk.f32.mxu1 %vm422_vm0, %v554_v10 }
 0x10a   : > { %2413 = vmatmul.mubr.msk.f32.gmra.mxu1 %vm422_vm0, %v555_v14 }
 0x1b9   : > { %v2384_v22 = vpop.f32.mrf.mxu1 }
 0x1bb   : > { %v644_v23 = vpop.f32.mrf.mxu1  ;;  %v2381_v24 = vpop.f32.mrf.mxu0 }
 0x1bc   : > { %663 = vrot.lane.b32.xlu0 %v644_v23, %s2693_s30 }
 0x1bd   : > { %v2880_v25 = vpop.f32.mrf.mxu1  ;;  %v634_v26 = vpop.f32.mrf.mxu0 }
 0x1bf   : > { %v2882_v27 = vpop.f32.mrf.mxu1 }
 0x1c0   : > { %665 = vrot.lane.b32.xlu0 %v2384_v22, %s2693_s30 }
 0x1c1   : > { %v2394_v28 = vpop.f32.mrf.mxu1  ;;  %v2885_v29 = vpop.f32.mrf.mxu0 }
 0x1c3   : > { %v747_v30 = vpop.f32.mrf.mxu1  ;;  %v2887_v31 = vpop.f32.mrf.mxu0 }
 0x1c4   : > { %766 = vrot.lane.b32.xlu1 %v747_v30, %s2693_s30 }
 0x1c5   : > { %v2404_v32 = vpop.f32.mrf.mxu0 }
 0x1c6   : > { %v2890_v33 = vpop.f32.mrf.mxu1 }
 0x1c7   : > { %v850_v34 = vpop.f32.mrf.mxu0 }
 0x1c8   : > { %v2892_v35 = vpop.f32.mrf.mxu1  ;;  %768 = vrot.lane.b32.xlu1 %v2394_v28, %s2693_s30  ;;  %869 = vrot.lane.b32.xlu0 %v850_v34, %s2693_s30 }
 0x1ca   : > { %v2414_v36 = vpop.f32.mrf.mxu1 }
 0x1cc   : > { %v953_v37 = vpop.f32.mrf.mxu1  ;;  %871 = vrot.lane.b32.xlu1 %v2404_v32, %s2693_s30 }
 0x1cd   : > { %972 = vrot.lane.b32.xlu0 %v953_v37, %s2693_s30 }
 0x1d0   : > { %974 = vrot.lane.b32.xlu1 %v2414_v36, %s2693_s30 }
 0x1d1   : > { %655 = vrot.lane.b32.xlu0 %v644_v23, %s2694_s12 }
 0x1d4   : > { %657 = vrot.lane.b32.xlu1 %v2384_v22, %s2694_s12 }
 0x22e   : > { %v664_v38 = vpop.permute.xlu0 %663 }
 0x22f   : > { %v669_v39 = vadd.f32 %v664_v38, %v634_v26 }
 0x231   : > { %982 = vrot.lane.b32.xlu0 %v669_v39, %s2694_s12 }
 0x232   : > { %v666_v40 = vpop.permute.xlu0 %665 }
 0x233   : > { %v670_v41 = vadd.f32 %v2381_v24, %v666_v40 }
 0x235   : > { %984 = vrot.lane.b32.xlu1 %v670_v41, %s2694_s12  ;;  %758 = vrot.lane.b32.xlu0 %v747_v30, %s2694_s12 }
 0x236   : > { %v767_v42 = vpop.permute.xlu1 %766 }
 0x237   : > { %v772_v43 = vadd.f32 %v767_v42, %v2882_v27 }
 0x239   : > { %760 = vrot.lane.b32.xlu1 %v2394_v28, %s2694_s12  ;;  %990 = vrot.lane.b32.xlu0 %v772_v43, %s2694_s12 }
 0x23a   : > { %v769_v44 = vpop.permute.xlu1 %768  ;;  %v870_v46 = vpop.permute.xlu0 %869 }
 0x23b   : > { %v773_v45 = vadd.f32 %v2880_v25, %v769_v44  ;;  %v875_v47 = vadd.f32 %v870_v46, %v2887_v31 }
 0x23d   : > { %992 = vrot.lane.b32.xlu1 %v773_v45, %s2694_s12  ;;  %861 = vrot.lane.b32.xlu0 %v850_v34, %s2694_s12 }
 0x23e   : > { %v872_v48 = vpop.permute.xlu1 %871 }
 0x23f   : > { %v876_v49 = vadd.f32 %v2885_v29, %v872_v48  ;;  %v973_v50 = vpop.permute.xlu0 %972 }
 0x240   : > { %v978_v51 = vadd.f32 %v973_v50, %v2892_v35 }
 0x241   : > { %863 = vrot.lane.b32.xlu1 %v2404_v32, %s2694_s12  ;;  %998 = vrot.lane.b32.xlu0 %v875_v47, %s2694_s12 }
 0x242   : > { %v975_v52 = vpop.permute.xlu1 %974 }
 0x243   : > { %v979_v53 = vadd.f32 %v2890_v33, %v975_v52  ;;  %v656_v54 = vpop.permute.xlu0 %655 }
 0x244   : > { %v661_v55 = vsub.f32 %v634_v26, %v656_v54 }
 0x245   : > { %1000 = vrot.lane.b32.xlu1 %v876_v49, %s2694_s12  ;;  %964 = vrot.lane.b32.xlu0 %v953_v37, %s2694_s12 }
 0x246   : > { %v1014_v56 = vsel %vm422_vm0, %v661_v55, 0.0  ;;  %v658_v57 = vpop.permute.xlu1 %657 }
 0x247   : > { %v662_v58 = vsub.f32 %v2381_v24, %v658_v57 }
 0x249   : > { %966 = vrot.lane.b32.xlu1 %v2414_v36, %s2694_s12  ;;  %1006 = vrot.lane.b32.xlu0 %v978_v51, %s2694_s12  ;;  %v1017_v59 = vsel %vm422_vm0, %v662_v58, 0.0 }
 0x24d   : > { %1008 = vrot.lane.b32.xlu1 %v979_v53, %s2694_s12 }
 0x268   : > { %1015 = vadd.xlane.f32.xlu0 %v1014_v56 }
 0x271   : > { %1018 = vadd.xlane.f32.xlu1 %v1017_v59 }
 0x2a3   : > { %v983_v60 = vpop.permute.xlu0 %982 }
 0x2a4   : > { %v1020_v61 = vsel %vm422_vm0, %v983_v60, 0.0 }
 0x2a5   : > { %1021 = vadd.xlane.f32.xlu0 %v1020_v61 }
 0x2a7   : > { %v2924_v62 = vpop.permute.xlu1 %984  ;;  %v759_v63 = vpop.permute.xlu0 %758 }
 0x2a8   : > { %v2927_v0 = vsub.f32 %v2882_v27, %v759_v63  ;;  %v1023_v1 = vsel %vm422_vm0, %v2924_v62, 0.0 }
 0x2a9   : > { %1024 = vadd.xlane.f32.xlu0 %v1023_v1 }
 0x2aa   : > { %v1026_v2 = vsel %vm422_vm0, %v2927_v0, 0.0 }
 0x2ab   : > { %v761_v3 = vpop.permute.xlu1 %760  ;;  %1027 = vadd.xlane.f32.xlu1 %v1026_v2  ;;  %v2933_v4 = vpop.permute.xlu0 %990 }
 0x2ac   : > { %v2936_v5 = vsub.f32 %v2880_v25, %v761_v3  ;;  %v1032_v7 = vsel %vm422_vm0, %v2933_v4, 0.0 }
 0x2ae   : > { %v1029_v6 = vsel %vm422_vm0, %v2936_v5, 0.0 }
 0x2af   : > { %v2942_v8 = vpop.permute.xlu1 %992  ;;  %1030 = vadd.xlane.f32.xlu0 %v1029_v6  ;;  %1033 = vadd.xlane.f32.xlu1 %v1032_v7  ;;  %v862_v9 = vpop.permute.xlu0 %861 }
 0x2b0   : > { %v2945_v10 = vsub.f32 %v2887_v31, %v862_v9  ;;  %v1035_v11 = vsel %vm422_vm0, %v2942_v8, 0.0 }
 0x2b2   : > { %v1038_v12 = vsel %vm422_vm0, %v2945_v10, 0.0 }
 0x2b3   : > { %v864_v13 = vpop.permute.xlu1 %863  ;;  %1036 = vadd.xlane.f32.xlu0 %v1035_v11  ;;  %1039 = vadd.xlane.f32.xlu1 %v1038_v12  ;;  %v2951_v14 = vpop.permute.xlu0 %998 }
 0x2b4   : > { %v2954_v15 = vsub.f32 %v2885_v29, %v864_v13  ;;  %v1044_v17 = vsel %vm422_vm0, %v2951_v14, 0.0 }
 0x2b6   : > { %v1041_v16 = vsel %vm422_vm0, %v2954_v15, 0.0 }
 0x2b7   : > { %v2960_v18 = vpop.permute.xlu1 %1000  ;;  %1042 = vadd.xlane.f32.xlu0 %v1041_v16  ;;  %1045 = vadd.xlane.f32.xlu1 %v1044_v17  ;;  %v965_v19 = vpop.permute.xlu0 %964 }
 0x2b8   : > { %v2963_v20 = vsub.f32 %v2892_v35, %v965_v19  ;;  %v1047_v21 = vsel %vm422_vm0, %v2960_v18, 0.0 }
 0x2ba   : > { %v1050_v22 = vsel %vm422_vm0, %v2963_v20, 0.0 }
 0x2bb   : > { %v967_v23 = vpop.permute.xlu1 %966  ;;  %1048 = vadd.xlane.f32.xlu0 %v1047_v21  ;;  %1051 = vadd.xlane.f32.xlu1 %v1050_v22  ;;  %v2969_v24 = vpop.permute.xlu0 %1006 }
 0x2bc   : > { %v2972_v25 = vsub.f32 %v2890_v33, %v967_v23  ;;  %v1056_v27 = vsel %vm422_vm0, %v2969_v24, 0.0 }
 0x2be   : > { %v1053_v26 = vsel %vm422_vm0, %v2972_v25, 0.0 }
 0x2bf   : > { %v2978_v28 = vpop.permute.xlu1 %1008  ;;  %1054 = vadd.xlane.f32.xlu0 %v1053_v26  ;;  %1057 = vadd.xlane.f32.xlu1 %v1056_v27 }
 0x2c0   : > { %v1059_v29 = vsel %vm422_vm0, %v2978_v28, 0.0 }
 0x2c3   : > { %1060 = vadd.xlane.f32.xlu0 %v1059_v29 }
 0x2f1   : > { %v1016_v30 = vpop.xlane.xlu0 %1015 }
 0x2f2   : > { %v1063_v31 = vmul.f32 0.0625, %v1016_v30 }
 0x2f4   : > { %v2982_v32 = vsub.f32 %v661_v55, %v1063_v31 }
 0x2f6   : > { %v1095_v33 = vmul.f32 %v2982_v32, %v2982_v32 }
 0x2f8   : > { %v1111_v34 = vsel %vm422_vm0, %v1095_v33, 0.0 }
 0x2f9   : > { %1112 = vadd.xlane.f32.xlu1 %v1111_v34 }
 0x2fa   : > { %v1019_v35 = vpop.xlane.xlu1 %1018 }
 0x2fb   : > { %v1064_v36 = vmul.f32 0.0625, %v1019_v35 }
 0x2fd   : > { %v2987_v37 = vsub.f32 %v662_v58, %v1064_v36 }
 0x2ff   : > { %v1096_v38 = vmul.f32 %v2987_v37, %v2987_v37 }
 0x301   : > { %v1114_v39 = vsel %vm422_vm0, %v1096_v38, 0.0 }
 0x302   : > { %1115 = vadd.xlane.f32.xlu0 %v1114_v39 }
 0x32e   : > { %v1022_v40 = vpop.xlane.xlu0 %1021 }
 0x32f   : > { %v1065_v41 = vmul.f32 0.0625, %v1022_v40 }
 0x331   : > { %v2992_v42 = vsub.f32 %v983_v60, %v1065_v41 }
 0x332   : > { %v1025_v43 = vpop.xlane.xlu0 %1024 }
 0x333   : > { %v1066_v44 = vmul.f32 0.0625, %v1025_v43  ;;  %v1097_v45 = vmul.f32 %v2992_v42, %v2992_v42 }
 0x334   : > { %v1028_v46 = vpop.xlane.xlu1 %1027 }
 0x335   : > { %v2997_v47 = vsub.f32 %v2924_v62, %v1066_v44  ;;  %v1067_v48 = vmul.f32 0.0625, %v1028_v46  ;;  %v1117_v49 = vsel %vm422_vm0, %v1097_v45, 0.0 }
 0x336   : > { %1118 = vadd.xlane.f32.xlu1 %v1117_v49 }
 0x337   : > { %v3001_v50 = vsub.f32 %v2927_v0, %v1067_v48  ;;  %v1098_v51 = vmul.f32 %v2997_v47, %v2997_v47 }
 0x338   : > { %v1034_v52 = vpop.xlane.xlu1 %1033  ;;  %v1031_v53 = vpop.xlane.xlu0 %1030 }
 0x339   : > { %v1069_v54 = vmul.f32 0.0625, %v1034_v52  ;;  %v1068_v55 = vmul.f32 0.0625, %v1031_v53  ;;  %v1120_v56 = vsel %vm422_vm0, %v1098_v51, 0.0  ;;  %v1099_v57 = vmul.f32 %v3001_v50, %v3001_v50 }
 0x33a   : > { %1121 = vadd.xlane.f32.xlu0 %v1120_v56 }
 0x33b   : > { %v3009_v58 = vsub.f32 %v2933_v4, %v1069_v54  ;;  %v3012_v59 = vsub.f32 %v2936_v5, %v1068_v55  ;;  %v1123_v60 = vsel %vm422_vm0, %v1099_v57, 0.0 }
 0x33c   : > { %v1040_v61 = vpop.xlane.xlu1 %1039  ;;  %1124 = vadd.xlane.f32.xlu1 %v1123_v60  ;;  %v1037_v62 = vpop.xlane.xlu0 %1036  ;;  %v3078_v60 = vld [vmem:[%s3608_s3] ss:$0 sm:$0xff] }
 0x33d   : > { %v1071_v63 = vmul.f32 0.0625, %v1040_v61  ;;  %v1070_v0 = vmul.f32 0.0625, %v1037_v62  ;;  %v1101_v1 = vmul.f32 %v3009_v58, %v3009_v58  ;;  %v1100_v2 = vmul.f32 %v3012_v59, %v3012_v59  ;;  %v3084_v62 = vld [vmem:[%s3609_s4] ss:$0 sm:$0xff] }
 0x33f   : > { %v3020_v3 = vsub.f32 %v2945_v10, %v1071_v63  ;;  %v3023_v4 = vsub.f32 %v2942_v8, %v1070_v0  ;;  %v1129_v5 = vsel %vm422_vm0, %v1101_v1, 0.0  ;;  %v1126_v6 = vsel %vm422_vm0, %v1100_v2, 0.0 }
 0x340   : > { %v1046_v7 = vpop.xlane.xlu1 %1045  ;;  %1130 = vadd.xlane.f32.xlu1 %v1129_v5  ;;  %1127 = vadd.xlane.f32.xlu0 %v1126_v6  ;;  %v1043_v9 = vpop.xlane.xlu0 %1042 }
 0x341   : > { %v1073_v11 = vmul.f32 0.0625, %v1046_v7  ;;  %v1072_v12 = vmul.f32 0.0625, %v1043_v9  ;;  %v1103_v13 = vmul.f32 %v3020_v3, %v3020_v3  ;;  %v1102_v10 = vmul.f32 %v3023_v4, %v3023_v4 }
 0x343   : > { %v3032_v16 = vsub.f32 %v2951_v14, %v1073_v11  ;;  %v3035_v8 = vsub.f32 %v2954_v15, %v1072_v12  ;;  %v1135_v17 = vsel %vm422_vm0, %v1103_v13, 0.0  ;;  %v1132_v19 = vsel %vm422_vm0, %v1102_v10, 0.0 }
 0x344   : > { %v1052_v21 = vpop.xlane.xlu1 %1051  ;;  %1136 = vadd.xlane.f32.xlu1 %v1135_v17  ;;  %1133 = vadd.xlane.f32.xlu0 %v1132_v19  ;;  %v1049_v22 = vpop.xlane.xlu0 %1048 }
 0x345   : > { %v1075_v23 = vmul.f32 0.0625, %v1052_v21  ;;  %v1074_v26 = vmul.f32 0.0625, %v1049_v22  ;;  %v1105_v27 = vmul.f32 %v3032_v16, %v3032_v16  ;;  %v1104_v14 = vmul.f32 %v3035_v8, %v3035_v8 }
 0x347   : > { %v3044_v29 = vsub.f32 %v2963_v20, %v1075_v23  ;;  %v3047_v15 = vsub.f32 %v2960_v18, %v1074_v26  ;;  %v1141_v30 = vsel %vm422_vm0, %v1105_v27, 0.0  ;;  %v1138_v31 = vsel %vm422_vm0, %v1104_v14, 0.0 }
 0x348   : > { %v1058_v33 = vpop.xlane.xlu1 %1057  ;;  %1142 = vadd.xlane.f32.xlu1 %v1141_v30  ;;  %1139 = vadd.xlane.f32.xlu0 %v1138_v31  ;;  %v1055_v34 = vpop.xlane.xlu0 %1054 }
 0x349   : > { %v1077_v35 = vmul.f32 0.0625, %v1058_v33  ;;  %v1076_v36 = vmul.f32 0.0625, %v1055_v34  ;;  %v1107_v38 = vmul.f32 %v3044_v29, %v3044_v29  ;;  %v1106_v20 = vmul.f32 %v3047_v15, %v3047_v15 }
 0x34b   : > { %v3056_v39 = vsub.f32 %v2969_v24, %v1077_v35  ;;  %v3059_v18 = vsub.f32 %v2972_v25, %v1076_v36  ;;  %v1147_v40 = vsel %vm422_vm0, %v1107_v38, 0.0  ;;  %v1144_v41 = vsel %vm422_vm0, %v1106_v20, 0.0 }
 0x34c   : > { %1148 = vadd.xlane.f32.xlu1 %v1147_v40  ;;  %1145 = vadd.xlane.f32.xlu0 %v1144_v41  ;;  %v1061_v43 = vpop.xlane.xlu0 %1060 }
 0x34d   : > { %v1078_v44 = vmul.f32 0.0625, %v1061_v43  ;;  %v1109_v45 = vmul.f32 %v3056_v39, %v3056_v39  ;;  %v1108_v46 = vmul.f32 %v3059_v18, %v3059_v18 }
 0x34f   : > { %v3068_v24 = vsub.f32 %v2978_v28, %v1078_v44  ;;  %v1153_v25 = vsel %vm422_vm0, %v1109_v45, 0.0  ;;  %v1150_v48 = vsel %vm422_vm0, %v1108_v46, 0.0 }
 0x350   : > { %1154 = vadd.xlane.f32.xlu1 %v1153_v25  ;;  %1151 = vadd.xlane.f32.xlu0 %v1150_v48 }
 0x351   : > { %v1110_v49 = vmul.f32 %v3068_v24, %v3068_v24 }
 0x353   : > { %v1156_v51 = vsel %vm422_vm0, %v1110_v49, 0.0 }
 0x354   : > { %1157 = vadd.xlane.f32.xlu0 %v1156_v51 }
 0x382   : > { %v1113_v52 = vpop.xlane.xlu1 %1112 }
 0x383   : > { %v1159_v53 = vmul.f32 0.0625, %v1113_v52 }
 0x385   : > { %v1175_v54 = vadd.f32 1e-05, %v1159_v53 }
 0x387   : > { %2530 = vrsqrt.f32 %v1175_v54 }
 0x38b   : > { %v1116_v55 = vpop.xlane.xlu0 %1115 }
 0x38c   : > { %v1160_v56 = vmul.f32 0.0625, %v1116_v55 }
 0x38e   : > { %v1176_v28 = vadd.f32 1e-05, %v1160_v56 }
 0x390   : > { %2532 = vrsqrt.f32 %v1176_v28 }
 0x394   : > { %v2531_v57 = vpop.eup %2530 }
 0x395   : > { %v1207_v61 = vmul.f32 %v2531_v57, %v2982_v32 }
 0x397   : > { %v1229_v63 = vmul.f32 %v3078_v60, %v1207_v61 }
 0x399   : > { %v3088_v0 = vadd.f32 %v3084_v62, %v1229_v63 }
 0x39b   : > { %v1269_v1 = vsel %vm422_vm0, %v3088_v0, 0.0 }
 0x39c   : > { %1270 = vadd.xlane.f32.xlu1 %v1269_v1 }
 0x39d   : > { %v2533_v2 = vpop.eup %2532 }
 0x39e   : > { %v1208_v5 = vmul.f32 %v2533_v2, %v2987_v37 }
 0x3a0   : > { %v1230_v6 = vmul.f32 %v3078_v60, %v1208_v5 }
 0x3a2   : > { %v3095_v32 = vadd.f32 %v3084_v62, %v1230_v6 }
 0x3a4   : > { %v1272_v7 = vsel %vm422_vm0, %v3095_v32, 0.0 }
 0x3a5   : > { %1273 = vadd.xlane.f32.xlu0 %v1272_v7 }
 0x3bf   : > { %v1119_v9 = vpop.xlane.xlu1 %1118 }
 0x3c0   : > { %v1161_v11 = vmul.f32 0.0625, %v1119_v9 }
 0x3c2   : > { %v1177_v12 = vadd.f32 1e-05, %v1161_v11 }
 0x3c3   : > { %v1122_v13 = vpop.xlane.xlu0 %1121 }
 0x3c4   : > { %2534 = vrsqrt.f32 %v1177_v12  ;;  %v1162_v10 = vmul.f32 0.0625, %v1122_v13 }
 0x3c5   : > { %v1125_v17 = vpop.xlane.xlu1 %1124 }
 0x3c6   : > { %v1178_v19 = vadd.f32 1e-05, %v1162_v10  ;;  %v1163_v21 = vmul.f32 0.0625, %v1125_v17 }
 0x3c8   : > { %2536 = vrsqrt.f32 %v1178_v19  ;;  %v1179_v37 = vadd.f32 1e-05, %v1163_v21 }
 0x3c9   : > { %v1131_v22 = vpop.xlane.xlu1 %1130  ;;  %v1128_v23 = vpop.xlane.xlu0 %1127 }
 0x3ca   : > { %2538 = vrsqrt.f32 %v1179_v37  ;;  %v1165_v26 = vmul.f32 0.0625, %v1131_v22  ;;  %v1164_v27 = vmul.f32 0.0625, %v1128_v23 }
 0x3cc   : > { %v1181_v14 = vadd.f32 1e-05, %v1165_v26  ;;  %v1180_v30 = vadd.f32 1e-05, %v1164_v27 }
 0x3cd   : > { %v1137_v31 = vpop.xlane.xlu1 %1136  ;;  %v1134_v33 = vpop.xlane.xlu0 %1133 }
 0x3ce   : > { %2540 = vrsqrt.f32 %v1181_v14  ;;  %v1167_v34 = vmul.f32 0.0625, %v1137_v31  ;;  %v1166_v35 = vmul.f32 0.0625, %v1134_v33 }
 0x3cf   : > { %2542 = vrsqrt.f32 %v1180_v30 }
 0x3d0   : > { %v1183_v36 = vadd.f32 1e-05, %v1167_v34  ;;  %v1182_v38 = vadd.f32 1e-05, %v1166_v35 }
 0x3d1   : > { %v2535_v20 = vpop.eup %2534  ;;  %v1143_v40 = vpop.xlane.xlu1 %1142 }
 0x3d2   : > { %v1140_v41 = vpop.xlane.xlu0 %1139  ;;  %2544 = vrsqrt.f32 %v1183_v36  ;;  %v1169_v43 = vmul.f32 0.0625, %v1143_v40  ;;  %v1209_v45 = vmul.f32 %v2535_v20, %v2992_v42 }
 0x3d3   : > { %v1168_v44 = vmul.f32 0.0625, %v1140_v41  ;;  %2546 = vrsqrt.f32 %v1182_v38 }
 0x3d4   : > { %v1185_v46 = vadd.f32 1e-05, %v1169_v43  ;;  %v1231_v48 = vmul.f32 %v3078_v60, %v1209_v45 }
 0x3d5   : > { %v1184_v25 = vadd.f32 1e-05, %v1168_v44  ;;  %v2537_v49 = vpop.eup %2536  ;;  %v1149_v51 = vpop.xlane.xlu1 %1148 }
 0x3d6   : > { %v1146_v52 = vpop.xlane.xlu0 %1145  ;;  %2548 = vrsqrt.f32 %v1185_v46  ;;  %v1171_v53 = vmul.f32 0.0625, %v1149_v51  ;;  %v3102_v55 = vadd.f32 %v3084_v62, %v1231_v48  ;;  %v1210_v28 = vmul.f32 %v2537_v49, %v2997_v47 }
 0x3d7   : > { %v1170_v54 = vmul.f32 0.0625, %v1146_v52  ;;  %v2539_v56 = vpop.eup %2538  ;;  %2550 = vrsqrt.f32 %v1184_v25 }
 0x3d8   : > { %v1187_v57 = vadd.f32 1e-05, %v1171_v53  ;;  %v1275_v61 = vsel %vm422_vm0, %v3102_v55, 0.0  ;;  %v1211_v63 = vmul.f32 %v2539_v56, %v3001_v50  ;;  %v1232_v5 = vmul.f32 %v3078_v60, %v1210_v28 }
 0x3d9   : > { %v1186_v42 = vadd.f32 1e-05, %v1170_v54  ;;  %1276 = vadd.xlane.f32.xlu1 %v1275_v61  ;;  %v1155_v1 = vpop.xlane.xlu1 %1154 }
 0x3da   : > { %v1152_v2 = vpop.xlane.xlu0 %1151  ;;  %2552 = vrsqrt.f32 %v1187_v57  ;;  %v1173_v6 = vmul.f32 0.0625, %v1155_v1  ;;  %v1233_v9 = vmul.f32 %v3078_v60, %v1211_v63  ;;  %v3111_v47 = vadd.f32 %v3084_v62, %v1232_v5 }
 0x3db   : > { %v1172_v7 = vmul.f32 0.0625, %v1152_v2  ;;  %v2541_v11 = vpop.eup %2540  ;;  %2554 = vrsqrt.f32 %v1186_v42 }
 0x3dc   : > { %v2543_v12 = vpop.eup %2542  ;;  %v1189_v13 = vadd.f32 1e-05, %v1173_v6  ;;  %v3114_v50 = vadd.f32 %v3084_v62, %v1233_v9  ;;  %v1213_v17 = vmul.f32 %v2541_v11, %v3009_v58  ;;  %v1278_v19 = vsel %vm422_vm0, %v3111_v47, 0.0 }
 0x3dd   : > { %v1188_v10 = vadd.f32 1e-05, %v1172_v7  ;;  %v1212_v37 = vmul.f32 %v2543_v12, %v3012_v59  ;;  %1279 = vadd.xlane.f32.xlu0 %v1278_v19 }
 0x3de   : > { %v1158_v21 = vpop.xlane.xlu0 %1157  ;;  %2556 = vrsqrt.f32 %v1189_v13  ;;  %v1281_v23 = vsel %vm422_vm0, %v3114_v50, 0.0  ;;  %v1235_v26 = vmul.f32 %v3078_v60, %v1213_v17 }
 0x3df   : > { %v1174_v22 = vmul.f32 0.0625, %v1158_v21  ;;  %v2545_v27 = vpop.eup %2544  ;;  %2558 = vrsqrt.f32 %v1188_v10  ;;  %1282 = vadd.xlane.f32.xlu1 %v1281_v23  ;;  %v1234_v14 = vmul.f32 %v3078_v60, %v1212_v37 }
 0x3e0   : > { %v2547_v58 = vpop.eup %2546  ;;  %v3125_v31 = vadd.f32 %v3084_v62, %v1235_v26  ;;  %v1215_v59 = vmul.f32 %v2545_v27, %v3020_v3 }
 0x3e1   : > { %v1190_v30 = vadd.f32 1e-05, %v1174_v22  ;;  %v3129_v33 = vadd.f32 %v3084_v62, %v1234_v14  ;;  %v1214_v34 = vmul.f32 %v2547_v58, %v3023_v4  ;;  %v1521_v58 = vld [vmem:[%s3612_s7] sm:$0xff] }
 0x3e2   : > { %v1287_v35 = vsel %vm422_vm0, %v3125_v31, 0.0  ;;  %v1237_v36 = vmul.f32 %v3078_v60, %v1215_v59 }
 0x3e3   : > { %2560 = vrsqrt.f32 %v1190_v30  ;;  %v2549_v38 = vpop.eup %2548  ;;  %1288 = vadd.xlane.f32.xlu1 %v1287_v35  ;;  %v1284_v20 = vsel %vm422_vm0, %v3129_v33, 0.0  ;;  %v1236_v40 = vmul.f32 %v3078_v60, %v1214_v34 }
 0x3e4   : > { %v2551_v41 = vpop.eup %2550  ;;  %1285 = vadd.xlane.f32.xlu0 %v1284_v20  ;;  %v3139_v3 = vadd.f32 %v3084_v62, %v1237_v36  ;;  %v1217_v4 = vmul.f32 %v2549_v38, %v3032_v16 }
 0x3e5   : > { %v3143_v43 = vadd.f32 %v3084_v62, %v1236_v40  ;;  %v1216_v44 = vmul.f32 %v2551_v41, %v3035_v8 }
 0x3e6   : > { %v1293_v45 = vsel %vm422_vm0, %v3139_v3, 0.0  ;;  %v1239_v46 = vmul.f32 %v3078_v60, %v1217_v4 }
 0x3e7   : > { %v2553_v25 = vpop.eup %2552  ;;  %1294 = vadd.xlane.f32.xlu1 %v1293_v45  ;;  %v1290_v48 = vsel %vm422_vm0, %v3143_v43, 0.0  ;;  %v1238_v49 = vmul.f32 %v3078_v60, %v1216_v44 }
 0x3e8   : > { %v2555_v51 = vpop.eup %2554  ;;  %1291 = vadd.xlane.f32.xlu0 %v1290_v48  ;;  %v3153_v16 = vadd.f32 %v3084_v62, %v1239_v46  ;;  %v1219_v52 = vmul.f32 %v2553_v25, %v3044_v29 }
 0x3e9   : > { %v3157_v8 = vadd.f32 %v3084_v62, %v1238_v49  ;;  %v1218_v53 = vmul.f32 %v2555_v51, %v3047_v15 }
 0x3ea   : > { %v1299_v54 = vsel %vm422_vm0, %v3153_v16, 0.0  ;;  %v1241_v56 = vmul.f32 %v3078_v60, %v1219_v52 }
 0x3eb   : > { %v2557_v28 = vpop.eup %2556  ;;  %1300 = vadd.xlane.f32.xlu1 %v1299_v54  ;;  %v1296_v57 = vsel %vm422_vm0, %v3157_v8, 0.0  ;;  %v1240_v42 = vmul.f32 %v3078_v60, %v1218_v53 }
 0x3ec   : > { %v2559_v61 = vpop.eup %2558  ;;  %1297 = vadd.xlane.f32.xlu0 %v1296_v57  ;;  %v3167_v29 = vadd.f32 %v3084_v62, %v1241_v56  ;;  %v1221_v63 = vmul.f32 %v2557_v28, %v3056_v39 }
 0x3ed   : > { %v3171_v15 = vadd.f32 %v3084_v62, %v1240_v42  ;;  %v1220_v1 = vmul.f32 %v2559_v61, %v3059_v18 }
 0x3ee   : > { %v1305_v2 = vsel %vm422_vm0, %v3167_v29, 0.0  ;;  %v1243_v5 = vmul.f32 %v3078_v60, %v1221_v63 }
 0x3ef   : > { %1306 = vadd.xlane.f32.xlu1 %v1305_v2  ;;  %v1302_v7 = vsel %vm422_vm0, %v3171_v15, 0.0  ;;  %v1242_v9 = vmul.f32 %v3078_v60, %v1220_v1 }
 0x3f0   : > { %v2561_v6 = vpop.eup %2560  ;;  %1303 = vadd.xlane.f32.xlu0 %v1302_v7  ;;  %v3181_v39 = vadd.f32 %v3084_v62, %v1243_v5 }
 0x3f1   : > { %v1222_v11 = vmul.f32 %v2561_v6, %v3068_v24  ;;  %v3185_v18 = vadd.f32 %v3084_v62, %v1242_v9 }
 0x3f2   : > { %v1311_v12 = vsel %vm422_vm0, %v3181_v39, 0.0 }
 0x3f3   : > { %v1244_v13 = vmul.f32 %v3078_v60, %v1222_v11  ;;  %1312 = vadd.xlane.f32.xlu1 %v1311_v12  ;;  %v1308_v10 = vsel %vm422_vm0, %v3185_v18, 0.0 }
 0x3f4   : > { %1309 = vadd.xlane.f32.xlu0 %v1308_v10 }
 0x3f5   : > { %v3193_v17 = vadd.f32 %v3084_v62, %v1244_v13 }
 0x3f7   : > { %v1314_v19 = vsel %vm422_vm0, %v3193_v17, 0.0 }
 0x3f8   : > { %1315 = vadd.xlane.f32.xlu0 %v1314_v19 }
 0x425   : > { %v1271_v24 = vpop.xlane.xlu1 %1270 }
 0x426   : > { %v1317_v21 = vmul.f32 0.0625, %v1271_v24 }
 0x428   : > { %v3198_v37 = vsub.f32 %v3088_v0, %v1317_v21  ;;  %v1522_v0 = vld [vmem:[%s3612_s7 + $0x8] sm:$0xff] }
 0x429   : > { %2415 = vmatprep.subr.mxu0 %v1522_v0 }
 0x42a   : > { %v1349_v60 = vmul.f32 %v3198_v37, %v3198_v37  ;;  %2416 = vmatpush3.msra.mxu0 %v1522_v0 }
 0x42b   : > { %2417 = vmatprep.subr.mxu0 %v1521_v58 }
 0x42c   : > { %v1365_v22 = vsel %vm422_vm0, %v1349_v60, 0.0  ;;  %2418 = vmatpush3.msra.mxu0 %v1521_v58 }
 0x42d   : > { %1366 = vadd.xlane.f32.xlu1 %v1365_v22 }
 0x42e   : > { %v1274_v23 = vpop.xlane.xlu0 %1273 }
 0x42f   : > { %v1318_v26 = vmul.f32 0.0625, %v1274_v23 }
 0x431   : > { %v3204_v62 = vsub.f32 %v3095_v32, %v1318_v26 }
 0x433   : > { %v1350_v27 = vmul.f32 %v3204_v62, %v3204_v62 }
 0x435   : > { %v1368_v14 = vsel %vm422_vm0, %v1350_v27, 0.0 }
 0x436   : > { %1369 = vadd.xlane.f32.xlu0 %v1368_v14 }
 0x462   : > { %v1277_v32 = vpop.xlane.xlu1 %1276 }
 0x463   : > { %v1319_v30 = vmul.f32 0.0625, %v1277_v32 }
 0x465   : > { %v3216_v59 = vsub.f32 %v3102_v55, %v1319_v30 }
 0x466   : > { %v1280_v34 = vpop.xlane.xlu0 %1279 }
 0x467   : > { %v1351_v35 = vmul.f32 %v3216_v59, %v3216_v59  ;;  %v1320_v36 = vmul.f32 0.0625, %v1280_v34 }
 0x468   : > { %v1283_v38 = vpop.xlane.xlu1 %1282 }
 0x469   : > { %v1321_v20 = vmul.f32 0.0625, %v1283_v38  ;;  %v1371_v40 = vsel %vm422_vm0, %v1351_v35, 0.0  ;;  %v3222_v41 = vsub.f32 %v3111_v47, %v1320_v36 }
 0x46a   : > { %1372 = vadd.xlane.f32.xlu1 %v1371_v40 }
 0x46b   : > { %v3225_v4 = vsub.f32 %v3114_v50, %v1321_v20  ;;  %v1352_v55 = vmul.f32 %v3222_v41, %v3222_v41 }
 0x46c   : > { %v1289_v44 = vpop.xlane.xlu1 %1288 }
 0x46d   : > { %v1323_v45 = vmul.f32 0.0625, %v1289_v44  ;;  %v1286_v46 = vpop.xlane.xlu0 %1285  ;;  %v1353_v25 = vmul.f32 %v3225_v4, %v3225_v4  ;;  %v1374_v49 = vsel %vm422_vm0, %v1352_v55, 0.0 }
 0x46e   : > { %v1322_v48 = vmul.f32 0.0625, %v1286_v46  ;;  %1375 = vadd.xlane.f32.xlu0 %v1374_v49 }
 0x46f   : > { %v3233_v51 = vsub.f32 %v3125_v31, %v1323_v45  ;;  %v1377_v47 = vsel %vm422_vm0, %v1353_v25, 0.0 }
 0x470   : > { %v3237_v50 = vsub.f32 %v3129_v33, %v1322_v48  ;;  %1378 = vadd.xlane.f32.xlu1 %v1377_v47  ;;  %v1295_v52 = vpop.xlane.xlu1 %1294  ;;  %v3302_v47 = vld [vmem:[%s3610_s5] ss:$0 sm:$0xff] }
 0x471   : > { %v1325_v53 = vmul.f32 0.0625, %v1295_v52  ;;  %v1292_v54 = vpop.xlane.xlu0 %1291  ;;  %v1355_v56 = vmul.f32 %v3233_v51, %v3233_v51 }
 0x472   : > { %v1324_v28 = vmul.f32 0.0625, %v1292_v54  ;;  %v1354_v57 = vmul.f32 %v3237_v50, %v3237_v50 }
 0x473   : > { %v3244_v31 = vsub.f32 %v3139_v3, %v1325_v53  ;;  %v1383_v42 = vsel %vm422_vm0, %v1355_v56, 0.0  ;;  %v3308_v53 = vld [vmem:[%s3611_s6] ss:$0 sm:$0xff] }
 0x474   : > { %v3248_v61 = vsub.f32 %v3143_v43, %v1324_v28  ;;  %1384 = vadd.xlane.f32.xlu1 %v1383_v42  ;;  %v1301_v33 = vpop.xlane.xlu1 %1300  ;;  %v1380_v63 = vsel %vm422_vm0, %v1354_v57, 0.0 }
 0x475   : > { %v1327_v1 = vmul.f32 0.0625, %v1301_v33  ;;  %1381 = vadd.xlane.f32.xlu0 %v1380_v63  ;;  %v1298_v2 = vpop.xlane.xlu0 %1297  ;;  %v1357_v5 = vmul.f32 %v3244_v31, %v3244_v31 }
 0x476   : > { %v1326_v6 = vmul.f32 0.0625, %v1298_v2  ;;  %v1356_v3 = vmul.f32 %v3248_v61, %v3248_v61 }
 0x477   : > { %v3256_v7 = vsub.f32 %v3153_v16, %v1327_v1  ;;  %v1389_v43 = vsel %vm422_vm0, %v1357_v5, 0.0 }
 0x478   : > { %v3260_v9 = vsub.f32 %v3157_v8, %v1326_v6  ;;  %1390 = vadd.xlane.f32.xlu1 %v1389_v43  ;;  %v1307_v11 = vpop.xlane.xlu1 %1306  ;;  %v1386_v12 = vsel %vm422_vm0, %v1356_v3, 0.0 }
 0x479   : > { %v1329_v13 = vmul.f32 0.0625, %v1307_v11  ;;  %1387 = vadd.xlane.f32.xlu0 %v1386_v12  ;;  %v1304_v10 = vpop.xlane.xlu0 %1303  ;;  %v1359_v19 = vmul.f32 %v3256_v7, %v3256_v7 }
 0x47a   : > { %v1328_v24 = vmul.f32 0.0625, %v1304_v10  ;;  %v1358_v16 = vmul.f32 %v3260_v9, %v3260_v9 }
 0x47b   : > { %v3268_v21 = vsub.f32 %v3167_v29, %v1329_v13  ;;  %v1395_v8 = vsel %vm422_vm0, %v1359_v19, 0.0 }
 0x47c   : > { %v3272_v60 = vsub.f32 %v3171_v15, %v1328_v24  ;;  %1396 = vadd.xlane.f32.xlu1 %v1395_v8  ;;  %v1313_v22 = vpop.xlane.xlu1 %1312  ;;  %v1392_v23 = vsel %vm422_vm0, %v1358_v16, 0.0 }
 0x47d   : > { %v1331_v26 = vmul.f32 0.0625, %v1313_v22  ;;  %1393 = vadd.xlane.f32.xlu0 %v1392_v23  ;;  %v1310_v27 = vpop.xlane.xlu0 %1309  ;;  %v1361_v14 = vmul.f32 %v3268_v21, %v3268_v21 }
 0x47e   : > { %v1330_v0 = vmul.f32 0.0625, %v1310_v27  ;;  %v1360_v29 = vmul.f32 %v3272_v60, %v3272_v60 }
 0x47f   : > { %v3280_v58 = vsub.f32 %v3181_v39, %v1331_v26  ;;  %v1401_v15 = vsel %vm422_vm0, %v1361_v14, 0.0 }
 0x480   : > { %v3284_v32 = vsub.f32 %v3185_v18, %v1330_v0  ;;  %1402 = vadd.xlane.f32.xlu1 %v1401_v15  ;;  %v1398_v30 = vsel %vm422_vm0, %v1360_v29, 0.0 }
 0x481   : > { %1399 = vadd.xlane.f32.xlu0 %v1398_v30  ;;  %v1316_v34 = vpop.xlane.xlu0 %1315  ;;  %v1363_v35 = vmul.f32 %v3280_v58, %v3280_v58 }
 0x482   : > { %v1332_v36 = vmul.f32 0.0625, %v1316_v34  ;;  %v1362_v38 = vmul.f32 %v3284_v32, %v3284_v32 }
 0x483   : > { %v1407_v39 = vsel %vm422_vm0, %v1363_v35, 0.0 }
 0x484   : > { %v3293_v20 = vsub.f32 %v3193_v17, %v1332_v36  ;;  %1408 = vadd.xlane.f32.xlu1 %v1407_v39  ;;  %v1404_v18 = vsel %vm422_vm0, %v1362_v38, 0.0 }
 0x485   : > { %1405 = vadd.xlane.f32.xlu0 %v1404_v18 }
 0x486   : > { %v1364_v40 = vmul.f32 %v3293_v20, %v3293_v20 }
 0x488   : > { %v1410_v44 = vsel %vm422_vm0, %v1364_v40, 0.0 }
 0x489   : > { %1411 = vadd.xlane.f32.xlu0 %v1410_v44 }
 0x4b6   : > { %v1367_v55 = vpop.xlane.xlu1 %1366 }
 0x4b7   : > { %v1413_v45 = vmul.f32 0.0625, %v1367_v55 }
 0x4b9   : > { %v1429_v46 = vadd.f32 1e-05, %v1413_v45 }
 0x4bb   : > { %2562 = vrsqrt.f32 %v1429_v46 }
 0x4bf   : > { %v1370_v25 = vpop.xlane.xlu0 %1369 }
 0x4c0   : > { %v1414_v48 = vmul.f32 0.0625, %v1370_v25 }
 0x4c2   : > { %v1430_v49 = vadd.f32 1e-05, %v1414_v48 }
 0x4c4   : > { %2564 = vrsqrt.f32 %v1430_v49 }
 0x4c8   : > { %v2563_v17 = vpop.eup %2562 }
 0x4c9   : > { %v1461_v52 = vmul.f32 %v2563_v17, %v3198_v37 }
 0x4cb   : > { %v1483_v54 = vmul.f32 %v3302_v47, %v1461_v52 }
 0x4cd   : > { %v1505_v56 = vadd.f32 %v3308_v53, %v1483_v54 }
 0x4cf   : > { %2419 = vmatprep.mubr.msk.f32.mxu0 %vm422_vm0, %v1505_v56 }
 0x4d1   : > { %v2565_v28 = vpop.eup %2564 }
 0x4d2   : > { %v1462_v57 = vmul.f32 %v2565_v28, %v3204_v62 }
 0x4d4   : > { %v1484_v42 = vmul.f32 %v3302_v47, %v1462_v57 }
 0x4d6   : > { %v1506_v33 = vadd.f32 %v3308_v53, %v1484_v42 }
 0x4d8   : > { %2420 = vmatmul.mubr.msk.f32.vlgmr.msra.gmra.mxu0 %vm422_vm0, %v1506_v33 }
 0x4f3   : > { %v1373_v37 = vpop.xlane.xlu1 %1372 }
 0x4f4   : > { %v1415_v63 = vmul.f32 0.0625, %v1373_v37 }
 0x4f6   : > { %v1431_v1 = vadd.f32 1e-05, %v1415_v63 }
 0x4f7   : > { %v1376_v2 = vpop.xlane.xlu0 %1375 }
 0x4f8   : > { %2566 = vrsqrt.f32 %v1431_v1  ;;  %v1416_v5 = vmul.f32 0.0625, %v1376_v2 }
 0x4f9   : > { %v1379_v6 = vpop.xlane.xlu1 %1378 }
 0x4fa   : > { %v1417_v3 = vmul.f32 0.0625, %v1379_v6  ;;  %v1432_v43 = vadd.f32 1e-05, %v1416_v5 }
 0x4fc   : > { %v1433_v11 = vadd.f32 1e-05, %v1417_v3  ;;  %2568 = vrsqrt.f32 %v1432_v43 }
 0x4fd   : > { %v1385_v12 = vpop.xlane.xlu1 %1384 }
 0x4fe   : > { %2570 = vrsqrt.f32 %v1433_v11  ;;  %v1419_v62 = vmul.f32 0.0625, %v1385_v12  ;;  %v1382_v13 = vpop.xlane.xlu0 %1381 }
 0x4ff   : > { %v1418_v10 = vmul.f32 0.0625, %v1382_v13 }
 0x500   : > { %v1435_v19 = vadd.f32 1e-05, %v1419_v62 }
 0x501   : > { %v1434_v24 = vadd.f32 1e-05, %v1418_v10  ;;  %v1391_v16 = vpop.xlane.xlu1 %1390 }
 0x502   : > { %2572 = vrsqrt.f32 %v1435_v19  ;;  %v1421_v8 = vmul.f32 0.0625, %v1391_v16  ;;  %v1388_v22 = vpop.xlane.xlu0 %1387 }
 0x503   : > { %2574 = vrsqrt.f32 %v1434_v24  ;;  %v1420_v23 = vmul.f32 0.0625, %v1388_v22 }
 0x504   : > { %v1437_v26 = vadd.f32 1e-05, %v1421_v8 }
 0x505   : > { %v2567_v27 = vpop.eup %2566  ;;  %v1436_v14 = vadd.f32 1e-05, %v1420_v23  ;;  %v1397_v0 = vpop.xlane.xlu1 %1396 }
 0x506   : > { %2576 = vrsqrt.f32 %v1437_v26  ;;  %v1423_v29 = vmul.f32 0.0625, %v1397_v0  ;;  %v1394_v15 = vpop.xlane.xlu0 %1393  ;;  %v1463_v30 = vmul.f32 %v2567_v27, %v3216_v59 }
 0x507   : > { %2578 = vrsqrt.f32 %v1436_v14  ;;  %v1422_v34 = vmul.f32 0.0625, %v1394_v15 }
 0x508   : > { %v1439_v35 = vadd.f32 1e-05, %v1423_v29  ;;  %v1485_v36 = vmul.f32 %v3302_v47, %v1463_v30 }
 0x509   : > { %v1438_v38 = vadd.f32 1e-05, %v1422_v34  ;;  %v1403_v39 = vpop.xlane.xlu1 %1402  ;;  %v2569_v18 = vpop.eup %2568 }
 0x50a   : > { %2580 = vrsqrt.f32 %v1439_v35  ;;  %v1425_v40 = vmul.f32 0.0625, %v1403_v39  ;;  %v1400_v44 = vpop.xlane.xlu0 %1399  ;;  %v1507_v55 = vadd.f32 %v3308_v53, %v1485_v36  ;;  %v1464_v25 = vmul.f32 %v2569_v18, %v3222_v41 }
 0x50b   : > { %v2571_v45 = vpop.eup %2570  ;;  %2582 = vrsqrt.f32 %v1438_v38  ;;  %v1424_v46 = vmul.f32 0.0625, %v1400_v44 }
 0x50c   : > { %v1441_v48 = vadd.f32 1e-05, %v1425_v40  ;;  %2422 = vmatprep.mubr.msk.f32.mxu0 %vm422_vm0, %v1507_v55  ;;  %v1465_v59 = vmul.f32 %v2571_v45, %v3225_v4  ;;  %v1486_v52 = vmul.f32 %v3302_v47, %v1464_v25  ;;  %v1874_v25 = vld [vmem:[%s3614_s9 + $0x38] sm:$0xff] }
 0x50d   : > { %v1440_v49 = vadd.f32 1e-05, %v1424_v46  ;;  %v1409_v17 = vpop.xlane.xlu1 %1408  ;;  %2443 = vmatprep.subr.mxu1 %v1874_v25 }
 0x50e   : > { %2584 = vrsqrt.f32 %v1441_v48  ;;  %v1427_v54 = vmul.f32 0.0625, %v1409_v17  ;;  %v1406_v56 = vpop.xlane.xlu0 %1405  ;;  %v1487_v28 = vmul.f32 %v3302_v47, %v1465_v59  ;;  %v1508_v33 = vadd.f32 %v3308_v53, %v1486_v52  ;;  %2444 = vmatpush3.msra.mxu1 %v1874_v25  ;;  %v1870_v48 = vld [vmem:[%s3614_s9 + $0x18] sm:$0xff]  ;;  %v1869_v59 = vld [vmem:[%s3614_s9 + $0x10] sm:$0xff]  ;;  %v1867_v17 = vld [vmem:[%s3614_s9] sm:$0xff] }
 0x50f   : > { %v2573_v57 = vpop.eup %2572  ;;  %2586 = vrsqrt.f32 %v1440_v49  ;;  %v1426_v42 = vmul.f32 0.0625, %v1406_v56  ;;  %v1868_v49 = vld [vmem:[%s3614_s9 + $0x8] sm:$0xff]  ;;  %v3400_v52 = vld [vmem:[%s3613_s8] ss:$0 sm:$0xff] }
 0x510   : > { %v2575_v41 = vpop.eup %2574  ;;  %v1443_v37 = vadd.f32 1e-05, %v1427_v54  ;;  %v1509_v63 = vadd.f32 %v3308_v53, %v1487_v28  ;;  %v1467_v4 = vmul.f32 %v2573_v57, %v3233_v51  ;;  %2423 = vmatmul.mubr.msk.f32.gmra.mxu0 %vm422_vm0, %v1508_v33 }
 0x511   : > { %v1442_v1 = vadd.f32 1e-05, %v1426_v42  ;;  %v1466_v2 = vmul.f32 %v2575_v41, %v3237_v50 }
 0x512   : > { %2588 = vrsqrt.f32 %v1443_v37  ;;  %v1412_v5 = vpop.xlane.xlu0 %1411  ;;  %2425 = vmatprep.mubr.msk.f32.mxu0 %vm422_vm0, %v1509_v63  ;;  %v1489_v6 = vmul.f32 %v3302_v47, %v1467_v4 }
 0x513   : > { %v2577_v3 = vpop.eup %2576  ;;  %2590 = vrsqrt.f32 %v1442_v1  ;;  %v1428_v43 = vmul.f32 0.0625, %v1412_v5  ;;  %v1488_v11 = vmul.f32 %v3302_v47, %v1466_v2 }
 0x514   : > { %v2579_v12 = vpop.eup %2578  ;;  %v1511_v62 = vadd.f32 %v3308_v53, %v1489_v6  ;;  %v1469_v51 = vmul.f32 %v2577_v3, %v3244_v31 }
 0x515   : > { %v1444_v13 = vadd.f32 1e-05, %v1428_v43  ;;  %v1510_v10 = vadd.f32 %v3308_v53, %v1488_v11  ;;  %v1468_v50 = vmul.f32 %v2579_v12, %v3248_v61 }
 0x516   : > { %v1491_v19 = vmul.f32 %v3302_v47, %v1469_v51 }
 0x517   : > { %v2581_v24 = vpop.eup %2580  ;;  %2592 = vrsqrt.f32 %v1444_v13  ;;  %2426 = vmatmul.mubr.msk.f32.gmra.mxu0 %vm422_vm0, %v1510_v10  ;;  %v1490_v16 = vmul.f32 %v3302_v47, %v1468_v50 }
 0x518   : > { %v2583_v8 = vpop.eup %2582  ;;  %2428 = vmatprep.mubr.msk.f32.mxu0 %vm422_vm0, %v1511_v62  ;;  %v1513_v22 = vadd.f32 %v3308_v53, %v1491_v19  ;;  %v1471_v31 = vmul.f32 %v2581_v24, %v3256_v7 }
 0x519   : > { %v1512_v23 = vadd.f32 %v3308_v53, %v1490_v16  ;;  %v1470_v26 = vmul.f32 %v2583_v8, %v3260_v9 }
 0x51a   : > { %v1493_v61 = vmul.f32 %v3302_v47, %v1471_v31 }
 0x51b   : > { %v2585_v27 = vpop.eup %2584  ;;  %2429 = vmatmul.mubr.msk.f32.gmra.mxu0 %vm422_vm0, %v1512_v23  ;;  %v1492_v14 = vmul.f32 %v3302_v47, %v1470_v26 }
 0x51c   : > { %v2587_v0 = vpop.eup %2586  ;;  %2431 = vmatprep.mubr.msk.f32.mxu0 %vm422_vm0, %v1513_v22  ;;  %v1515_v29 = vadd.f32 %v3308_v53, %v1493_v61  ;;  %v1473_v15 = vmul.f32 %v2585_v27, %v3268_v21 }
 0x51d   : > { %v1514_v7 = vadd.f32 %v3308_v53, %v1492_v14  ;;  %v1472_v30 = vmul.f32 %v2587_v0, %v3272_v60 }
 0x51e   : > { %v1495_v9 = vmul.f32 %v3302_v47, %v1473_v15 }
 0x51f   : > { %v2589_v34 = vpop.eup %2588  ;;  %2432 = vmatmul.mubr.msk.f32.gmra.mxu0 %vm422_vm0, %v1514_v7  ;;  %v1494_v35 = vmul.f32 %v3302_v47, %v1472_v30 }
 0x520   : > { %v2591_v36 = vpop.eup %2590  ;;  %2434 = vmatprep.mubr.msk.f32.mxu0 %vm422_vm0, %v1515_v29  ;;  %v1517_v38 = vadd.f32 %v3308_v53, %v1495_v9  ;;  %v1475_v39 = vmul.f32 %v2589_v34, %v3280_v58 }
 0x521   : > { %v1516_v21 = vadd.f32 %v3308_v53, %v1494_v35  ;;  %v1474_v18 = vmul.f32 %v2591_v36, %v3284_v32 }
 0x522   : > { %v1497_v60 = vmul.f32 %v3302_v47, %v1475_v39 }
 0x523   : > { %2435 = vmatmul.mubr.msk.f32.gmra.mxu0 %vm422_vm0, %v1516_v21  ;;  %v1496_v40 = vmul.f32 %v3302_v47, %v1474_v18 }
 0x524   : > { %v2593_v44 = vpop.eup %2592  ;;  %2437 = vmatprep.mubr.msk.f32.mxu0 %vm422_vm0, %v1517_v38  ;;  %v1519_v55 = vadd.f32 %v3308_v53, %v1497_v60 }
 0x525   : > { %v1518_v45 = vadd.f32 %v3308_v53, %v1496_v40  ;;  %v1476_v46 = vmul.f32 %v2593_v44, %v3293_v20  ;;  %v1873_v20 = vld [vmem:[%s3614_s9 + $0x30] sm:$0xff] }
 0x526   : > { %2445 = vmatprep.subr.mxu1 %v1873_v20 }
 0x527   : > { %2438 = vmatmul.mubr.msk.f32.gmra.mxu0 %vm422_vm0, %v1518_v45  ;;  %v1498_v58 = vmul.f32 %v3302_v47, %v1476_v46  ;;  %2446 = vmatpush3.msra.mxu1 %v1873_v20  ;;  %v1872_v47 = vld [vmem:[%s3614_s9 + $0x28] sm:$0xff] }
 0x528   : > { %2440 = vmatprep.mubr.msk.f32.mxu0 %vm422_vm0, %v1519_v55  ;;  %2447 = vmatprep.subr.mxu1 %v1872_v47 }
 0x529   : > { %v1520_v32 = vadd.f32 %v3308_v53, %v1498_v58  ;;  %2448 = vmatpush3.msra.mxu1 %v1872_v47  ;;  %v1871_v53 = vld [vmem:[%s3614_s9 + $0x20] sm:$0xff] }
 0x52a   : > { %2449 = vmatprep.subr.mxu1 %v1871_v53 }
 0x52b   : > { %2441 = vmatmul.mubr.msk.f32.gmra.mxu0 %vm422_vm0, %v1520_v32  ;;  %2450 = vmatpush3.msra.mxu1 %v1871_v53 }
 0x52c   : > { %2451 = vmatprep.subr.mxu1 %v1870_v48 }
 0x52d   : > { %2452 = vmatpush3.msra.mxu1 %v1870_v48 }
 0x52e   : > { %2453 = vmatprep.subr.mxu1 %v1869_v59 }
 0x52f   : > { %2454 = vmatpush3.msra.mxu1 %v1869_v59 }
 0x530   : > { %2455 = vmatprep.subr.mxu1 %v1868_v49 }
 0x531   : > { %2456 = vmatpush3.msra.mxu1 %v1868_v49 }
 0x532   : > { %2457 = vmatprep.subr.mxu1 %v1867_v17 }
 0x533   : > { %2458 = vmatpush3.msra.mxu1 %v1867_v17 }
 0x598   : > { %v2421_v54 = vpop.f32.mrf.mxu0 }
 0x599   : > { %v1650_v56 = vadd.f32 %v2421_v54, %v3400_v52 }
 0x59a   : > { %v1644_v28 = vpop.f32.mrf.mxu0 }
 0x59b   : > { %v1740_v57 = vmul.f32 0.044715, %v1650_v56  ;;  %v1645_v42 = vadd.f32 %v3400_v52, %v1644_v28  ;;  %v1724_v51 = vmul.f32 0.5, %v1650_v56 }
 0x59d   : > { %v1756_v33 = vmul.f32 %v1740_v57, %v1650_v56  ;;  %v1739_v41 = vmul.f32 0.044715, %v1645_v42  ;;  %v1723_v12 = vmul.f32 0.5, %v1645_v42 }
 0x59f   : > { %v1772_v37 = vmul.f32 %v1756_v33, %v1650_v56  ;;  %v1755_v63 = vmul.f32 %v1739_v41, %v1645_v42 }
 0x5a1   : > { %v1788_v4 = vadd.f32 %v1772_v37, %v1650_v56  ;;  %v1771_v1 = vmul.f32 %v1755_v63, %v1645_v42 }
 0x5a3   : > { %v1804_v2 = vmul.f32 0.7978846, %v1788_v4  ;;  %v1787_v5 = vadd.f32 %v1771_v1, %v1645_v42 }
 0x5a5   : > { %2594 = vtanh.f32 %v1804_v2  ;;  %v1803_v6 = vmul.f32 0.7978846, %v1787_v5 }
 0x5a7   : > { %2596 = vtanh.f32 %v1803_v6 }
 0x5b2   : > { %v2595_v3 = vpop.eup %2594 }
 0x5b3   : > { %v1836_v11 = vadd.f32 1.0, %v2595_v3 }
 0x5b4   : > { %v2597_v43 = vpop.eup %2596 }
 0x5b5   : > { %v1835_v62 = vadd.f32 1.0, %v2597_v43  ;;  %v1852_v10 = vmul.f32 %v1836_v11, %v1724_v51 }
 0x5b7   : > { %v1851_v13 = vmul.f32 %v1835_v62, %v1723_v12 }
 0x5b9   : > { %2459 = vmatprep.mubr.msk.f32.mxu1 %vm1882_vm1, %v1851_v13 }
 0x5ba   : > { %2460 = vmatmul.mubr.msk.f32.vlgmr.msra.gmra.mxu1 %vm1882_vm1, %v1852_v10 }
 0x5d0   : > { %v2424_v50 = vpop.f32.mrf.mxu0 }
 0x5d1   : > { %v3407_v19 = vadd.f32 %v2424_v50, %v3400_v52 }
 0x5d2   : > { %v1654_v24 = vpop.f32.mrf.mxu0 }
 0x5d3   : > { %v1742_v16 = vmul.f32 0.044715, %v3407_v19  ;;  %v3411_v8 = vadd.f32 %v3400_v52, %v1654_v24 }
 0x5d5   : > { %v1758_v22 = vmul.f32 %v1742_v16, %v3407_v19  ;;  %v1741_v31 = vmul.f32 0.044715, %v3411_v8 }
 0x5d7   : > { %v2427_v23 = vpop.f32.mrf.mxu0  ;;  %v1774_v26 = vmul.f32 %v1758_v22, %v3407_v19  ;;  %v1757_v61 = vmul.f32 %v1741_v31, %v3411_v8 }
 0x5d8   : > { %v3418_v27 = vadd.f32 %v2427_v23, %v3400_v52 }
 0x5d9   : > { %v1664_v14 = vpop.f32.mrf.mxu0  ;;  %v1790_v0 = vadd.f32 %v1774_v26, %v3407_v19  ;;  %v1773_v29 = vmul.f32 %v1757_v61, %v3411_v8  ;;  %v1726_v26 = vmul.f32 0.5, %v3407_v19 }
 0x5da   : > { %v1744_v15 = vmul.f32 0.044715, %v3418_v27  ;;  %v3424_v7 = vadd.f32 %v3400_v52, %v1664_v14 }
 0x5db   : > { %v2430_v30 = vpop.f32.mrf.mxu0  ;;  %v1789_v9 = vadd.f32 %v1773_v29, %v3411_v8  ;;  %v1806_v39 = vmul.f32 0.7978846, %v1790_v0 }
 0x5dc   : > { %v1760_v34 = vmul.f32 %v1744_v15, %v3418_v27  ;;  %v1743_v35 = vmul.f32 0.044715, %v3424_v7  ;;  %v3430_v36 = vadd.f32 %v2430_v30, %v3400_v52 }
 0x5dd   : > { %v1674_v38 = vpop.f32.mrf.mxu0  ;;  %v1805_v55 = vmul.f32 0.7978846, %v1789_v9  ;;  %2598 = vtanh.f32 %v1806_v39 }
 0x5de   : > { %v1776_v21 = vmul.f32 %v1760_v34, %v3418_v27  ;;  %v1759_v18 = vmul.f32 %v1743_v35, %v3424_v7  ;;  %v1746_v60 = vmul.f32 0.044715, %v3430_v36  ;;  %v3436_v40 = vadd.f32 %v3400_v52, %v1674_v38 }
 0x5df   : > { %v2433_v44 = vpop.f32.mrf.mxu0  ;;  %2600 = vtanh.f32 %v1805_v55  ;;  %v1725_v55 = vmul.f32 0.5, %v3411_v8 }
 0x5e0   : > { %v1792_v45 = vadd.f32 %v1776_v21, %v3418_v27  ;;  %v1775_v46 = vmul.f32 %v1759_v18, %v3424_v7  ;;  %v1762_v58 = vmul.f32 %v1746_v60, %v3430_v36  ;;  %v1745_v32 = vmul.f32 0.044715, %v3436_v40 }
 0x5e1   : > { %v3443_v25 = vadd.f32 %v2433_v44, %v3400_v52  ;;  %v1684_v20 = vpop.f32.mrf.mxu0 }
 0x5e2   : > { %v1791_v47 = vadd.f32 %v1775_v46, %v3424_v7  ;;  %v1778_v53 = vmul.f32 %v1762_v58, %v3430_v36  ;;  %v1761_v48 = vmul.f32 %v1745_v32, %v3436_v40  ;;  %v3449_v59 = vadd.f32 %v3400_v52, %v1684_v20 }
 0x5e3   : > { %v1748_v49 = vmul.f32 0.044715, %v3443_v25  ;;  %v2436_v17 = vpop.f32.mrf.mxu0  ;;  %v1808_v54 = vmul.f32 0.7978846, %v1792_v45 }
 0x5e4   : > { %v1794_v56 = vadd.f32 %v1778_v53, %v3430_v36  ;;  %v1777_v28 = vmul.f32 %v1761_v48, %v3436_v40  ;;  %v1747_v57 = vmul.f32 0.044715, %v3449_v59  ;;  %v3456_v42 = vadd.f32 %v2436_v17, %v3400_v52 }
 0x5e5   : > { %v1764_v33 = vmul.f32 %v1748_v49, %v3443_v25  ;;  %v1694_v41 = vpop.f32.mrf.mxu0  ;;  %v1807_v37 = vmul.f32 0.7978846, %v1791_v47  ;;  %2602 = vtanh.f32 %v1808_v54 }
 0x5e6   : > { %v1793_v63 = vadd.f32 %v1777_v28, %v3436_v40  ;;  %v1763_v4 = vmul.f32 %v1747_v57, %v3449_v59  ;;  %v1750_v1 = vmul.f32 0.044715, %v3456_v42  ;;  %v3463_v2 = vadd.f32 %v3400_v52, %v1694_v41 }
 0x5e7   : > { %v1780_v5 = vmul.f32 %v1764_v33, %v3443_v25  ;;  %v2439_v6 = vpop.f32.mrf.mxu0  ;;  %2604 = vtanh.f32 %v1807_v37  ;;  %v1810_v3 = vmul.f32 0.7978846, %v1794_v56  ;;  %v1727_v37 = vmul.f32 0.5, %v3424_v7 }
 0x5e8   : > { %v1779_v43 = vmul.f32 %v1763_v4, %v3449_v59  ;;  %v1766_v11 = vmul.f32 %v1750_v1, %v3456_v42  ;;  %v1749_v12 = vmul.f32 0.044715, %v3463_v2  ;;  %v3470_v62 = vadd.f32 %v2439_v6, %v3400_v52 }
 0x5e9   : > { %v1796_v51 = vadd.f32 %v1780_v5, %v3443_v25  ;;  %v1704_v13 = vpop.f32.mrf.mxu0  ;;  %v1809_v10 = vmul.f32 0.7978846, %v1793_v63  ;;  %2606 = vtanh.f32 %v1810_v3  ;;  %v1728_v6 = vmul.f32 0.5, %v3418_v27 }
 0x5ea   : > { %v1795_v50 = vadd.f32 %v1779_v43, %v3449_v59  ;;  %v1782_v24 = vmul.f32 %v1766_v11, %v3456_v42  ;;  %v1765_v16 = vmul.f32 %v1749_v12, %v3463_v2  ;;  %v1752_v22 = vmul.f32 0.044715, %v3470_v62  ;;  %v2599_v14 = vpop.eup %2598 }
 0x5eb   : > { %v3478_v31 = vadd.f32 %v3400_v52, %v1704_v13  ;;  %v2442_v23 = vpop.f32.mrf.mxu0  ;;  %2608 = vtanh.f32 %v1809_v10  ;;  %v1812_v61 = vmul.f32 0.7978846, %v1796_v51  ;;  %v1838_v35 = vadd.f32 1.0, %v2599_v14 }
 0x5ec   : > { %v1798_v0 = vadd.f32 %v1782_v24, %v3456_v42  ;;  %v1781_v29 = vmul.f32 %v1765_v16, %v3463_v2  ;;  %v1768_v15 = vmul.f32 %v1752_v22, %v3470_v62  ;;  %v3485_v30 = vadd.f32 %v2442_v23, %v3400_v52  ;;  %v2601_v39 = vpop.eup %2600 }
 0x5ed   : > { %v1751_v9 = vmul.f32 0.044715, %v3478_v31  ;;  %v1714_v34 = vpop.f32.mrf.mxu0  ;;  %v1811_v38 = vmul.f32 0.7978846, %v1795_v50  ;;  %2610 = vtanh.f32 %v1812_v61  ;;  %v1837_v45 = vadd.f32 1.0, %v2601_v39 }
 0x5ee   : > { %v1797_v19 = vadd.f32 %v1781_v29, %v3463_v2  ;;  %v1784_v21 = vmul.f32 %v1768_v15, %v3470_v62  ;;  %v1754_v18 = vmul.f32 0.044715, %v3485_v30  ;;  %v3492_v60 = vadd.f32 %v3400_v52, %v1714_v34 }
 0x5ef   : > { %v1767_v44 = vmul.f32 %v1751_v9, %v3478_v31  ;;  %2612 = vtanh.f32 %v1811_v38  ;;  %v1853_v53 = vmul.f32 %v1837_v45, %v1725_v55  ;;  %v1854_v48 = vmul.f32 %v1838_v35, %v1726_v26 }
 0x5f0   : > { %v1800_v46 = vadd.f32 %v1784_v21, %v3470_v62  ;;  %v1770_v58 = vmul.f32 %v1754_v18, %v3485_v30  ;;  %v1753_v32 = vmul.f32 0.044715, %v3492_v60  ;;  %v1813_v20 = vmul.f32 0.7978846, %v1797_v19 }
 0x5f1   : > { %v1783_v47 = vmul.f32 %v1767_v44, %v3478_v31  ;;  %v1814_v49 = vmul.f32 0.7978846, %v1798_v0  ;;  %2462 = vmatprep.mubr.msk.f32.mxu1 %vm1882_vm1, %v1853_v53  ;;  %v1729_v10 = vmul.f32 0.5, %v3436_v40  ;;  %v1730_v24 = vmul.f32 0.5, %v3430_v36 }
 0x5f2   : > { %v2603_v52 = vpop.eup %2602  ;;  %v1786_v17 = vmul.f32 %v1770_v58, %v3485_v30  ;;  %v1769_v54 = vmul.f32 %v1753_v32, %v3492_v60  ;;  %2614 = vtanh.f32 %v1813_v20  ;;  %v1816_v8 = vmul.f32 0.7978846, %v1800_v46  ;;  %2463 = vmatmul.mubr.msk.f32.gmra.mxu1 %vm1882_vm1, %v1854_v48 }
 0x5f3   : > { %v1799_v56 = vadd.f32 %v1783_v47, %v3478_v31  ;;  %2616 = vtanh.f32 %v1814_v49  ;;  %v1840_v41 = vadd.f32 1.0, %v2603_v52  ;;  %v1731_v26 = vmul.f32 0.5, %v3449_v59 }
 0x5f4   : > { %v2605_v28 = vpop.eup %2604  ;;  %v1802_v57 = vadd.f32 %v1786_v17, %v3485_v30  ;;  %v1785_v33 = vmul.f32 %v1769_v54, %v3492_v60  ;;  %2618 = vtanh.f32 %v1816_v8  ;;  %v1732_v40 = vmul.f32 0.5, %v3443_v25 }
 0x5f5   : > { %v1839_v63 = vadd.f32 1.0, %v2605_v28  ;;  %v1815_v4 = vmul.f32 0.7978846, %v1799_v56  ;;  %v1856_v12 = vmul.f32 %v1840_v41, %v1728_v6  ;;  %v1733_v36 = vmul.f32 0.5, %v3463_v2 }
 0x5f6   : > { %v2607_v1 = vpop.eup %2606  ;;  %v1801_v5 = vadd.f32 %v1785_v33, %v3492_v60  ;;  %v1818_v3 = vmul.f32 0.7978846, %v1802_v57  ;;  %v1734_v59 = vmul.f32 0.5, %v3456_v42  ;;  %v1735_v18 = vmul.f32 0.5, %v3478_v31 }
 0x5f7   : > { %v1855_v43 = vmul.f32 %v1839_v63, %v1727_v37  ;;  %2620 = vtanh.f32 %v1815_v4  ;;  %v1842_v51 = vadd.f32 1.0, %v2607_v1  ;;  %v1736_v2 = vmul.f32 0.5, %v3470_v62 }
 0x5f8   : > { %v2609_v11 = vpop.eup %2608  ;;  %v1817_v13 = vmul.f32 0.7978846, %v1801_v5  ;;  %2622 = vtanh.f32 %v1818_v3  ;;  %v1737_v58 = vmul.f32 0.5, %v3492_v60  ;;  %v1738_v47 = vmul.f32 0.5, %v3485_v30  ;;  %v3535_v60 = vld [vmem:[%s3615_s10] ss:$0 sm:$0xff] }
 0x5f9   : > { %2465 = vmatprep.mubr.msk.f32.mxu1 %vm1882_vm1, %v1855_v43  ;;  %v1841_v7 = vadd.f32 1.0, %v2609_v11  ;;  %v1858_v22 = vmul.f32 %v1842_v51, %v1730_v24 }
 0x5fa   : > { %v2611_v50 = vpop.eup %2610  ;;  %2466 = vmatmul.mubr.msk.f32.gmra.mxu1 %vm1882_vm1, %v1856_v12  ;;  %2624 = vtanh.f32 %v1817_v13 }
 0x5fb   : > { %v1857_v27 = vmul.f32 %v1841_v7, %v1729_v10  ;;  %v1844_v23 = vadd.f32 1.0, %v2611_v50 }
 0x5fc   : > { %v2613_v16 = vpop.eup %2612 }
 0x5fd   : > { %2468 = vmatprep.mubr.msk.f32.mxu1 %vm1882_vm1, %v1857_v27  ;;  %v1843_v61 = vadd.f32 1.0, %v2613_v16  ;;  %v1860_v15 = vmul.f32 %v1844_v23, %v1732_v40 }
 0x5fe   : > { %2469 = vmatmul.mubr.msk.f32.gmra.mxu1 %vm1882_vm1, %v1858_v22 }
 0x5ff   : > { %v2615_v14 = vpop.eup %2614  ;;  %v1859_v0 = vmul.f32 %v1843_v61, %v1731_v26 }
 0x600   : > { %v2617_v29 = vpop.eup %2616  ;;  %v1845_v9 = vadd.f32 1.0, %v2615_v14 }
 0x601   : > { %v2619_v34 = vpop.eup %2618  ;;  %2471 = vmatprep.mubr.msk.f32.mxu1 %vm1882_vm1, %v1859_v0  ;;  %v1846_v35 = vadd.f32 1.0, %v2617_v29 }
 0x602   : > { %2472 = vmatmul.mubr.msk.f32.gmra.mxu1 %vm1882_vm1, %v1860_v15  ;;  %v1861_v38 = vmul.f32 %v1845_v9, %v1733_v36  ;;  %v1848_v19 = vadd.f32 1.0, %v2619_v34 }
 0x603   : > { %v1862_v25 = vmul.f32 %v1846_v35, %v1734_v59 }
 0x604   : > { %v2621_v39 = vpop.eup %2620  ;;  %2474 = vmatprep.mubr.msk.f32.mxu1 %vm1882_vm1, %v1861_v38  ;;  %v1864_v46 = vmul.f32 %v1848_v19, %v1736_v2 }
 0x605   : > { %v2623_v21 = vpop.eup %2622  ;;  %v1847_v44 = vadd.f32 1.0, %v2621_v39 }
 0x606   : > { %2475 = vmatmul.mubr.msk.f32.gmra.mxu1 %vm1882_vm1, %v1862_v25  ;;  %v1850_v42 = vadd.f32 1.0, %v2623_v21 }
 0x607   : > { %v2625_v55 = vpop.eup %2624  ;;  %v1863_v45 = vmul.f32 %v1847_v44, %v1735_v18 }
 0x608   : > { %v1849_v32 = vadd.f32 1.0, %v2625_v55  ;;  %v1866_v31 = vmul.f32 %v1850_v42, %v1738_v47 }
 0x609   : > { %2477 = vmatprep.mubr.msk.f32.mxu1 %vm1882_vm1, %v1863_v45 }
 0x60a   : > { %2478 = vmatmul.mubr.msk.f32.gmra.mxu1 %vm1882_vm1, %v1864_v46  ;;  %v1865_v20 = vmul.f32 %v1849_v32, %v1737_v58 }
 0x60c   : > { %2480 = vmatprep.mubr.msk.f32.mxu1 %vm1882_vm1, %v1865_v20 }
 0x60e   : > { %2481 = vmatmul.mubr.msk.f32.gmra.mxu1 %vm1882_vm1, %v1866_v31 }
 0x67a   : > { %v2461_v62 = vpop.f32.mrf.mxu1 }
 0x67b   : > { %v2003_v51 = vadd.f32 %v2461_v62, %v3535_v60 }
 0x67c   : > { %v1997_v53 = vpop.f32.mrf.mxu1 }
 0x67d   : > { %v1998_v10 = vadd.f32 %v3535_v60, %v1997_v53 }
 0x6b2   : > { %v2464_v48 = vpop.f32.mrf.mxu1 }
 0x6b3   : > { %v2013_v49 = vadd.f32 %v2464_v48, %v3535_v60 }
 0x6b4   : > { %v2007_v52 = vpop.f32.mrf.mxu1 }
 0x6b5   : > { %v2008_v17 = vadd.f32 %v3535_v60, %v2007_v52  ;;  %2080 = vrot.lane.b32.xlu0 %v2013_v49, %s2693_s30 }
 0x6b7   : > { %2078 = vrot.lane.b32.xlu1 %v2008_v17, %s2693_s30 }
 0x6ba   : > { %v2467_v30 = vpop.f32.mrf.mxu1 }
 0x6bb   : > { %v2023_v27 = vadd.f32 %v2467_v30, %v3535_v60 }
 0x6bc   : > { %v2017_v54 = vpop.f32.mrf.mxu1 }
 0x6bd   : > { %v2018_v23 = vadd.f32 %v3535_v60, %v2017_v54 }
 0x6be   : > { %v2470_v8 = vpop.f32.mrf.mxu1 }
 0x6bf   : > { %v2033_v56 = vadd.f32 %v2470_v8, %v3535_v60 }
 0x6c0   : > { %v2027_v28 = vpop.f32.mrf.mxu1 }
 0x6c1   : > { %2093 = vrot.lane.b32.xlu1 %v2033_v56, %s2693_s30  ;;  %v2028_v33 = vadd.f32 %v3535_v60, %v2027_v28 }
 0x6c2   : > { %v2473_v57 = vpop.f32.mrf.mxu1 }
 0x6c3   : > { %v2043_v40 = vadd.f32 %v2473_v57, %v3535_v60 }
 0x6c4   : > { %v2037_v41 = vpop.f32.mrf.mxu1 }
 0x6c5   : > { %2091 = vrot.lane.b32.xlu1 %v2028_v33, %s2693_s30  ;;  %v2038_v0 = vadd.f32 %v3535_v60, %v2037_v41 }
 0x6c6   : > { %v2476_v37 = vpop.f32.mrf.mxu1 }
 0x6c7   : > { %v2053_v63 = vadd.f32 %v2476_v37, %v3535_v60 }
 0x6c8   : > { %v2047_v4 = vpop.f32.mrf.mxu1 }
 0x6c9   : > { %v2048_v1 = vadd.f32 %v3535_v60, %v2047_v4  ;;  %2106 = vrot.lane.b32.xlu1 %v2053_v63, %s2693_s30 }
 0x6ca   : > { %v2479_v5 = vpop.f32.mrf.mxu1 }
 0x6cb   : > { %2104 = vrot.lane.b32.xlu0 %v2048_v1, %s2693_s30  ;;  %v2063_v9 = vadd.f32 %v2479_v5, %v3535_v60 }
 0x6cc   : > { %v2057_v6 = vpop.f32.mrf.mxu1 }
 0x6cd   : > { %v2058_v35 = vadd.f32 %v3535_v60, %v2057_v6 }
 0x6ce   : > { %v2482_v3 = vpop.f32.mrf.mxu1 }
 0x6cf   : > { %v2073_v43 = vadd.f32 %v2482_v3, %v3535_v60 }
 0x6d0   : > { %v2067_v11 = vpop.f32.mrf.mxu1 }
 0x6d1   : > { %v2068_v12 = vadd.f32 %v3535_v60, %v2067_v11  ;;  %2119 = vrot.lane.b32.xlu1 %v2073_v43, %s2693_s30 }
 0x6d3   : > { %2117 = vrot.lane.b32.xlu0 %v2068_v12, %s2693_s30 }
 0x727   : > { %v2081_v13 = vpop.permute.xlu0 %2080 }
 0x728   : > { %v2085_v7 = vsel %vm422_vm0, %v2003_v51, %v2081_v13 }
 0x729   : > { %2088 = vst.msk [vmem:[%s3559_s28 + $0x8] sm:$0xff] %vm2086_vm2, %v2085_v7  ;;  %v2079_v50 = vpop.permute.xlu1 %2078 }
 0x72a   : > { %v2084_v24 = vsel %vm422_vm0, %v1998_v10, %v2079_v50 }
 0x72b   : > { %2087 = vst.msk [vmem:[%s3559_s28] sm:$0xff] %vm2086_vm2, %v2084_v24 }
 0x733   : > { %v2094_v16 = vpop.permute.xlu1 %2093 }
 0x734   : > { %v2098_v22 = vsel %vm422_vm0, %v2023_v27, %v2094_v16 }
 0x735   : > { %2273 = vst.msk [vmem:[%s3559_s28 + $0x18] sm:$0xff] %vm2086_vm2, %v2098_v22 }
 0x737   : > { %v2092_v26 = vpop.permute.xlu1 %2091 }
 0x738   : > { %v2097_v61 = vsel %vm422_vm0, %v2018_v23, %v2092_v26 }
 0x739   : > { %2272 = vst.msk [vmem:[%s3559_s28 + $0x10] sm:$0xff] %vm2086_vm2, %v2097_v61 }
 0x73b   : > { %v2107_v14 = vpop.permute.xlu1 %2106 }
 0x73c   : > { %v2111_v29 = vsel %vm422_vm0, %v2043_v40, %v2107_v14 }
 0x73d   : > { %2275 = vst.msk [vmem:[%s3559_s28 + $0x28] sm:$0xff] %vm2086_vm2, %v2111_v29  ;;  %v2105_v15 = vpop.permute.xlu0 %2104 }
 0x73e   : > { %v2110_v36 = vsel %vm422_vm0, %v2038_v0, %v2105_v15 }
 0x73f   : > { %2274 = vst.msk [vmem:[%s3559_s28 + $0x20] sm:$0xff] %vm2086_vm2, %v2110_v36 }
 0x743   : > { %v2120_v34 = vpop.permute.xlu1 %2119 }
 0x744   : > { %v2124_v38 = vsel %vm422_vm0, %v2063_v9, %v2120_v34 }
 0x745   : > { %2277 = vst.msk [vmem:[%s3559_s28 + $0x38] sm:$0xff] %vm2086_vm2, %v2124_v38  ;;  %v2118_v59 = vpop.permute.xlu0 %2117 }
 0x746   : > { %v2123_v39 = vsel %vm422_vm0, %v2058_v35, %v2118_v59 }
 0x747   : > { %2276 = vst.msk [vmem:[%s3559_s28 + $0x30] sm:$0xff] %vm2086_vm2, %v2123_v39 }
 0x748 PF: > { %p21_p9 = scmp.ge.s32.totalorder %s2775_s22, 4   ;;  %s3624_s17 = smov %s2680_s18 }
 0x749   : > { %s3625_s18 = smov %s2684_s19  ;;  %s3626_s19 = smov %s2785_s25 }
 0x74a   : > { %s3627_s20 = smov %s2775_s22  ;;  %23 = sbr.rel (!%p21_p9) target bundleno = 3 (0x3), region = 107 }
 0x74f   :  { %2152 = vsyncpa [#allocation3], 1 }
 0x750   :  { %2154 = vsyncpa [#allocation3 + $0x1], 1 }

// kernel: mfstage_forward.6
= control target key start
LH: loop header
LB: loop body
LE: loop exit
PB: predicated region body
PF: predicated region fallthrough
CT: control target
= control target key end

     0   :  { %s2644_s17 = smov 0   ;;  %s3410_s0 = inlined_call_operand.vmem [shape: f32[8,16,32], index: 0, kind: input, shape index: {}]   ;;  %s3411_s1 = inlined_call_operand.vmem [shape: f32[32,32], index: 1, kind: input, shape index: {}]   ;;  %s3412_s2 = inlined_call_operand.vmem [shape: f32[32,16], index: 2, kind: input, shape index: {}]   ;;  %s3413_s3 = inlined_call_operand.vmem [shape: f32[1,16], index: 3, kind: input, shape index: {}]   ;;  %s3414_s4 = inlined_call_operand.vmem [shape: f32[1,16], index: 4, kind: input, shape index: {}]   ;;  %s3415_s5 = inlined_call_operand.vmem [shape: f32[1,16], index: 5, kind: input, shape index: {}]   ;;  %s3416_s6 = inlined_call_operand.vmem [shape: f32[1,16], index: 6, kind: input, shape index: {}]   ;;  %s3417_s7 = inlined_call_operand.vmem [shape: f32[16,64], index: 7, kind: input, shape index: {}]   ;;  %s3418_s8 = inlined_call_operand.vmem [shape: f32[1,64], index: 8, kind: input, shape index: {}]   ;;  %s3419_s9 = inlined_call_operand.vmem [shape: f32[64,16], index: 9, kind: input, shape index: {}]   ;;  %s3420_s10 = inlined_call_operand.vmem [shape: f32[1,16], index: 10, kind: input, shape index: {}]   ;;  %s3421_s11 = inlined_call_operand.vmem [shape: f32[8,16,32], index: 11, kind: output, shape index: {}]  }
   0x1 LB: > { %s2171_s18 = sadd.s32 4294967295, %s2580_s17   ;;  %p2175_p0 = scmp.ge.s32.totalorder %s2580_s17, 1  ;;  %s2580_s17 = sphi %s2644_s17, %s21_s17  }
   0x2   : > { %p339_p1 = scmp.lt.s32.totalorder %s2580_s17, 3 }
   0x4   : > { %p340_p2 = pnand %p2175_p0, %p339_p1 }
   0x5   : > { %s2176_s23 = sshll.u32 (!%p340_p2), %s2171_s18, 2  ;;  %s2582_s22 = smov (!%p340_p2), 16  }
   0x6   : > { %343 = sbr.rel (%p340_p2) target bundleno = 1836 (0x72c), region = 64  ;;  %p382_p3 = scmp.lt.s32.totalorder (!%p340_p2), %s2176_s23, 7 }
   0x7   : > { %s2583_s24 = smov (!%p340_p2), 112  }
   0xb   : > { %v406_v0 = vld [vmem:[%s3411_s1 + $0x18] sm:$0xff]  ;;  %v405_v1 = vld [vmem:[%s3411_s1 + $0x10] sm:$0xff]  ;;  %v404_v2 = vld [vmem:[%s3411_s1 + $0x8] sm:$0xff]  ;;  %s3423_s23 = smov (!%p382_p3, %s2176_s23), 7  ;;  %vm407_vm0 = vcmask 261120   ;;  %vm541_vm1 = vcmask 130048  }
   0xc   : > { %2332 = vmatprep.subr.mxu0 %v406_v0  ;;  %2460 = vmatprep.subr.mxu1 %v406_v0  ;;  %v403_v3 = vld [vmem:[%s3411_s1] sm:$0xff]  ;;  %s2252_s28 = sshll.u32 %s3423_s23, 4  ;;  %v538_v15 = vld [vmem:[%s3412_s2 + $0x8] sm:$0xff]  ;;  %v539_v17 = vld [vmem:[%s3412_s2 + $0x10] sm:$0xff]  ;;  %vm1868_vm2 = vcmask 523264  }
   0xd   : > { %2333 = vmatpush3.msra.mxu0 %v406_v0  ;;  %2464 = vmatpush3.msra.mxu1 %v406_v0  ;;  %s386_s12 = scalar_lea.vmem %s3410_s0, %s2252_s28  ;;  %v537_v12 = vld [vmem:[%s3412_s2] sm:$0xff]  ;;  %v540_v21 = vld [vmem:[%s3412_s2 + $0x18] sm:$0xff]  ;;  %s3381_s30 = scalar_lea.vmem %s3421_s11, %s2252_s28 }
   0xe   : > { %2334 = vmatprep.subr.mxu0 %v405_v1  ;;  %2461 = vmatprep.subr.mxu1 %v405_v1  ;;  %v395_v4 = vld [vmem:[%s386_s12] sm:$0xff]  ;;  %v396_v5 = vld [vmem:[%s386_s12 + $0x8] sm:$0xff]  ;;  %v397_v6 = vld [vmem:[%s386_s12 + $0x10] sm:$0xff] }
   0xf   : > { %2335 = vmatpush3.msra.mxu0 %v405_v1  ;;  %2465 = vmatpush3.msra.mxu1 %v405_v1  ;;  %v401_v7 = vld [vmem:[%s386_s12 + $0x30] sm:$0xff]  ;;  %v402_v8 = vld [vmem:[%s386_s12 + $0x38] sm:$0xff]  ;;  %v399_v10 = vld [vmem:[%s386_s12 + $0x20] sm:$0xff] }
  0x10   : > { %2336 = vmatprep.subr.mxu0 %v404_v2  ;;  %2462 = vmatprep.subr.mxu1 %v404_v2  ;;  %v398_v9 = vld [vmem:[%s386_s12 + $0x18] sm:$0xff]  ;;  %v400_v11 = vld [vmem:[%s386_s12 + $0x28] sm:$0xff] }
  0x11   : > { %2337 = vmatpush3.msra.mxu0 %v404_v2  ;;  %2466 = vmatpush3.msra.mxu1 %v404_v2 }
  0x12   : > { %2338 = vmatprep.subr.mxu0 %v403_v3  ;;  %2463 = vmatprep.subr.mxu1 %v403_v3 }
  0x13   : > { %2339 = vmatpush3.msra.mxu0 %v403_v3  ;;  %2340 = vmatprep.mubr.msk.f32.mxu0 %vm407_vm0, %v395_v4 }
  0x14   : > { %2341 = vmatmul.mubr.msk.f32.vlgmr.msra.gmra.mxu0 %vm407_vm0, %v396_v5  ;;  %2467 = vmatpush3.msra.mxu1 %v403_v3 }
  0x15   : > { %2343 = vmatprep.mubr.msk.f32.mxu0 %vm407_vm0, %v397_v6  ;;  %2349 = vmatprep.mubr.msk.f32.mxu1 %vm407_vm0, %v401_v7 }
  0x16   : > { %2350 = vmatmul.mubr.msk.f32.vlgmr.msra.gmra.mxu1 %vm407_vm0, %v402_v8 }
  0x17   : > { %2356 = vmatprep.mubr.msk.f32.mxu1 %vm541_vm1, %v537_v12 }
  0x18   : > { %2344 = vmatmul.mubr.msk.f32.gmra.mxu0 %vm407_vm0, %v398_v9 }
  0x19   : > { %2346 = vmatprep.mubr.msk.f32.mxu0 %vm407_vm0, %v399_v10 }
  0x1c   : > { %2347 = vmatmul.mubr.msk.f32.gmra.mxu0 %vm407_vm0, %v400_v11 }
  0x1d   : > { %2386 = vmatprep.mubr.msk.f32.mxu0 %vm541_vm1, %v537_v12 }
  0xd4   : > { %v2342_v13 = vpop.f32.mrf.mxu0 }
  0xd5   : > { %2352 = vmatprep.subr.mxu1 %v2342_v13 }
  0xd6   : > { %v498_v14 = vpop.f32.mrf.mxu0  ;;  %2353 = vmatpush3.msra.mxu1 %v2342_v13  ;;  %v2351_v16 = vpop.f32.mrf.mxu1 }
  0xd7   : > { %2354 = vmatprep.subr.mxu1 %v498_v14  ;;  %2382 = vmatprep.subr.mxu0 %v2351_v16 }
  0xd8   : > { %v2345_v18 = vpop.f32.mrf.mxu0  ;;  %2355 = vmatpush3.msra.mxu1 %v498_v14  ;;  %v528_v19 = vpop.f32.mrf.mxu1  ;;  %2383 = vmatpush3.msra.mxu0 %v2351_v16 }
  0xd9   : > { %2357 = vmatmul.mubr.msk.f32.vlgmr.msra.gmra.mxu1 %vm541_vm1, %v538_v15  ;;  %2362 = vmatprep.subr.mxu1 %v2345_v18 }
  0xda   : > { %v508_v20 = vpop.f32.mrf.mxu0  ;;  %2363 = vmatpush3.msra.mxu1 %v2345_v18  ;;  %2359 = vmatprep.mubr.msk.f32.mxu1 %vm541_vm1, %v539_v17 }
  0xdb   : > { %2364 = vmatprep.subr.mxu1 %v508_v20  ;;  %2384 = vmatprep.subr.mxu0 %v528_v19 }
  0xdc   : > { %2365 = vmatpush3.msra.mxu1 %v508_v20  ;;  %v2348_v22 = vpop.f32.mrf.mxu0  ;;  %2385 = vmatpush3.msra.mxu0 %v528_v19 }
  0xdd   : > { %2360 = vmatmul.mubr.msk.f32.gmra.mxu1 %vm541_vm1, %v540_v21  ;;  %2372 = vmatprep.subr.mxu1 %v2348_v22 }
  0xde   : > { %2366 = vmatprep.mubr.msk.f32.mxu1 %vm541_vm1, %v537_v12  ;;  %2387 = vmatmul.mubr.msk.f32.vlgmr.msra.gmra.mxu0 %vm541_vm1, %v538_v15  ;;  %v518_v23 = vpop.f32.mrf.mxu0 }
  0xdf   : > { %2389 = vmatprep.mubr.msk.f32.mxu0 %vm541_vm1, %v539_v17 }
  0xe1   : > { %2367 = vmatmul.mubr.msk.f32.vlgmr.msra.gmra.mxu1 %vm541_vm1, %v538_v15 }
  0xe2   : > { %2373 = vmatpush3.msra.mxu1 %v2348_v22  ;;  %2369 = vmatprep.mubr.msk.f32.mxu1 %vm541_vm1, %v539_v17 }
  0xe3   : > { %2374 = vmatprep.subr.mxu1 %v518_v23  ;;  %2390 = vmatmul.mubr.msk.f32.gmra.mxu0 %vm541_vm1, %v540_v21 }
  0xe4   : > { %2375 = vmatpush3.msra.mxu1 %v518_v23 }
  0xe5   : > { %2370 = vmatmul.mubr.msk.f32.gmra.mxu1 %vm541_vm1, %v540_v21 }
  0xe6   : > { %2376 = vmatprep.mubr.msk.f32.mxu1 %vm541_vm1, %v537_v12 }
  0xe9   : > { %2377 = vmatmul.mubr.msk.f32.vlgmr.msra.gmra.mxu1 %vm541_vm1, %v538_v15 }
  0xea   : > { %2379 = vmatprep.mubr.msk.f32.mxu1 %vm541_vm1, %v539_v17 }
  0xed   : > { %2380 = vmatmul.mubr.msk.f32.gmra.mxu1 %vm541_vm1, %v540_v21 }
 0x199   : > { %v2708_v24 = vpop.f32.mrf.mxu1 }
 0x19b   : > { %v620_v25 = vpop.f32.mrf.mxu1 }
 0x19d   : > { %v2361_v26 = vpop.f32.mrf.mxu1 }
 0x19e   : > { %v2716_v31 = vpop.f32.mrf.mxu0 }
 0x19f   : > { %v630_v27 = vpop.f32.mrf.mxu1 }
 0x1a0   : > { %649 = vrot.lane.b32.xlu0 %v630_v27, %s2582_s22  ;;  %v2721_v34 = vpop.f32.mrf.mxu0 }
 0x1a1   : > { %v2711_v28 = vpop.f32.mrf.mxu1 }
 0x1a3   : > { %v2713_v29 = vpop.f32.mrf.mxu1  ;;  %v2391_v37 = vpop.f32.mrf.mxu0 }
 0x1a4   : > { %651 = vrot.lane.b32.xlu0 %v2361_v26, %s2582_s22 }
 0x1a5   : > { %v2371_v30 = vpop.f32.mrf.mxu1  ;;  %v939_v39 = vpop.f32.mrf.mxu0 }
 0x1a7   : > { %v733_v32 = vpop.f32.mrf.mxu1 }
 0x1a8   : > { %752 = vrot.lane.b32.xlu1 %v733_v32, %s2582_s22 }
 0x1a9   : > { %v2719_v33 = vpop.f32.mrf.mxu1 }
 0x1ab   : > { %v2723_v35 = vpop.f32.mrf.mxu1 }
 0x1ac   : > { %754 = vrot.lane.b32.xlu1 %v2371_v30, %s2582_s22 }
 0x1ad   : > { %v2381_v36 = vpop.f32.mrf.mxu1 }
 0x1af   : > { %v836_v38 = vpop.f32.mrf.mxu1 }
 0x1b0   : > { %857 = vrot.lane.b32.xlu1 %v2381_v36, %s2582_s22  ;;  %855 = vrot.lane.b32.xlu0 %v836_v38, %s2582_s22 }
 0x1b4   : > { %960 = vrot.lane.b32.xlu1 %v2391_v37, %s2582_s22  ;;  %958 = vrot.lane.b32.xlu0 %v939_v39, %s2582_s22 }
 0x1b8   : > { %643 = vrot.lane.b32.xlu1 %v2361_v26, %s2583_s24  ;;  %641 = vrot.lane.b32.xlu0 %v630_v27, %s2583_s24 }
 0x212   : > { %v650_v40 = vpop.permute.xlu0 %649 }
 0x213   : > { %v655_v41 = vadd.f32 %v650_v40, %v620_v25 }
 0x215   : > { %968 = vrot.lane.b32.xlu0 %v655_v41, %s2583_s24 }
 0x216   : > { %v652_v42 = vpop.permute.xlu0 %651 }
 0x217   : > { %v656_v43 = vadd.f32 %v2708_v24, %v652_v42 }
 0x219   : > { %970 = vrot.lane.b32.xlu1 %v656_v43, %s2583_s24  ;;  %744 = vrot.lane.b32.xlu0 %v733_v32, %s2583_s24 }
 0x21a   : > { %v753_v44 = vpop.permute.xlu1 %752 }
 0x21b   : > { %v758_v45 = vadd.f32 %v753_v44, %v2713_v29 }
 0x21d   : > { %746 = vrot.lane.b32.xlu1 %v2371_v30, %s2583_s24  ;;  %976 = vrot.lane.b32.xlu0 %v758_v45, %s2583_s24 }
 0x21e   : > { %v755_v46 = vpop.permute.xlu1 %754 }
 0x21f   : > { %v759_v47 = vadd.f32 %v2711_v28, %v755_v46 }
 0x221   : > { %978 = vrot.lane.b32.xlu1 %v759_v47, %s2583_s24  ;;  %847 = vrot.lane.b32.xlu0 %v836_v38, %s2583_s24 }
 0x222   : > { %v856_v48 = vpop.permute.xlu0 %855  ;;  %v858_v50 = vpop.permute.xlu1 %857 }
 0x223   : > { %v861_v49 = vadd.f32 %v856_v48, %v2723_v35  ;;  %v862_v51 = vadd.f32 %v2719_v33, %v858_v50 }
 0x225   : > { %849 = vrot.lane.b32.xlu1 %v2381_v36, %s2583_s24  ;;  %984 = vrot.lane.b32.xlu0 %v861_v49, %s2583_s24 }
 0x226   : > { %v959_v52 = vpop.permute.xlu0 %958  ;;  %v961_v54 = vpop.permute.xlu1 %960 }
 0x227   : > { %v964_v53 = vadd.f32 %v959_v52, %v2721_v34  ;;  %v965_v55 = vadd.f32 %v2716_v31, %v961_v54 }
 0x229   : > { %986 = vrot.lane.b32.xlu1 %v862_v51, %s2583_s24  ;;  %950 = vrot.lane.b32.xlu0 %v939_v39, %s2583_s24 }
 0x22a   : > { %v642_v56 = vpop.permute.xlu0 %641  ;;  %v644_v59 = vpop.permute.xlu1 %643 }
 0x22b   : > { %v647_v57 = vsub.f32 %v620_v25, %v642_v56  ;;  %v648_v60 = vsub.f32 %v2708_v24, %v644_v59 }
 0x22d   : > { %952 = vrot.lane.b32.xlu1 %v2391_v37, %s2583_s24  ;;  %992 = vrot.lane.b32.xlu0 %v964_v53, %s2583_s24  ;;  %v1000_v58 = vsel %vm541_vm1, %v647_v57, 0.0  ;;  %v1003_v61 = vsel %vm541_vm1, %v648_v60, 0.0 }
 0x231   : > { %994 = vrot.lane.b32.xlu1 %v965_v55, %s2583_s24 }
 0x24c   : > { %1001 = vadd.xlane.f32.xlu0 %v1000_v58 }
 0x255   : > { %1004 = vadd.xlane.f32.xlu1 %v1003_v61 }
 0x287   : > { %v969_v62 = vpop.permute.xlu0 %968 }
 0x288   : > { %v1006_v63 = vsel %vm541_vm1, %v969_v62, 0.0 }
 0x289   : > { %1007 = vadd.xlane.f32.xlu0 %v1006_v63 }
 0x28b   : > { %v2757_v0 = vpop.permute.xlu1 %970  ;;  %v745_v1 = vpop.permute.xlu0 %744 }
 0x28c   : > { %v2760_v2 = vsub.f32 %v2713_v29, %v745_v1  ;;  %v1009_v3 = vsel %vm541_vm1, %v2757_v0, 0.0 }
 0x28d   : > { %1010 = vadd.xlane.f32.xlu0 %v1009_v3 }
 0x28e   : > { %v1012_v4 = vsel %vm541_vm1, %v2760_v2, 0.0 }
 0x28f   : > { %v747_v5 = vpop.permute.xlu1 %746  ;;  %1013 = vadd.xlane.f32.xlu1 %v1012_v4  ;;  %v2766_v6 = vpop.permute.xlu0 %976 }
 0x290   : > { %v2769_v7 = vsub.f32 %v2711_v28, %v747_v5  ;;  %v1018_v9 = vsel %vm541_vm1, %v2766_v6, 0.0 }
 0x292   : > { %v1015_v8 = vsel %vm541_vm1, %v2769_v7, 0.0 }
 0x293   : > { %v2775_v10 = vpop.permute.xlu1 %978  ;;  %1016 = vadd.xlane.f32.xlu0 %v1015_v8  ;;  %1019 = vadd.xlane.f32.xlu1 %v1018_v9  ;;  %v848_v11 = vpop.permute.xlu0 %847 }
 0x294   : > { %v2778_v12 = vsub.f32 %v2723_v35, %v848_v11  ;;  %v1021_v13 = vsel %vm541_vm1, %v2775_v10, 0.0 }
 0x296   : > { %v1024_v14 = vsel %vm541_vm1, %v2778_v12, 0.0 }
 0x297   : > { %v850_v15 = vpop.permute.xlu1 %849  ;;  %1022 = vadd.xlane.f32.xlu0 %v1021_v13  ;;  %1025 = vadd.xlane.f32.xlu1 %v1024_v14  ;;  %v2784_v16 = vpop.permute.xlu0 %984 }
 0x298   : > { %v2787_v17 = vsub.f32 %v2719_v33, %v850_v15  ;;  %v1030_v19 = vsel %vm541_vm1, %v2784_v16, 0.0 }
 0x29a   : > { %v1027_v18 = vsel %vm541_vm1, %v2787_v17, 0.0 }
 0x29b   : > { %v2793_v20 = vpop.permute.xlu1 %986  ;;  %1028 = vadd.xlane.f32.xlu0 %v1027_v18  ;;  %1031 = vadd.xlane.f32.xlu1 %v1030_v19  ;;  %v951_v21 = vpop.permute.xlu0 %950 }
 0x29c   : > { %v2796_v22 = vsub.f32 %v2721_v34, %v951_v21  ;;  %v1033_v23 = vsel %vm541_vm1, %v2793_v20, 0.0 }
 0x29e   : > { %v1036_v24 = vsel %vm541_vm1, %v2796_v22, 0.0 }
 0x29f   : > { %v953_v25 = vpop.permute.xlu1 %952  ;;  %1034 = vadd.xlane.f32.xlu0 %v1033_v23  ;;  %1037 = vadd.xlane.f32.xlu1 %v1036_v24  ;;  %v2802_v26 = vpop.permute.xlu0 %992 }
 0x2a0   : > { %v2805_v27 = vsub.f32 %v2716_v31, %v953_v25  ;;  %v1042_v29 = vsel %vm541_vm1, %v2802_v26, 0.0 }
 0x2a2   : > { %v1039_v28 = vsel %vm541_vm1, %v2805_v27, 0.0 }
 0x2a3   : > { %v2811_v30 = vpop.permute.xlu1 %994  ;;  %1040 = vadd.xlane.f32.xlu0 %v1039_v28  ;;  %1043 = vadd.xlane.f32.xlu1 %v1042_v29 }
 0x2a4   : > { %v1045_v32 = vsel %vm541_vm1, %v2811_v30, 0.0 }
 0x2a7   : > { %1046 = vadd.xlane.f32.xlu0 %v1045_v32 }
 0x2d5   : > { %v1002_v33 = vpop.xlane.xlu0 %1001 }
 0x2d6   : > { %v1049_v34 = vmul.f32 0.0625, %v1002_v33 }
 0x2d8   : > { %v2815_v35 = vsub.f32 %v647_v57, %v1049_v34 }
 0x2da   : > { %v1081_v31 = vmul.f32 %v2815_v35, %v2815_v35 }
 0x2dc   : > { %v1097_v36 = vsel %vm541_vm1, %v1081_v31, 0.0 }
 0x2dd   : > { %1098 = vadd.xlane.f32.xlu1 %v1097_v36 }
 0x2de   : > { %v1005_v37 = vpop.xlane.xlu1 %1004 }
 0x2df   : > { %v1050_v38 = vmul.f32 0.0625, %v1005_v37 }
 0x2e1   : > { %v2820_v39 = vsub.f32 %v648_v60, %v1050_v38 }
 0x2e3   : > { %v1082_v40 = vmul.f32 %v2820_v39, %v2820_v39 }
 0x2e5   : > { %v1100_v41 = vsel %vm541_vm1, %v1082_v40, 0.0 }
 0x2e6   : > { %1101 = vadd.xlane.f32.xlu0 %v1100_v41 }
 0x312   : > { %v1008_v42 = vpop.xlane.xlu0 %1007 }
 0x313   : > { %v1051_v43 = vmul.f32 0.0625, %v1008_v42 }
 0x315   : > { %v2825_v44 = vsub.f32 %v969_v62, %v1051_v43 }
 0x316   : > { %v1011_v45 = vpop.xlane.xlu0 %1010 }
 0x317   : > { %v1052_v46 = vmul.f32 0.0625, %v1011_v45  ;;  %v1083_v47 = vmul.f32 %v2825_v44, %v2825_v44 }
 0x318   : > { %v1014_v48 = vpop.xlane.xlu1 %1013 }
 0x319   : > { %v2830_v49 = vsub.f32 %v2757_v0, %v1052_v46  ;;  %v1053_v50 = vmul.f32 0.0625, %v1014_v48  ;;  %v1103_v51 = vsel %vm541_vm1, %v1083_v47, 0.0 }
 0x31a   : > { %1104 = vadd.xlane.f32.xlu1 %v1103_v51 }
 0x31b   : > { %v2834_v52 = vsub.f32 %v2760_v2, %v1053_v50  ;;  %v1084_v53 = vmul.f32 %v2830_v49, %v2830_v49 }
 0x31c   : > { %v1020_v54 = vpop.xlane.xlu1 %1019  ;;  %v1017_v55 = vpop.xlane.xlu0 %1016 }
 0x31d   : > { %v1055_v56 = vmul.f32 0.0625, %v1020_v54  ;;  %v1054_v57 = vmul.f32 0.0625, %v1017_v55  ;;  %v1106_v58 = vsel %vm541_vm1, %v1084_v53, 0.0  ;;  %v1085_v59 = vmul.f32 %v2834_v52, %v2834_v52 }
 0x31e   : > { %1107 = vadd.xlane.f32.xlu0 %v1106_v58 }
 0x31f   : > { %v2842_v60 = vsub.f32 %v2766_v6, %v1055_v56  ;;  %v2845_v61 = vsub.f32 %v2769_v7, %v1054_v57  ;;  %v1109_v62 = vsel %vm541_vm1, %v1085_v59, 0.0 }
 0x320   : > { %v1026_v63 = vpop.xlane.xlu1 %1025  ;;  %1110 = vadd.xlane.f32.xlu1 %v1109_v62  ;;  %v1023_v0 = vpop.xlane.xlu0 %1022  ;;  %v2911_v62 = vld [vmem:[%s3413_s3] ss:$0 sm:$0xff] }
 0x321   : > { %v1057_v1 = vmul.f32 0.0625, %v1026_v63  ;;  %v1056_v2 = vmul.f32 0.0625, %v1023_v0  ;;  %v1087_v3 = vmul.f32 %v2842_v60, %v2842_v60  ;;  %v1086_v4 = vmul.f32 %v2845_v61, %v2845_v61  ;;  %v2917_v0 = vld [vmem:[%s3414_s4] ss:$0 sm:$0xff] }
 0x323   : > { %v2853_v5 = vsub.f32 %v2778_v12, %v1057_v1  ;;  %v2856_v6 = vsub.f32 %v2775_v10, %v1056_v2  ;;  %v1115_v7 = vsel %vm541_vm1, %v1087_v3, 0.0  ;;  %v1112_v8 = vsel %vm541_vm1, %v1086_v4, 0.0 }
 0x324   : > { %v1032_v9 = vpop.xlane.xlu1 %1031  ;;  %1116 = vadd.xlane.f32.xlu1 %v1115_v7  ;;  %1113 = vadd.xlane.f32.xlu0 %v1112_v8  ;;  %v1029_v11 = vpop.xlane.xlu0 %1028 }
 0x325   : > { %v1059_v13 = vmul.f32 0.0625, %v1032_v9  ;;  %v1058_v14 = vmul.f32 0.0625, %v1029_v11  ;;  %v1089_v15 = vmul.f32 %v2853_v5, %v2853_v5  ;;  %v1088_v12 = vmul.f32 %v2856_v6, %v2856_v6 }
 0x327   : > { %v2865_v18 = vsub.f32 %v2784_v16, %v1059_v13  ;;  %v2868_v10 = vsub.f32 %v2787_v17, %v1058_v14  ;;  %v1121_v19 = vsel %vm541_vm1, %v1089_v15, 0.0  ;;  %v1118_v21 = vsel %vm541_vm1, %v1088_v12, 0.0 }
 0x328   : > { %v1038_v23 = vpop.xlane.xlu1 %1037  ;;  %1122 = vadd.xlane.f32.xlu1 %v1121_v19  ;;  %1119 = vadd.xlane.f32.xlu0 %v1118_v21  ;;  %v1035_v24 = vpop.xlane.xlu0 %1034 }
 0x329   : > { %v1061_v25 = vmul.f32 0.0625, %v1038_v23  ;;  %v1060_v28 = vmul.f32 0.0625, %v1035_v24  ;;  %v1091_v29 = vmul.f32 %v2865_v18, %v2865_v18  ;;  %v1090_v16 = vmul.f32 %v2868_v10, %v2868_v10 }
 0x32b   : > { %v2877_v32 = vsub.f32 %v2796_v22, %v1061_v25  ;;  %v2880_v17 = vsub.f32 %v2793_v20, %v1060_v28  ;;  %v1127_v33 = vsel %vm541_vm1, %v1091_v29, 0.0  ;;  %v1124_v34 = vsel %vm541_vm1, %v1090_v16, 0.0 }
 0x32c   : > { %v1044_v31 = vpop.xlane.xlu1 %1043  ;;  %1128 = vadd.xlane.f32.xlu1 %v1127_v33  ;;  %1125 = vadd.xlane.f32.xlu0 %v1124_v34  ;;  %v1041_v36 = vpop.xlane.xlu0 %1040 }
 0x32d   : > { %v1063_v37 = vmul.f32 0.0625, %v1044_v31  ;;  %v1062_v38 = vmul.f32 0.0625, %v1041_v36  ;;  %v1093_v40 = vmul.f32 %v2877_v32, %v2877_v32  ;;  %v1092_v22 = vmul.f32 %v2880_v17, %v2880_v17 }
 0x32f   : > { %v2889_v41 = vsub.f32 %v2802_v26, %v1063_v37  ;;  %v2892_v20 = vsub.f32 %v2805_v27, %v1062_v38  ;;  %v1133_v42 = vsel %vm541_vm1, %v1093_v40, 0.0  ;;  %v1130_v43 = vsel %vm541_vm1, %v1092_v22, 0.0 }
 0x330   : > { %1134 = vadd.xlane.f32.xlu1 %v1133_v42  ;;  %1131 = vadd.xlane.f32.xlu0 %v1130_v43  ;;  %v1047_v45 = vpop.xlane.xlu0 %1046 }
 0x331   : > { %v1064_v46 = vmul.f32 0.0625, %v1047_v45  ;;  %v1095_v47 = vmul.f32 %v2889_v41, %v2889_v41  ;;  %v1094_v48 = vmul.f32 %v2892_v20, %v2892_v20 }
 0x333   : > { %v2901_v26 = vsub.f32 %v2811_v30, %v1064_v46  ;;  %v1139_v27 = vsel %vm541_vm1, %v1095_v47, 0.0  ;;  %v1136_v50 = vsel %vm541_vm1, %v1094_v48, 0.0 }
 0x334   : > { %1140 = vadd.xlane.f32.xlu1 %v1139_v27  ;;  %1137 = vadd.xlane.f32.xlu0 %v1136_v50 }
 0x335   : > { %v1096_v51 = vmul.f32 %v2901_v26, %v2901_v26 }
 0x337   : > { %v1142_v53 = vsel %vm541_vm1, %v1096_v51, 0.0 }
 0x338   : > { %1143 = vadd.xlane.f32.xlu0 %v1142_v53 }
 0x366   : > { %v1099_v54 = vpop.xlane.xlu1 %1098 }
 0x367   : > { %v1145_v55 = vmul.f32 0.0625, %v1099_v54 }
 0x369   : > { %v1161_v56 = vadd.f32 1e-05, %v1145_v55 }
 0x36b   : > { %2478 = vrsqrt.f32 %v1161_v56 }
 0x36f   : > { %v1102_v57 = vpop.xlane.xlu0 %1101 }
 0x370   : > { %v1146_v58 = vmul.f32 0.0625, %v1102_v57 }
 0x372   : > { %v1162_v30 = vadd.f32 1e-05, %v1146_v58 }
 0x374   : > { %2480 = vrsqrt.f32 %v1162_v30 }
 0x378   : > { %v2479_v59 = vpop.eup %2478 }
 0x379   : > { %v1193_v63 = vmul.f32 %v2479_v59, %v2815_v35 }
 0x37b   : > { %v1215_v1 = vmul.f32 %v2911_v62, %v1193_v63 }
 0x37d   : > { %v2921_v2 = vadd.f32 %v2917_v0, %v1215_v1 }
 0x37f   : > { %v1255_v3 = vsel %vm541_vm1, %v2921_v2, 0.0 }
 0x380   : > { %1256 = vadd.xlane.f32.xlu1 %v1255_v3 }
 0x381   : > { %v2481_v4 = vpop.eup %2480 }
 0x382   : > { %v1194_v7 = vmul.f32 %v2481_v4, %v2820_v39 }
 0x384   : > { %v1216_v8 = vmul.f32 %v2911_v62, %v1194_v7 }
 0x386   : > { %v2928_v35 = vadd.f32 %v2917_v0, %v1216_v8 }
 0x388   : > { %v1258_v9 = vsel %vm541_vm1, %v2928_v35, 0.0 }
 0x389   : > { %1259 = vadd.xlane.f32.xlu0 %v1258_v9 }
 0x3a3   : > { %v1105_v11 = vpop.xlane.xlu1 %1104 }
 0x3a4   : > { %v1147_v13 = vmul.f32 0.0625, %v1105_v11 }
 0x3a6   : > { %v1163_v14 = vadd.f32 1e-05, %v1147_v13 }
 0x3a7   : > { %v1108_v15 = vpop.xlane.xlu0 %1107 }
 0x3a8   : > { %2482 = vrsqrt.f32 %v1163_v14  ;;  %v1148_v12 = vmul.f32 0.0625, %v1108_v15 }
 0x3a9   : > { %v1111_v19 = vpop.xlane.xlu1 %1110 }
 0x3aa   : > { %v1164_v21 = vadd.f32 1e-05, %v1148_v12  ;;  %v1149_v23 = vmul.f32 0.0625, %v1111_v19 }
 0x3ac   : > { %2484 = vrsqrt.f32 %v1164_v21  ;;  %v1165_v39 = vadd.f32 1e-05, %v1149_v23 }
 0x3ad   : > { %v1117_v24 = vpop.xlane.xlu1 %1116  ;;  %v1114_v25 = vpop.xlane.xlu0 %1113 }
 0x3ae   : > { %2486 = vrsqrt.f32 %v1165_v39  ;;  %v1151_v28 = vmul.f32 0.0625, %v1117_v24  ;;  %v1150_v29 = vmul.f32 0.0625, %v1114_v25 }
 0x3b0   : > { %v1167_v16 = vadd.f32 1e-05, %v1151_v28  ;;  %v1166_v33 = vadd.f32 1e-05, %v1150_v29 }
 0x3b1   : > { %v1123_v34 = vpop.xlane.xlu1 %1122  ;;  %v1120_v31 = vpop.xlane.xlu0 %1119 }
 0x3b2   : > { %2488 = vrsqrt.f32 %v1167_v16  ;;  %v1153_v36 = vmul.f32 0.0625, %v1123_v34  ;;  %v1152_v37 = vmul.f32 0.0625, %v1120_v31 }
 0x3b3   : > { %2490 = vrsqrt.f32 %v1166_v33 }
 0x3b4   : > { %v1169_v38 = vadd.f32 1e-05, %v1153_v36  ;;  %v1168_v40 = vadd.f32 1e-05, %v1152_v37 }
 0x3b5   : > { %v2483_v22 = vpop.eup %2482  ;;  %v1129_v42 = vpop.xlane.xlu1 %1128 }
 0x3b6   : > { %v1126_v43 = vpop.xlane.xlu0 %1125  ;;  %2492 = vrsqrt.f32 %v1169_v38  ;;  %v1155_v45 = vmul.f32 0.0625, %v1129_v42  ;;  %v1195_v47 = vmul.f32 %v2483_v22, %v2825_v44 }
 0x3b7   : > { %v1154_v46 = vmul.f32 0.0625, %v1126_v43  ;;  %2494 = vrsqrt.f32 %v1168_v40 }
 0x3b8   : > { %v1171_v48 = vadd.f32 1e-05, %v1155_v45  ;;  %v1217_v50 = vmul.f32 %v2911_v62, %v1195_v47 }
 0x3b9   : > { %v1170_v27 = vadd.f32 1e-05, %v1154_v46  ;;  %v2485_v51 = vpop.eup %2484  ;;  %v1135_v53 = vpop.xlane.xlu1 %1134 }
 0x3ba   : > { %v1132_v54 = vpop.xlane.xlu0 %1131  ;;  %2496 = vrsqrt.f32 %v1171_v48  ;;  %v1157_v55 = vmul.f32 0.0625, %v1135_v53  ;;  %v2935_v57 = vadd.f32 %v2917_v0, %v1217_v50  ;;  %v1196_v30 = vmul.f32 %v2485_v51, %v2830_v49 }
 0x3bb   : > { %v1156_v56 = vmul.f32 0.0625, %v1132_v54  ;;  %v2487_v58 = vpop.eup %2486  ;;  %2498 = vrsqrt.f32 %v1170_v27 }
 0x3bc   : > { %v1173_v59 = vadd.f32 1e-05, %v1157_v55  ;;  %v1261_v63 = vsel %vm541_vm1, %v2935_v57, 0.0  ;;  %v1197_v1 = vmul.f32 %v2487_v58, %v2834_v52  ;;  %v1218_v7 = vmul.f32 %v2911_v62, %v1196_v30 }
 0x3bd   : > { %v1172_v44 = vadd.f32 1e-05, %v1156_v56  ;;  %1262 = vadd.xlane.f32.xlu1 %v1261_v63  ;;  %v1141_v3 = vpop.xlane.xlu1 %1140 }
 0x3be   : > { %v1138_v4 = vpop.xlane.xlu0 %1137  ;;  %2500 = vrsqrt.f32 %v1173_v59  ;;  %v1159_v8 = vmul.f32 0.0625, %v1141_v3  ;;  %v1219_v11 = vmul.f32 %v2911_v62, %v1197_v1  ;;  %v2944_v49 = vadd.f32 %v2917_v0, %v1218_v7 }
 0x3bf   : > { %v1158_v9 = vmul.f32 0.0625, %v1138_v4  ;;  %v2489_v13 = vpop.eup %2488  ;;  %2502 = vrsqrt.f32 %v1172_v44 }
 0x3c0   : > { %v2491_v14 = vpop.eup %2490  ;;  %v1175_v15 = vadd.f32 1e-05, %v1159_v8  ;;  %v2947_v52 = vadd.f32 %v2917_v0, %v1219_v11  ;;  %v1199_v19 = vmul.f32 %v2489_v13, %v2842_v60  ;;  %v1264_v21 = vsel %vm541_vm1, %v2944_v49, 0.0 }
 0x3c1   : > { %v1174_v12 = vadd.f32 1e-05, %v1158_v9  ;;  %v1198_v39 = vmul.f32 %v2491_v14, %v2845_v61  ;;  %1265 = vadd.xlane.f32.xlu0 %v1264_v21 }
 0x3c2   : > { %v1144_v23 = vpop.xlane.xlu0 %1143  ;;  %2504 = vrsqrt.f32 %v1175_v15  ;;  %v1267_v25 = vsel %vm541_vm1, %v2947_v52, 0.0  ;;  %v1221_v28 = vmul.f32 %v2911_v62, %v1199_v19 }
 0x3c3   : > { %v1160_v24 = vmul.f32 0.0625, %v1144_v23  ;;  %v2493_v29 = vpop.eup %2492  ;;  %2506 = vrsqrt.f32 %v1174_v12  ;;  %1268 = vadd.xlane.f32.xlu1 %v1267_v25  ;;  %v1220_v16 = vmul.f32 %v2911_v62, %v1198_v39 }
 0x3c4   : > { %v2495_v60 = vpop.eup %2494  ;;  %v2958_v34 = vadd.f32 %v2917_v0, %v1221_v28  ;;  %v1201_v61 = vmul.f32 %v2493_v29, %v2853_v5 }
 0x3c5   : > { %v1176_v33 = vadd.f32 1e-05, %v1160_v24  ;;  %v2962_v31 = vadd.f32 %v2917_v0, %v1220_v16  ;;  %v1200_v36 = vmul.f32 %v2495_v60, %v2856_v6  ;;  %v1507_v60 = vld [vmem:[%s3417_s7] sm:$0xff] }
 0x3c6   : > { %v1273_v37 = vsel %vm541_vm1, %v2958_v34, 0.0  ;;  %v1223_v38 = vmul.f32 %v2911_v62, %v1201_v61 }
 0x3c7   : > { %2508 = vrsqrt.f32 %v1176_v33  ;;  %v2497_v40 = vpop.eup %2496  ;;  %1274 = vadd.xlane.f32.xlu1 %v1273_v37  ;;  %v1270_v22 = vsel %vm541_vm1, %v2962_v31, 0.0  ;;  %v1222_v42 = vmul.f32 %v2911_v62, %v1200_v36 }
 0x3c8   : > { %v2499_v43 = vpop.eup %2498  ;;  %1271 = vadd.xlane.f32.xlu0 %v1270_v22  ;;  %v2972_v5 = vadd.f32 %v2917_v0, %v1223_v38  ;;  %v1203_v6 = vmul.f32 %v2497_v40, %v2865_v18 }
 0x3c9   : > { %v2976_v45 = vadd.f32 %v2917_v0, %v1222_v42  ;;  %v1202_v46 = vmul.f32 %v2499_v43, %v2868_v10 }
 0x3ca   : > { %v1279_v47 = vsel %vm541_vm1, %v2972_v5, 0.0  ;;  %v1225_v48 = vmul.f32 %v2911_v62, %v1203_v6 }
 0x3cb   : > { %v2501_v27 = vpop.eup %2500  ;;  %1280 = vadd.xlane.f32.xlu1 %v1279_v47  ;;  %v1276_v50 = vsel %vm541_vm1, %v2976_v45, 0.0  ;;  %v1224_v51 = vmul.f32 %v2911_v62, %v1202_v46 }
 0x3cc   : > { %v2503_v53 = vpop.eup %2502  ;;  %1277 = vadd.xlane.f32.xlu0 %v1276_v50  ;;  %v2986_v18 = vadd.f32 %v2917_v0, %v1225_v48  ;;  %v1205_v54 = vmul.f32 %v2501_v27, %v2877_v32 }
 0x3cd   : > { %v2990_v10 = vadd.f32 %v2917_v0, %v1224_v51  ;;  %v1204_v55 = vmul.f32 %v2503_v53, %v2880_v17 }
 0x3ce   : > { %v1285_v56 = vsel %vm541_vm1, %v2986_v18, 0.0  ;;  %v1227_v58 = vmul.f32 %v2911_v62, %v1205_v54 }
 0x3cf   : > { %v2505_v30 = vpop.eup %2504  ;;  %1286 = vadd.xlane.f32.xlu1 %v1285_v56  ;;  %v1282_v59 = vsel %vm541_vm1, %v2990_v10, 0.0  ;;  %v1226_v44 = vmul.f32 %v2911_v62, %v1204_v55 }
 0x3d0   : > { %v2507_v63 = vpop.eup %2506  ;;  %1283 = vadd.xlane.f32.xlu0 %v1282_v59  ;;  %v3000_v32 = vadd.f32 %v2917_v0, %v1227_v58  ;;  %v1207_v1 = vmul.f32 %v2505_v30, %v2889_v41 }
 0x3d1   : > { %v3004_v17 = vadd.f32 %v2917_v0, %v1226_v44  ;;  %v1206_v3 = vmul.f32 %v2507_v63, %v2892_v20 }
 0x3d2   : > { %v1291_v4 = vsel %vm541_vm1, %v3000_v32, 0.0  ;;  %v1229_v7 = vmul.f32 %v2911_v62, %v1207_v1 }
 0x3d3   : > { %1292 = vadd.xlane.f32.xlu1 %v1291_v4  ;;  %v1288_v9 = vsel %vm541_vm1, %v3004_v17, 0.0  ;;  %v1228_v11 = vmul.f32 %v2911_v62, %v1206_v3 }
 0x3d4   : > { %v2509_v8 = vpop.eup %2508  ;;  %1289 = vadd.xlane.f32.xlu0 %v1288_v9  ;;  %v3014_v41 = vadd.f32 %v2917_v0, %v1229_v7 }
 0x3d5   : > { %v1208_v13 = vmul.f32 %v2509_v8, %v2901_v26  ;;  %v3018_v20 = vadd.f32 %v2917_v0, %v1228_v11 }
 0x3d6   : > { %v1297_v14 = vsel %vm541_vm1, %v3014_v41, 0.0 }
 0x3d7   : > { %v1230_v15 = vmul.f32 %v2911_v62, %v1208_v13  ;;  %1298 = vadd.xlane.f32.xlu1 %v1297_v14  ;;  %v1294_v12 = vsel %vm541_vm1, %v3018_v20, 0.0 }
 0x3d8   : > { %1295 = vadd.xlane.f32.xlu0 %v1294_v12 }
 0x3d9   : > { %v3026_v19 = vadd.f32 %v2917_v0, %v1230_v15 }
 0x3db   : > { %v1300_v21 = vsel %vm541_vm1, %v3026_v19, 0.0 }
 0x3dc   : > { %1301 = vadd.xlane.f32.xlu0 %v1300_v21 }
 0x409   : > { %v1257_v26 = vpop.xlane.xlu1 %1256 }
 0x40a   : > { %v1303_v23 = vmul.f32 0.0625, %v1257_v26 }
 0x40c   : > { %v3031_v39 = vsub.f32 %v2921_v2, %v1303_v23  ;;  %v1508_v2 = vld [vmem:[%s3417_s7 + $0x8] sm:$0xff] }
 0x40d   : > { %2392 = vmatprep.subr.mxu1 %v1508_v2 }
 0x40e   : > { %v1335_v62 = vmul.f32 %v3031_v39, %v3031_v39  ;;  %2393 = vmatpush3.msra.mxu1 %v1508_v2 }
 0x40f   : > { %2394 = vmatprep.subr.mxu1 %v1507_v60 }
 0x410   : > { %v1351_v24 = vsel %vm541_vm1, %v1335_v62, 0.0  ;;  %2395 = vmatpush3.msra.mxu1 %v1507_v60 }
 0x411   : > { %1352 = vadd.xlane.f32.xlu1 %v1351_v24 }
 0x412   : > { %v1260_v25 = vpop.xlane.xlu0 %1259 }
 0x413   : > { %v1304_v28 = vmul.f32 0.0625, %v1260_v25 }
 0x415   : > { %v3037_v0 = vsub.f32 %v2928_v35, %v1304_v28 }
 0x417   : > { %v1336_v29 = vmul.f32 %v3037_v0, %v3037_v0 }
 0x419   : > { %v1354_v16 = vsel %vm541_vm1, %v1336_v29, 0.0 }
 0x41a   : > { %1355 = vadd.xlane.f32.xlu0 %v1354_v16 }
 0x446   : > { %v1263_v35 = vpop.xlane.xlu1 %1262 }
 0x447   : > { %v1305_v33 = vmul.f32 0.0625, %v1263_v35 }
 0x449   : > { %v3049_v61 = vsub.f32 %v2935_v57, %v1305_v33 }
 0x44a   : > { %v1266_v36 = vpop.xlane.xlu0 %1265 }
 0x44b   : > { %v1337_v37 = vmul.f32 %v3049_v61, %v3049_v61  ;;  %v1306_v38 = vmul.f32 0.0625, %v1266_v36 }
 0x44c   : > { %v1269_v40 = vpop.xlane.xlu1 %1268 }
 0x44d   : > { %v1307_v22 = vmul.f32 0.0625, %v1269_v40  ;;  %v1357_v42 = vsel %vm541_vm1, %v1337_v37, 0.0  ;;  %v3055_v43 = vsub.f32 %v2944_v49, %v1306_v38 }
 0x44e   : > { %1358 = vadd.xlane.f32.xlu1 %v1357_v42 }
 0x44f   : > { %v3058_v6 = vsub.f32 %v2947_v52, %v1307_v22  ;;  %v1338_v57 = vmul.f32 %v3055_v43, %v3055_v43 }
 0x450   : > { %v1275_v46 = vpop.xlane.xlu1 %1274 }
 0x451   : > { %v1309_v47 = vmul.f32 0.0625, %v1275_v46  ;;  %v1272_v48 = vpop.xlane.xlu0 %1271  ;;  %v1339_v27 = vmul.f32 %v3058_v6, %v3058_v6  ;;  %v1360_v51 = vsel %vm541_vm1, %v1338_v57, 0.0 }
 0x452   : > { %v1308_v50 = vmul.f32 0.0625, %v1272_v48  ;;  %1361 = vadd.xlane.f32.xlu0 %v1360_v51 }
 0x453   : > { %v3066_v53 = vsub.f32 %v2958_v34, %v1309_v47  ;;  %v1363_v49 = vsel %vm541_vm1, %v1339_v27, 0.0 }
 0x454   : > { %v3070_v52 = vsub.f32 %v2962_v31, %v1308_v50  ;;  %1364 = vadd.xlane.f32.xlu1 %v1363_v49  ;;  %v1281_v54 = vpop.xlane.xlu1 %1280  ;;  %v3135_v49 = vld [vmem:[%s3415_s5] ss:$0 sm:$0xff] }
 0x455   : > { %v1311_v55 = vmul.f32 0.0625, %v1281_v54  ;;  %v1278_v56 = vpop.xlane.xlu0 %1277  ;;  %v1341_v58 = vmul.f32 %v3066_v53, %v3066_v53 }
 0x456   : > { %v1310_v30 = vmul.f32 0.0625, %v1278_v56  ;;  %v1340_v59 = vmul.f32 %v3070_v52, %v3070_v52 }
 0x457   : > { %v3077_v34 = vsub.f32 %v2972_v5, %v1311_v55  ;;  %v1369_v44 = vsel %vm541_vm1, %v1341_v58, 0.0  ;;  %v3141_v55 = vld [vmem:[%s3416_s6] ss:$0 sm:$0xff] }
 0x458   : > { %v3081_v63 = vsub.f32 %v2976_v45, %v1310_v30  ;;  %1370 = vadd.xlane.f32.xlu1 %v1369_v44  ;;  %v1287_v31 = vpop.xlane.xlu1 %1286  ;;  %v1366_v1 = vsel %vm541_vm1, %v1340_v59, 0.0 }
 0x459   : > { %v1313_v3 = vmul.f32 0.0625, %v1287_v31  ;;  %1367 = vadd.xlane.f32.xlu0 %v1366_v1  ;;  %v1284_v4 = vpop.xlane.xlu0 %1283  ;;  %v1343_v7 = vmul.f32 %v3077_v34, %v3077_v34 }
 0x45a   : > { %v1312_v8 = vmul.f32 0.0625, %v1284_v4  ;;  %v1342_v5 = vmul.f32 %v3081_v63, %v3081_v63 }
 0x45b   : > { %v3089_v9 = vsub.f32 %v2986_v18, %v1313_v3  ;;  %v1375_v45 = vsel %vm541_vm1, %v1343_v7, 0.0 }
 0x45c   : > { %v3093_v11 = vsub.f32 %v2990_v10, %v1312_v8  ;;  %1376 = vadd.xlane.f32.xlu1 %v1375_v45  ;;  %v1293_v13 = vpop.xlane.xlu1 %1292  ;;  %v1372_v14 = vsel %vm541_vm1, %v1342_v5, 0.0 }
 0x45d   : > { %v1315_v15 = vmul.f32 0.0625, %v1293_v13  ;;  %1373 = vadd.xlane.f32.xlu0 %v1372_v14  ;;  %v1290_v12 = vpop.xlane.xlu0 %1289  ;;  %v1345_v21 = vmul.f32 %v3089_v9, %v3089_v9 }
 0x45e   : > { %v1314_v26 = vmul.f32 0.0625, %v1290_v12  ;;  %v1344_v18 = vmul.f32 %v3093_v11, %v3093_v11 }
 0x45f   : > { %v3101_v23 = vsub.f32 %v3000_v32, %v1315_v15  ;;  %v1381_v10 = vsel %vm541_vm1, %v1345_v21, 0.0 }
 0x460   : > { %v3105_v62 = vsub.f32 %v3004_v17, %v1314_v26  ;;  %1382 = vadd.xlane.f32.xlu1 %v1381_v10  ;;  %v1299_v24 = vpop.xlane.xlu1 %1298  ;;  %v1378_v25 = vsel %vm541_vm1, %v1344_v18, 0.0 }
 0x461   : > { %v1317_v28 = vmul.f32 0.0625, %v1299_v24  ;;  %1379 = vadd.xlane.f32.xlu0 %v1378_v25  ;;  %v1296_v29 = vpop.xlane.xlu0 %1295  ;;  %v1347_v16 = vmul.f32 %v3101_v23, %v3101_v23 }
 0x462   : > { %v1316_v2 = vmul.f32 0.0625, %v1296_v29  ;;  %v1346_v32 = vmul.f32 %v3105_v62, %v3105_v62 }
 0x463   : > { %v3113_v60 = vsub.f32 %v3014_v41, %v1317_v28  ;;  %v1387_v17 = vsel %vm541_vm1, %v1347_v16, 0.0 }
 0x464   : > { %v3117_v35 = vsub.f32 %v3018_v20, %v1316_v2  ;;  %1388 = vadd.xlane.f32.xlu1 %v1387_v17  ;;  %v1384_v33 = vsel %vm541_vm1, %v1346_v32, 0.0 }
 0x465   : > { %1385 = vadd.xlane.f32.xlu0 %v1384_v33  ;;  %v1302_v36 = vpop.xlane.xlu0 %1301  ;;  %v1349_v37 = vmul.f32 %v3113_v60, %v3113_v60 }
 0x466   : > { %v1318_v38 = vmul.f32 0.0625, %v1302_v36  ;;  %v1348_v40 = vmul.f32 %v3117_v35, %v3117_v35 }
 0x467   : > { %v1393_v41 = vsel %vm541_vm1, %v1349_v37, 0.0 }
 0x468   : > { %v3126_v22 = vsub.f32 %v3026_v19, %v1318_v38  ;;  %1394 = vadd.xlane.f32.xlu1 %v1393_v41  ;;  %v1390_v20 = vsel %vm541_vm1, %v1348_v40, 0.0 }
 0x469   : > { %1391 = vadd.xlane.f32.xlu0 %v1390_v20 }
 0x46a   : > { %v1350_v42 = vmul.f32 %v3126_v22, %v3126_v22 }
 0x46c   : > { %v1396_v46 = vsel %vm541_vm1, %v1350_v42, 0.0 }
 0x46d   : > { %1397 = vadd.xlane.f32.xlu0 %v1396_v46 }
 0x49a   : > { %v1353_v57 = vpop.xlane.xlu1 %1352 }
 0x49b   : > { %v1399_v47 = vmul.f32 0.0625, %v1353_v57 }
 0x49d   : > { %v1415_v48 = vadd.f32 1e-05, %v1399_v47 }
 0x49f   : > { %2510 = vrsqrt.f32 %v1415_v48 }
 0x4a3   : > { %v1356_v27 = vpop.xlane.xlu0 %1355 }
 0x4a4   : > { %v1400_v50 = vmul.f32 0.0625, %v1356_v27 }
 0x4a6   : > { %v1416_v51 = vadd.f32 1e-05, %v1400_v50 }
 0x4a8   : > { %2512 = vrsqrt.f32 %v1416_v51 }
 0x4ac   : > { %v2511_v19 = vpop.eup %2510 }
 0x4ad   : > { %v1447_v54 = vmul.f32 %v2511_v19, %v3031_v39 }
 0x4af   : > { %v1469_v56 = vmul.f32 %v3135_v49, %v1447_v54 }
 0x4b1   : > { %v1491_v58 = vadd.f32 %v3141_v55, %v1469_v56 }
 0x4b3   : > { %2396 = vmatprep.mubr.msk.f32.mxu1 %vm541_vm1, %v1491_v58 }
 0x4b5   : > { %v2513_v30 = vpop.eup %2512 }
 0x4b6   : > { %v1448_v59 = vmul.f32 %v2513_v30, %v3037_v0 }
 0x4b8   : > { %v1470_v44 = vmul.f32 %v3135_v49, %v1448_v59 }
 0x4ba   : > { %v1492_v31 = vadd.f32 %v3141_v55, %v1470_v44 }
 0x4bc   : > { %2397 = vmatmul.mubr.msk.f32.vlgmr.msra.gmra.mxu1 %vm541_vm1, %v1492_v31 }
 0x4d7   : > { %v1359_v39 = vpop.xlane.xlu1 %1358 }
 0x4d8   : > { %v1401_v1 = vmul.f32 0.0625, %v1359_v39 }
 0x4da   : > { %v1417_v3 = vadd.f32 1e-05, %v1401_v1 }
 0x4db   : > { %v1362_v4 = vpop.xlane.xlu0 %1361 }
 0x4dc   : > { %2514 = vrsqrt.f32 %v1417_v3  ;;  %v1402_v7 = vmul.f32 0.0625, %v1362_v4 }
 0x4dd   : > { %v1365_v8 = vpop.xlane.xlu1 %1364 }
 0x4de   : > { %v1403_v5 = vmul.f32 0.0625, %v1365_v8  ;;  %v1418_v45 = vadd.f32 1e-05, %v1402_v7 }
 0x4e0   : > { %v1419_v13 = vadd.f32 1e-05, %v1403_v5  ;;  %2516 = vrsqrt.f32 %v1418_v45 }
 0x4e1   : > { %v1371_v14 = vpop.xlane.xlu1 %1370 }
 0x4e2   : > { %2518 = vrsqrt.f32 %v1419_v13  ;;  %v1405_v0 = vmul.f32 0.0625, %v1371_v14  ;;  %v1368_v15 = vpop.xlane.xlu0 %1367 }
 0x4e3   : > { %v1404_v12 = vmul.f32 0.0625, %v1368_v15 }
 0x4e4   : > { %v1421_v21 = vadd.f32 1e-05, %v1405_v0 }
 0x4e5   : > { %v1420_v26 = vadd.f32 1e-05, %v1404_v12  ;;  %v1377_v18 = vpop.xlane.xlu1 %1376 }
 0x4e6   : > { %2520 = vrsqrt.f32 %v1421_v21  ;;  %v1407_v10 = vmul.f32 0.0625, %v1377_v18  ;;  %v1374_v24 = vpop.xlane.xlu0 %1373 }
 0x4e7   : > { %2522 = vrsqrt.f32 %v1420_v26  ;;  %v1406_v25 = vmul.f32 0.0625, %v1374_v24 }
 0x4e8   : > { %v1423_v28 = vadd.f32 1e-05, %v1407_v10 }
 0x4e9   : > { %v2515_v29 = vpop.eup %2514  ;;  %v1422_v16 = vadd.f32 1e-05, %v1406_v25  ;;  %v1383_v2 = vpop.xlane.xlu1 %1382 }
 0x4ea   : > { %2524 = vrsqrt.f32 %v1423_v28  ;;  %v1409_v32 = vmul.f32 0.0625, %v1383_v2  ;;  %v1380_v17 = vpop.xlane.xlu0 %1379  ;;  %v1449_v33 = vmul.f32 %v2515_v29, %v3049_v61 }
 0x4eb   : > { %2526 = vrsqrt.f32 %v1422_v16  ;;  %v1408_v36 = vmul.f32 0.0625, %v1380_v17 }
 0x4ec   : > { %v1425_v37 = vadd.f32 1e-05, %v1409_v32  ;;  %v1471_v38 = vmul.f32 %v3135_v49, %v1449_v33 }
 0x4ed   : > { %v1424_v40 = vadd.f32 1e-05, %v1408_v36  ;;  %v1389_v41 = vpop.xlane.xlu1 %1388  ;;  %v2517_v20 = vpop.eup %2516 }
 0x4ee   : > { %2528 = vrsqrt.f32 %v1425_v37  ;;  %v1411_v42 = vmul.f32 0.0625, %v1389_v41  ;;  %v1386_v46 = vpop.xlane.xlu0 %1385  ;;  %v1493_v57 = vadd.f32 %v3141_v55, %v1471_v38  ;;  %v1450_v27 = vmul.f32 %v2517_v20, %v3055_v43 }
 0x4ef   : > { %v2519_v47 = vpop.eup %2518  ;;  %2530 = vrsqrt.f32 %v1424_v40  ;;  %v1410_v48 = vmul.f32 0.0625, %v1386_v46 }
 0x4f0   : > { %v1427_v50 = vadd.f32 1e-05, %v1411_v42  ;;  %2399 = vmatprep.mubr.msk.f32.mxu1 %vm541_vm1, %v1493_v57  ;;  %v1451_v61 = vmul.f32 %v2519_v47, %v3058_v6  ;;  %v1472_v54 = vmul.f32 %v3135_v49, %v1450_v27  ;;  %v1860_v27 = vld [vmem:[%s3419_s9 + $0x38] sm:$0xff] }
 0x4f1   : > { %v1426_v51 = vadd.f32 1e-05, %v1410_v48  ;;  %v1395_v19 = vpop.xlane.xlu1 %1394  ;;  %2420 = vmatprep.subr.mxu0 %v1860_v27 }
 0x4f2   : > { %2532 = vrsqrt.f32 %v1427_v50  ;;  %v1413_v56 = vmul.f32 0.0625, %v1395_v19  ;;  %v1392_v58 = vpop.xlane.xlu0 %1391  ;;  %v1473_v30 = vmul.f32 %v3135_v49, %v1451_v61  ;;  %v1494_v31 = vadd.f32 %v3141_v55, %v1472_v54  ;;  %2421 = vmatpush3.msra.mxu0 %v1860_v27  ;;  %v1856_v50 = vld [vmem:[%s3419_s9 + $0x18] sm:$0xff]  ;;  %v1855_v61 = vld [vmem:[%s3419_s9 + $0x10] sm:$0xff]  ;;  %v1853_v19 = vld [vmem:[%s3419_s9] sm:$0xff] }
 0x4f3   : > { %v2521_v59 = vpop.eup %2520  ;;  %2534 = vrsqrt.f32 %v1426_v51  ;;  %v1412_v44 = vmul.f32 0.0625, %v1392_v58  ;;  %v1854_v51 = vld [vmem:[%s3419_s9 + $0x8] sm:$0xff]  ;;  %v3233_v54 = vld [vmem:[%s3418_s8] ss:$0 sm:$0xff] }
 0x4f4   : > { %v2523_v43 = vpop.eup %2522  ;;  %v1429_v39 = vadd.f32 1e-05, %v1413_v56  ;;  %v1495_v1 = vadd.f32 %v3141_v55, %v1473_v30  ;;  %v1453_v6 = vmul.f32 %v2521_v59, %v3066_v53  ;;  %2400 = vmatmul.mubr.msk.f32.gmra.mxu1 %vm541_vm1, %v1494_v31 }
 0x4f5   : > { %v1428_v3 = vadd.f32 1e-05, %v1412_v44  ;;  %v1452_v4 = vmul.f32 %v2523_v43, %v3070_v52 }
 0x4f6   : > { %2536 = vrsqrt.f32 %v1429_v39  ;;  %v1398_v7 = vpop.xlane.xlu0 %1397  ;;  %2402 = vmatprep.mubr.msk.f32.mxu1 %vm541_vm1, %v1495_v1  ;;  %v1475_v8 = vmul.f32 %v3135_v49, %v1453_v6 }
 0x4f7   : > { %v2525_v5 = vpop.eup %2524  ;;  %2538 = vrsqrt.f32 %v1428_v3  ;;  %v1414_v45 = vmul.f32 0.0625, %v1398_v7  ;;  %v1474_v13 = vmul.f32 %v3135_v49, %v1452_v4 }
 0x4f8   : > { %v2527_v14 = vpop.eup %2526  ;;  %v1497_v0 = vadd.f32 %v3141_v55, %v1475_v8  ;;  %v1455_v53 = vmul.f32 %v2525_v5, %v3077_v34 }
 0x4f9   : > { %v1430_v15 = vadd.f32 1e-05, %v1414_v45  ;;  %v1496_v12 = vadd.f32 %v3141_v55, %v1474_v13  ;;  %v1454_v52 = vmul.f32 %v2527_v14, %v3081_v63 }
 0x4fa   : > { %v1477_v21 = vmul.f32 %v3135_v49, %v1455_v53 }
 0x4fb   : > { %v2529_v26 = vpop.eup %2528  ;;  %2540 = vrsqrt.f32 %v1430_v15  ;;  %2403 = vmatmul.mubr.msk.f32.gmra.mxu1 %vm541_vm1, %v1496_v12  ;;  %v1476_v18 = vmul.f32 %v3135_v49, %v1454_v52 }
 0x4fc   : > { %v2531_v10 = vpop.eup %2530  ;;  %2405 = vmatprep.mubr.msk.f32.mxu1 %vm541_vm1, %v1497_v0  ;;  %v1499_v24 = vadd.f32 %v3141_v55, %v1477_v21  ;;  %v1457_v34 = vmul.f32 %v2529_v26, %v3089_v9 }
 0x4fd   : > { %v1498_v25 = vadd.f32 %v3141_v55, %v1476_v18  ;;  %v1456_v28 = vmul.f32 %v2531_v10, %v3093_v11 }
 0x4fe   : > { %v1479_v63 = vmul.f32 %v3135_v49, %v1457_v34 }
 0x4ff   : > { %v2533_v29 = vpop.eup %2532  ;;  %2406 = vmatmul.mubr.msk.f32.gmra.mxu1 %vm541_vm1, %v1498_v25  ;;  %v1478_v16 = vmul.f32 %v3135_v49, %v1456_v28 }
 0x500   : > { %v2535_v2 = vpop.eup %2534  ;;  %2408 = vmatprep.mubr.msk.f32.mxu1 %vm541_vm1, %v1499_v24  ;;  %v1501_v32 = vadd.f32 %v3141_v55, %v1479_v63  ;;  %v1459_v17 = vmul.f32 %v2533_v29, %v3101_v23 }
 0x501   : > { %v1500_v9 = vadd.f32 %v3141_v55, %v1478_v16  ;;  %v1458_v33 = vmul.f32 %v2535_v2, %v3105_v62 }
 0x502   : > { %v1481_v11 = vmul.f32 %v3135_v49, %v1459_v17 }
 0x503   : > { %v2537_v36 = vpop.eup %2536  ;;  %2409 = vmatmul.mubr.msk.f32.gmra.mxu1 %vm541_vm1, %v1500_v9  ;;  %v1480_v37 = vmul.f32 %v3135_v49, %v1458_v33 }
 0x504   : > { %v2539_v38 = vpop.eup %2538  ;;  %2411 = vmatprep.mubr.msk.f32.mxu1 %vm541_vm1, %v1501_v32  ;;  %v1503_v40 = vadd.f32 %v3141_v55, %v1481_v11  ;;  %v1461_v41 = vmul.f32 %v2537_v36, %v3113_v60 }
 0x505   : > { %v1502_v23 = vadd.f32 %v3141_v55, %v1480_v37  ;;  %v1460_v20 = vmul.f32 %v2539_v38, %v3117_v35 }
 0x506   : > { %v1483_v62 = vmul.f32 %v3135_v49, %v1461_v41 }
 0x507   : > { %2412 = vmatmul.mubr.msk.f32.gmra.mxu1 %vm541_vm1, %v1502_v23  ;;  %v1482_v42 = vmul.f32 %v3135_v49, %v1460_v20 }
 0x508   : > { %v2541_v46 = vpop.eup %2540  ;;  %2414 = vmatprep.mubr.msk.f32.mxu1 %vm541_vm1, %v1503_v40  ;;  %v1505_v57 = vadd.f32 %v3141_v55, %v1483_v62 }
 0x509   : > { %v1504_v47 = vadd.f32 %v3141_v55, %v1482_v42  ;;  %v1462_v48 = vmul.f32 %v2541_v46, %v3126_v22  ;;  %v1859_v22 = vld [vmem:[%s3419_s9 + $0x30] sm:$0xff] }
 0x50a   : > { %2422 = vmatprep.subr.mxu0 %v1859_v22 }
 0x50b   : > { %2415 = vmatmul.mubr.msk.f32.gmra.mxu1 %vm541_vm1, %v1504_v47  ;;  %v1484_v60 = vmul.f32 %v3135_v49, %v1462_v48  ;;  %2423 = vmatpush3.msra.mxu0 %v1859_v22  ;;  %v1858_v49 = vld [vmem:[%s3419_s9 + $0x28] sm:$0xff] }
 0x50c   : > { %2417 = vmatprep.mubr.msk.f32.mxu1 %vm541_vm1, %v1505_v57  ;;  %2424 = vmatprep.subr.mxu0 %v1858_v49 }
 0x50d   : > { %v1506_v35 = vadd.f32 %v3141_v55, %v1484_v60  ;;  %2425 = vmatpush3.msra.mxu0 %v1858_v49  ;;  %v1857_v55 = vld [vmem:[%s3419_s9 + $0x20] sm:$0xff] }
 0x50e   : > { %2426 = vmatprep.subr.mxu0 %v1857_v55 }
 0x50f   : > { %2418 = vmatmul.mubr.msk.f32.gmra.mxu1 %vm541_vm1, %v1506_v35  ;;  %2427 = vmatpush3.msra.mxu0 %v1857_v55 }
 0x510   : > { %2428 = vmatprep.subr.mxu0 %v1856_v50 }
 0x511   : > { %2429 = vmatpush3.msra.mxu0 %v1856_v50 }
 0x512   : > { %2430 = vmatprep.subr.mxu0 %v1855_v61 }
 0x513   : > { %2431 = vmatpush3.msra.mxu0 %v1855_v61 }
 0x514   : > { %2432 = vmatprep.subr.mxu0 %v1854_v51 }
 0x515   : > { %2433 = vmatpush3.msra.mxu0 %v1854_v51 }
 0x516   : > { %2434 = vmatprep.subr.mxu0 %v1853_v19 }
 0x517   : > { %2435 = vmatpush3.msra.mxu0 %v1853_v19 }
 0x57c   : > { %v2398_v56 = vpop.f32.mrf.mxu1 }
 0x57d   : > { %v1636_v58 = vadd.f32 %v2398_v56, %v3233_v54 }
 0x57e   : > { %v1630_v30 = vpop.f32.mrf.mxu1 }
 0x57f   : > { %v1726_v59 = vmul.f32 0.044715, %v1636_v58  ;;  %v1631_v44 = vadd.f32 %v3233_v54, %v1630_v30  ;;  %v1710_v53 = vmul.f32 0.5, %v1636_v58 }
 0x581   : > { %v1742_v31 = vmul.f32 %v1726_v59, %v1636_v58  ;;  %v1725_v43 = vmul.f32 0.044715, %v1631_v44  ;;  %v1709_v14 = vmul.f32 0.5, %v1631_v44 }
 0x583   : > { %v1758_v39 = vmul.f32 %v1742_v31, %v1636_v58  ;;  %v1741_v1 = vmul.f32 %v1725_v43, %v1631_v44 }
 0x585   : > { %v1774_v6 = vadd.f32 %v1758_v39, %v1636_v58  ;;  %v1757_v3 = vmul.f32 %v1741_v1, %v1631_v44 }
 0x587   : > { %v1790_v4 = vmul.f32 0.7978846, %v1774_v6  ;;  %v1773_v7 = vadd.f32 %v1757_v3, %v1631_v44 }
 0x589   : > { %2542 = vtanh.f32 %v1790_v4  ;;  %v1789_v8 = vmul.f32 0.7978846, %v1773_v7 }
 0x58b   : > { %2544 = vtanh.f32 %v1789_v8 }
 0x596   : > { %v2543_v5 = vpop.eup %2542 }
 0x597   : > { %v1822_v13 = vadd.f32 1.0, %v2543_v5 }
 0x598   : > { %v2545_v45 = vpop.eup %2544 }
 0x599   : > { %v1821_v0 = vadd.f32 1.0, %v2545_v45  ;;  %v1838_v12 = vmul.f32 %v1822_v13, %v1710_v53 }
 0x59b   : > { %v1837_v15 = vmul.f32 %v1821_v0, %v1709_v14 }
 0x59d   : > { %2436 = vmatprep.mubr.msk.f32.mxu0 %vm1868_vm2, %v1837_v15 }
 0x59e   : > { %2437 = vmatmul.mubr.msk.f32.vlgmr.msra.gmra.mxu0 %vm1868_vm2, %v1838_v12 }
 0x5b4   : > { %v2401_v52 = vpop.f32.mrf.mxu1 }
 0x5b5   : > { %v3240_v21 = vadd.f32 %v2401_v52, %v3233_v54 }
 0x5b6   : > { %v1640_v26 = vpop.f32.mrf.mxu1 }
 0x5b7   : > { %v1728_v18 = vmul.f32 0.044715, %v3240_v21  ;;  %v3244_v10 = vadd.f32 %v3233_v54, %v1640_v26 }
 0x5b9   : > { %v1744_v24 = vmul.f32 %v1728_v18, %v3240_v21  ;;  %v1727_v34 = vmul.f32 0.044715, %v3244_v10 }
 0x5bb   : > { %v2404_v25 = vpop.f32.mrf.mxu1  ;;  %v1760_v28 = vmul.f32 %v1744_v24, %v3240_v21  ;;  %v1743_v63 = vmul.f32 %v1727_v34, %v3244_v10 }
 0x5bc   : > { %v3251_v29 = vadd.f32 %v2404_v25, %v3233_v54 }
 0x5bd   : > { %v1650_v16 = vpop.f32.mrf.mxu1  ;;  %v1776_v2 = vadd.f32 %v1760_v28, %v3240_v21  ;;  %v1759_v32 = vmul.f32 %v1743_v63, %v3244_v10  ;;  %v1712_v28 = vmul.f32 0.5, %v3240_v21 }
 0x5be   : > { %v1730_v17 = vmul.f32 0.044715, %v3251_v29  ;;  %v3257_v9 = vadd.f32 %v3233_v54, %v1650_v16 }
 0x5bf   : > { %v2407_v33 = vpop.f32.mrf.mxu1  ;;  %v1775_v11 = vadd.f32 %v1759_v32, %v3244_v10  ;;  %v1792_v41 = vmul.f32 0.7978846, %v1776_v2 }
 0x5c0   : > { %v1746_v36 = vmul.f32 %v1730_v17, %v3251_v29  ;;  %v1729_v37 = vmul.f32 0.044715, %v3257_v9  ;;  %v3263_v38 = vadd.f32 %v2407_v33, %v3233_v54 }
 0x5c1   : > { %v1660_v40 = vpop.f32.mrf.mxu1  ;;  %v1791_v57 = vmul.f32 0.7978846, %v1775_v11  ;;  %2546 = vtanh.f32 %v1792_v41 }
 0x5c2   : > { %v1762_v23 = vmul.f32 %v1746_v36, %v3251_v29  ;;  %v1745_v20 = vmul.f32 %v1729_v37, %v3257_v9  ;;  %v1732_v62 = vmul.f32 0.044715, %v3263_v38  ;;  %v3269_v42 = vadd.f32 %v3233_v54, %v1660_v40 }
 0x5c3   : > { %v2410_v46 = vpop.f32.mrf.mxu1  ;;  %2548 = vtanh.f32 %v1791_v57  ;;  %v1711_v57 = vmul.f32 0.5, %v3244_v10 }
 0x5c4   : > { %v1778_v47 = vadd.f32 %v1762_v23, %v3251_v29  ;;  %v1761_v48 = vmul.f32 %v1745_v20, %v3257_v9  ;;  %v1748_v60 = vmul.f32 %v1732_v62, %v3263_v38  ;;  %v1731_v35 = vmul.f32 0.044715, %v3269_v42 }
 0x5c5   : > { %v3276_v27 = vadd.f32 %v2410_v46, %v3233_v54  ;;  %v1670_v22 = vpop.f32.mrf.mxu1 }
 0x5c6   : > { %v1777_v49 = vadd.f32 %v1761_v48, %v3257_v9  ;;  %v1764_v55 = vmul.f32 %v1748_v60, %v3263_v38  ;;  %v1747_v50 = vmul.f32 %v1731_v35, %v3269_v42  ;;  %v3282_v61 = vadd.f32 %v3233_v54, %v1670_v22 }
 0x5c7   : > { %v1734_v51 = vmul.f32 0.044715, %v3276_v27  ;;  %v2413_v19 = vpop.f32.mrf.mxu1  ;;  %v1794_v56 = vmul.f32 0.7978846, %v1778_v47 }
 0x5c8   : > { %v1780_v58 = vadd.f32 %v1764_v55, %v3263_v38  ;;  %v1763_v30 = vmul.f32 %v1747_v50, %v3269_v42  ;;  %v1733_v59 = vmul.f32 0.044715, %v3282_v61  ;;  %v3289_v44 = vadd.f32 %v2413_v19, %v3233_v54 }
 0x5c9   : > { %v1750_v31 = vmul.f32 %v1734_v51, %v3276_v27  ;;  %v1680_v43 = vpop.f32.mrf.mxu1  ;;  %v1793_v39 = vmul.f32 0.7978846, %v1777_v49  ;;  %2550 = vtanh.f32 %v1794_v56 }
 0x5ca   : > { %v1779_v1 = vadd.f32 %v1763_v30, %v3269_v42  ;;  %v1749_v6 = vmul.f32 %v1733_v59, %v3282_v61  ;;  %v1736_v3 = vmul.f32 0.044715, %v3289_v44  ;;  %v3296_v4 = vadd.f32 %v3233_v54, %v1680_v43 }
 0x5cb   : > { %v1766_v7 = vmul.f32 %v1750_v31, %v3276_v27  ;;  %v2416_v8 = vpop.f32.mrf.mxu1  ;;  %2552 = vtanh.f32 %v1793_v39  ;;  %v1796_v5 = vmul.f32 0.7978846, %v1780_v58  ;;  %v1713_v39 = vmul.f32 0.5, %v3257_v9 }
 0x5cc   : > { %v1765_v45 = vmul.f32 %v1749_v6, %v3282_v61  ;;  %v1752_v13 = vmul.f32 %v1736_v3, %v3289_v44  ;;  %v1735_v14 = vmul.f32 0.044715, %v3296_v4  ;;  %v3303_v0 = vadd.f32 %v2416_v8, %v3233_v54 }
 0x5cd   : > { %v1782_v53 = vadd.f32 %v1766_v7, %v3276_v27  ;;  %v1690_v15 = vpop.f32.mrf.mxu1  ;;  %v1795_v12 = vmul.f32 0.7978846, %v1779_v1  ;;  %2554 = vtanh.f32 %v1796_v5  ;;  %v1714_v8 = vmul.f32 0.5, %v3251_v29 }
 0x5ce   : > { %v1781_v52 = vadd.f32 %v1765_v45, %v3282_v61  ;;  %v1768_v26 = vmul.f32 %v1752_v13, %v3289_v44  ;;  %v1751_v18 = vmul.f32 %v1735_v14, %v3296_v4  ;;  %v1738_v24 = vmul.f32 0.044715, %v3303_v0  ;;  %v2547_v16 = vpop.eup %2546 }
 0x5cf   : > { %v3311_v34 = vadd.f32 %v3233_v54, %v1690_v15  ;;  %v2419_v25 = vpop.f32.mrf.mxu1  ;;  %2556 = vtanh.f32 %v1795_v12  ;;  %v1798_v63 = vmul.f32 0.7978846, %v1782_v53  ;;  %v1824_v37 = vadd.f32 1.0, %v2547_v16 }
 0x5d0   : > { %v1784_v2 = vadd.f32 %v1768_v26, %v3289_v44  ;;  %v1767_v32 = vmul.f32 %v1751_v18, %v3296_v4  ;;  %v1754_v17 = vmul.f32 %v1738_v24, %v3303_v0  ;;  %v3318_v33 = vadd.f32 %v2419_v25, %v3233_v54  ;;  %v2549_v41 = vpop.eup %2548 }
 0x5d1   : > { %v1737_v11 = vmul.f32 0.044715, %v3311_v34  ;;  %v1700_v36 = vpop.f32.mrf.mxu1  ;;  %v1797_v40 = vmul.f32 0.7978846, %v1781_v52  ;;  %2558 = vtanh.f32 %v1798_v63  ;;  %v1823_v47 = vadd.f32 1.0, %v2549_v41 }
 0x5d2   : > { %v1783_v21 = vadd.f32 %v1767_v32, %v3296_v4  ;;  %v1770_v23 = vmul.f32 %v1754_v17, %v3303_v0  ;;  %v1740_v20 = vmul.f32 0.044715, %v3318_v33  ;;  %v3325_v62 = vadd.f32 %v3233_v54, %v1700_v36 }
 0x5d3   : > { %v1753_v46 = vmul.f32 %v1737_v11, %v3311_v34  ;;  %2560 = vtanh.f32 %v1797_v40  ;;  %v1839_v55 = vmul.f32 %v1823_v47, %v1711_v57  ;;  %v1840_v50 = vmul.f32 %v1824_v37, %v1712_v28 }
 0x5d4   : > { %v1786_v48 = vadd.f32 %v1770_v23, %v3303_v0  ;;  %v1756_v60 = vmul.f32 %v1740_v20, %v3318_v33  ;;  %v1739_v35 = vmul.f32 0.044715, %v3325_v62  ;;  %v1799_v22 = vmul.f32 0.7978846, %v1783_v21 }
 0x5d5   : > { %v1769_v49 = vmul.f32 %v1753_v46, %v3311_v34  ;;  %v1800_v51 = vmul.f32 0.7978846, %v1784_v2  ;;  %2439 = vmatprep.mubr.msk.f32.mxu0 %vm1868_vm2, %v1839_v55  ;;  %v1715_v12 = vmul.f32 0.5, %v3269_v42  ;;  %v1716_v26 = vmul.f32 0.5, %v3263_v38 }
 0x5d6   : > { %v2551_v54 = vpop.eup %2550  ;;  %v1772_v19 = vmul.f32 %v1756_v60, %v3318_v33  ;;  %v1755_v56 = vmul.f32 %v1739_v35, %v3325_v62  ;;  %2562 = vtanh.f32 %v1799_v22  ;;  %v1802_v10 = vmul.f32 0.7978846, %v1786_v48  ;;  %2440 = vmatmul.mubr.msk.f32.gmra.mxu0 %vm1868_vm2, %v1840_v50 }
 0x5d7   : > { %v1785_v58 = vadd.f32 %v1769_v49, %v3311_v34  ;;  %2564 = vtanh.f32 %v1800_v51  ;;  %v1826_v43 = vadd.f32 1.0, %v2551_v54  ;;  %v1717_v28 = vmul.f32 0.5, %v3282_v61 }
 0x5d8   : > { %v2553_v30 = vpop.eup %2552  ;;  %v1788_v59 = vadd.f32 %v1772_v19, %v3318_v33  ;;  %v1771_v31 = vmul.f32 %v1755_v56, %v3325_v62  ;;  %2566 = vtanh.f32 %v1802_v10  ;;  %v1718_v42 = vmul.f32 0.5, %v3276_v27 }
 0x5d9   : > { %v1825_v1 = vadd.f32 1.0, %v2553_v30  ;;  %v1801_v6 = vmul.f32 0.7978846, %v1785_v58  ;;  %v1842_v14 = vmul.f32 %v1826_v43, %v1714_v8  ;;  %v1719_v38 = vmul.f32 0.5, %v3296_v4 }
 0x5da   : > { %v2555_v3 = vpop.eup %2554  ;;  %v1787_v7 = vadd.f32 %v1771_v31, %v3325_v62  ;;  %v1804_v5 = vmul.f32 0.7978846, %v1788_v59  ;;  %v1720_v61 = vmul.f32 0.5, %v3289_v44  ;;  %v1721_v20 = vmul.f32 0.5, %v3311_v34 }
 0x5db   : > { %v1841_v45 = vmul.f32 %v1825_v1, %v1713_v39  ;;  %2568 = vtanh.f32 %v1801_v6  ;;  %v1828_v53 = vadd.f32 1.0, %v2555_v3  ;;  %v1722_v4 = vmul.f32 0.5, %v3303_v0 }
 0x5dc   : > { %v2557_v13 = vpop.eup %2556  ;;  %v1803_v15 = vmul.f32 0.7978846, %v1787_v7  ;;  %2570 = vtanh.f32 %v1804_v5  ;;  %v1723_v60 = vmul.f32 0.5, %v3325_v62  ;;  %v1724_v49 = vmul.f32 0.5, %v3318_v33  ;;  %v2227_v62 = vld [vmem:[%s3420_s10] ss:$0 sm:$0xff] }
 0x5dd   : > { %2442 = vmatprep.mubr.msk.f32.mxu0 %vm1868_vm2, %v1841_v45  ;;  %v1827_v9 = vadd.f32 1.0, %v2557_v13  ;;  %v1844_v24 = vmul.f32 %v1828_v53, %v1716_v26 }
 0x5de   : > { %v2559_v52 = vpop.eup %2558  ;;  %2443 = vmatmul.mubr.msk.f32.gmra.mxu0 %vm1868_vm2, %v1842_v14  ;;  %2572 = vtanh.f32 %v1803_v15 }
 0x5df   : > { %v1843_v29 = vmul.f32 %v1827_v9, %v1715_v12  ;;  %v1830_v25 = vadd.f32 1.0, %v2559_v52 }
 0x5e0   : > { %v2561_v18 = vpop.eup %2560 }
 0x5e1   : > { %2445 = vmatprep.mubr.msk.f32.mxu0 %vm1868_vm2, %v1843_v29  ;;  %v1829_v63 = vadd.f32 1.0, %v2561_v18  ;;  %v1846_v17 = vmul.f32 %v1830_v25, %v1718_v42 }
 0x5e2   : > { %2446 = vmatmul.mubr.msk.f32.gmra.mxu0 %vm1868_vm2, %v1844_v24 }
 0x5e3   : > { %v2563_v16 = vpop.eup %2562  ;;  %v1845_v2 = vmul.f32 %v1829_v63, %v1717_v28 }
 0x5e4   : > { %v2565_v32 = vpop.eup %2564  ;;  %v1831_v11 = vadd.f32 1.0, %v2563_v16 }
 0x5e5   : > { %v2567_v36 = vpop.eup %2566  ;;  %2448 = vmatprep.mubr.msk.f32.mxu0 %vm1868_vm2, %v1845_v2  ;;  %v1832_v37 = vadd.f32 1.0, %v2565_v32 }
 0x5e6   : > { %2449 = vmatmul.mubr.msk.f32.gmra.mxu0 %vm1868_vm2, %v1846_v17  ;;  %v1847_v40 = vmul.f32 %v1831_v11, %v1719_v38  ;;  %v1834_v21 = vadd.f32 1.0, %v2567_v36 }
 0x5e7   : > { %v1848_v27 = vmul.f32 %v1832_v37, %v1720_v61 }
 0x5e8   : > { %v2569_v41 = vpop.eup %2568  ;;  %2451 = vmatprep.mubr.msk.f32.mxu0 %vm1868_vm2, %v1847_v40  ;;  %v1850_v48 = vmul.f32 %v1834_v21, %v1722_v4 }
 0x5e9   : > { %v2571_v23 = vpop.eup %2570  ;;  %v1833_v46 = vadd.f32 1.0, %v2569_v41 }
 0x5ea   : > { %2452 = vmatmul.mubr.msk.f32.gmra.mxu0 %vm1868_vm2, %v1848_v27  ;;  %v1836_v44 = vadd.f32 1.0, %v2571_v23 }
 0x5eb   : > { %v2573_v57 = vpop.eup %2572  ;;  %v1849_v47 = vmul.f32 %v1833_v46, %v1721_v20 }
 0x5ec   : > { %v1835_v35 = vadd.f32 1.0, %v2573_v57  ;;  %v1852_v34 = vmul.f32 %v1836_v44, %v1724_v49 }
 0x5ed   : > { %2454 = vmatprep.mubr.msk.f32.mxu0 %vm1868_vm2, %v1849_v47 }
 0x5ee   : > { %2455 = vmatmul.mubr.msk.f32.gmra.mxu0 %vm1868_vm2, %v1850_v48  ;;  %v1851_v22 = vmul.f32 %v1835_v35, %v1723_v60 }
 0x5f0   : > { %2457 = vmatprep.mubr.msk.f32.mxu0 %vm1868_vm2, %v1851_v22 }
 0x5f2   : > { %2458 = vmatmul.mubr.msk.f32.gmra.mxu0 %vm1868_vm2, %v1852_v34 }
 0x65e   : > { %v2438_v0 = vpop.f32.mrf.mxu0 }
 0x65f   : > { %v1989_v53 = vadd.f32 %v2438_v0, %v2227_v62 }
 0x660   : > { %v1983_v55 = vpop.f32.mrf.mxu0 }
 0x661   : > { %v1984_v12 = vadd.f32 %v2227_v62, %v1983_v55 }
 0x696   : > { %v2441_v50 = vpop.f32.mrf.mxu0 }
 0x697   : > { %v1999_v51 = vadd.f32 %v2441_v50, %v2227_v62 }
 0x698   : > { %v1993_v54 = vpop.f32.mrf.mxu0 }
 0x699   : > { %v1994_v19 = vadd.f32 %v2227_v62, %v1993_v54  ;;  %2066 = vrot.lane.b32.xlu0 %v1999_v51, %s2582_s22 }
 0x69b   : > { %2064 = vrot.lane.b32.xlu1 %v1994_v19, %s2582_s22 }
 0x69e   : > { %v2444_v33 = vpop.f32.mrf.mxu0 }
 0x69f   : > { %v2009_v29 = vadd.f32 %v2444_v33, %v2227_v62 }
 0x6a0   : > { %v2003_v56 = vpop.f32.mrf.mxu0 }
 0x6a1   : > { %v2004_v25 = vadd.f32 %v2227_v62, %v2003_v56 }
 0x6a2   : > { %v2447_v10 = vpop.f32.mrf.mxu0 }
 0x6a3   : > { %v2019_v58 = vadd.f32 %v2447_v10, %v2227_v62 }
 0x6a4   : > { %v2013_v30 = vpop.f32.mrf.mxu0 }
 0x6a5   : > { %2078 = vrot.lane.b32.xlu1 %v2019_v58, %s2582_s22  ;;  %v2014_v31 = vadd.f32 %v2227_v62, %v2013_v30 }
 0x6a6   : > { %v2450_v59 = vpop.f32.mrf.mxu0 }
 0x6a7   : > { %v2029_v42 = vadd.f32 %v2450_v59, %v2227_v62 }
 0x6a8   : > { %v2023_v43 = vpop.f32.mrf.mxu0 }
 0x6a9   : > { %2076 = vrot.lane.b32.xlu1 %v2014_v31, %s2582_s22  ;;  %v2024_v2 = vadd.f32 %v2227_v62, %v2023_v43 }
 0x6aa   : > { %v2453_v39 = vpop.f32.mrf.mxu0 }
 0x6ab   : > { %v2039_v1 = vadd.f32 %v2453_v39, %v2227_v62 }
 0x6ac   : > { %v2033_v6 = vpop.f32.mrf.mxu0 }
 0x6ad   : > { %v2034_v3 = vadd.f32 %v2227_v62, %v2033_v6  ;;  %2091 = vrot.lane.b32.xlu1 %v2039_v1, %s2582_s22 }
 0x6ae   : > { %v2456_v7 = vpop.f32.mrf.mxu0 }
 0x6af   : > { %2089 = vrot.lane.b32.xlu0 %v2034_v3, %s2582_s22  ;;  %v2049_v11 = vadd.f32 %v2456_v7, %v2227_v62 }
 0x6b0   : > { %v2043_v8 = vpop.f32.mrf.mxu0 }
 0x6b1   : > { %v2044_v37 = vadd.f32 %v2227_v62, %v2043_v8 }
 0x6b2   : > { %v2459_v5 = vpop.f32.mrf.mxu0 }
 0x6b3   : > { %v2059_v45 = vadd.f32 %v2459_v5, %v2227_v62 }
 0x6b4   : > { %v2053_v13 = vpop.f32.mrf.mxu0 }
 0x6b5   : > { %v2054_v14 = vadd.f32 %v2227_v62, %v2053_v13  ;;  %2104 = vrot.lane.b32.xlu1 %v2059_v45, %s2582_s22 }
 0x6b7   : > { %2102 = vrot.lane.b32.xlu0 %v2054_v14, %s2582_s22 }
 0x70b   : > { %v2067_v15 = vpop.permute.xlu0 %2066 }
 0x70c   : > { %v2071_v9 = vsel %vm541_vm1, %v1989_v53, %v2067_v15 }
 0x70d   : > { %2073 = vst.msk [vmem:[%s3381_s30 + $0x8] sm:$0xff] %vm407_vm0, %v2071_v9  ;;  %v2065_v52 = vpop.permute.xlu1 %2064 }
 0x70e   : > { %v2070_v26 = vsel %vm541_vm1, %v1984_v12, %v2065_v52 }
 0x70f   : > { %2072 = vst.msk [vmem:[%s3381_s30] sm:$0xff] %vm407_vm0, %v2070_v26 }
 0x717   : > { %v2079_v18 = vpop.permute.xlu1 %2078 }
 0x718   : > { %v2083_v24 = vsel %vm541_vm1, %v2009_v29, %v2079_v18 }
 0x719   : > { %2245 = vst.msk [vmem:[%s3381_s30 + $0x18] sm:$0xff] %vm407_vm0, %v2083_v24 }
 0x71b   : > { %v2077_v28 = vpop.permute.xlu1 %2076 }
 0x71c   : > { %v2082_v63 = vsel %vm541_vm1, %v2004_v25, %v2077_v28 }
 0x71d   : > { %2244 = vst.msk [vmem:[%s3381_s30 + $0x10] sm:$0xff] %vm407_vm0, %v2082_v63 }
 0x71f   : > { %v2092_v16 = vpop.permute.xlu1 %2091 }
 0x720   : > { %v2096_v32 = vsel %vm541_vm1, %v2029_v42, %v2092_v16 }
 0x721   : > { %2247 = vst.msk [vmem:[%s3381_s30 + $0x28] sm:$0xff] %vm407_vm0, %v2096_v32  ;;  %v2090_v17 = vpop.permute.xlu0 %2089 }
 0x722   : > { %v2095_v38 = vsel %vm541_vm1, %v2024_v2, %v2090_v17 }
 0x723   : > { %2246 = vst.msk [vmem:[%s3381_s30 + $0x20] sm:$0xff] %vm407_vm0, %v2095_v38 }
 0x727   : > { %v2105_v36 = vpop.permute.xlu1 %2104 }
 0x728   : > { %v2109_v40 = vsel %vm541_vm1, %v2049_v11, %v2105_v36 }
 0x729   : > { %2249 = vst.msk [vmem:[%s3381_s30 + $0x38] sm:$0xff] %vm407_vm0, %v2109_v40  ;;  %v2103_v61 = vpop.permute.xlu0 %2102 }
 0x72a   : > { %v2108_v41 = vsel %vm541_vm1, %v2044_v37, %v2103_v61 }
 0x72b   : > { %2248 = vst.msk [vmem:[%s3381_s30 + $0x30] sm:$0xff] %vm407_vm0, %v2108_v41 }
 0x72c PF: > { %s21_s17 = sadd.s32 1, %s2580_s17  }
 0x72d   : > { %p18_p4 = scmp.ge.s32.totalorder %s21_s17, 4  }
 0x72f   :  { %20 = sbr.rel (!%p18_p4) target bundleno = 1 (0x1), region = 97 }

</bundles_post_ra>
